<compile_context>
chip_gen: v7x
topology: tpu7x:2x2x1
jax: 0.10.0
libtpu: 0.0.40
codegen_flags: <defaults>
</compile_context>

<pallas_src>
import functools

import jax
import jax.numpy as jnp
from jax.experimental import pallas as pl
from jax.experimental.pallas import tpu as pltpu


def _round_up(x, m):
    return ((x + m - 1) // m) * m


def _cdiv(a, b):
    return (a + b - 1) // b


def _pad2d(a, rows, cols):
    return jnp.pad(a, ((0, rows - a.shape[0]), (0, cols - a.shape[1])))


def _bias_relu_bf16(h_f32, b_ref):
    # One f32 bias add, one downcast, ReLU on bf16 vregs.  Bit-identical to
    # max-then-cast because rounding to bf16 commutes with max(., 0).
    return jnp.maximum((h_f32 + b_ref[...]).astype(jnp.bfloat16), 0.0)


def _encoder_kernel_resident(x_ref, w1, b1, w2, b2, w3, b3, w4, b4, o_ref):
    """Multi-tile path: all weights resident in VMEM (constant index maps -> DMA'd
    once), batch tiles pipelined and sharded across TensorCores."""
    h = jnp.dot(x_ref[...], w1[...], preferred_element_type=jnp.float32)
    h = _bias_relu_bf16(h, b1)
    h = jnp.dot(h, w2[...], preferred_element_type=jnp.float32)
    h = _bias_relu_bf16(h, b2)
    h = jnp.dot(h, w3[...], preferred_element_type=jnp.float32)
    h = _bias_relu_bf16(h, b3)
    h = jnp.dot(h, w4[...], preferred_element_type=jnp.float32)
    o_ref[...] = (h + b4[...]).astype(o_ref.dtype)


def _encoder_kernel_prefetch(x_ref, w1, b1, w2, b2, w3_hbm, b3, w4_hbm, b4, o_ref,
                             w3_vmem, w4_vmem, sem):
    """Single-batch-tile path: W3/W4 (the ~2.5 MiB that dominates weight DMA) are
    copied HBM->VMEM *while* layers 1-2 compute, hiding the transfer."""
    cp3 = pltpu.make_async_copy(w3_hbm, w3_vmem, sem.at[0])
    cp4 = pltpu.make_async_copy(w4_hbm, w4_vmem, sem.at[1])
    cp3.start()
    cp4.start()

    h = jnp.dot(x_ref[...], w1[...], preferred_element_type=jnp.float32)
    h = _bias_relu_bf16(h, b1)
    h = jnp.dot(h, w2[...], preferred_element_type=jnp.float32)
    h = _bias_relu_bf16(h, b2)

    cp3.wait()
    h = jnp.dot(h, w3_vmem[...], preferred_element_type=jnp.float32)
    h = _bias_relu_bf16(h, b3)
    cp4.wait()
    h = jnp.dot(h, w4_vmem[...], preferred_element_type=jnp.float32)
    o_ref[...] = (h + b4[...]).astype(o_ref.dtype)


def prepare_encoder_params(params):
    """One-time (outside the jitted per-call path): pad weights to TPU-friendly
    shapes and cast to bf16.  Returns (w1,b1,w2,b2,w3,b3,w4,b4) with weights
    (in_p, out_p) bf16 and biases (1, out_p) f32."""
    dims = [params[0][0].shape[0]] + [w.shape[1] for (w, _) in params]
    dims_p = [_round_up(dims[0], 16)] + [_round_up(d, 128) for d in dims[1:]]
    packed = []
    for li, (w, b) in enumerate(params):
        w_p = _pad2d(jnp.asarray(w, jnp.float32),
                     dims_p[li], dims_p[li + 1]).astype(jnp.bfloat16)
        b_p = _pad2d(jnp.asarray(b, jnp.float32).reshape(1, -1), 1, dims_p[li + 1])
        packed += [w_p, b_p]
    return tuple(packed)


@functools.partial(jax.jit, static_argnames=("feature_dim",))
def encoder_forward(x, packed, feature_dim):
    """x: (B, input_dim) f32.  packed: output of prepare_encoder_params."""
    B = x.shape[0]
    w1, b1, w2, b2, w3, b3, w4, b4 = packed
    d0, d1 = w1.shape
    d2 = w2.shape[1]
    d3 = w3.shape[1]
    d4 = w4.shape[1]

    # Balanced batch tiling: minimize padded rows, cap tiles at 512 rows, and use
    # >= 2 tiles when B > 128 so the "parallel" axis feeds both v7x TensorCores.
    n_tiles = max(1, _cdiv(B, 512))
    if B > 128:
        n_tiles = max(n_tiles, 2)
    TB = _round_up(_cdiv(B, n_tiles), 16)
    B_p = n_tiles * TB

    x_p = _pad2d(x, B_p, d0).astype(jnp.bfloat16)

    # VMEM budget from the actual footprint (+margin), clamped below physical caps.
    w_bytes = (d0 * d1 + d1 * d2 + d2 * d3 + d3 * d4) * 2           # bf16, one copy
    b_bytes = (d1 + d2 + d3 + d4) * 4
    act_bytes = TB * (d1 + d2 + d3 + d4) * 6                        # f32 acc + bf16
    io_bytes = (TB * d0 * 2 + TB * d4 * 4) * 2                      # dbl-buffered x/out
    vmem_limit = int(2 * (w_bytes + b_bytes) + act_bytes + io_bytes + (8 << 20))
    vmem_limit = max(24 << 20, min(vmem_limit, 48 << 20))

    x_spec = pl.BlockSpec((TB, d0), lambda i: (i, 0))
    out_spec = pl.BlockSpec((TB, d4), lambda i: (i, 0))

    def full(shape):    # whole-array block, constant index map -> fetched once
        return pl.BlockSpec(shape, lambda i: (0, 0))

    if n_tiles >= 2:
        kernel = _encoder_kernel_resident
        in_specs = [x_spec,
                    full((d0, d1)), full((1, d1)),
                    full((d1, d2)), full((1, d2)),
                    full((d2, d3)), full((1, d3)),
                    full((d3, d4)), full((1, d4))]
        scratch_shapes = []
    else:
        kernel = _encoder_kernel_prefetch
        in_specs = [x_spec,
                    full((d0, d1)), full((1, d1)),
                    full((d1, d2)), full((1, d2)),
                    pl.BlockSpec(memory_space=pl.ANY), full((1, d3)),   # W3 in HBM
                    pl.BlockSpec(memory_space=pl.ANY), full((1, d4))]   # W4 in HBM
        scratch_shapes = [pltpu.VMEM((d2, d3), jnp.bfloat16),
                          pltpu.VMEM((d3, d4), jnp.bfloat16),
                          pltpu.SemaphoreType.DMA((2,))]

    out_p = pl.pallas_call(
        kernel,
        out_shape=jax.ShapeDtypeStruct((B_p, d4), jnp.float32),
        grid_spec=pltpu.PrefetchScalarGridSpec(
            num_scalar_prefetch=0,
            grid=(n_tiles,),
            in_specs=in_specs,
            out_specs=out_spec,
            scratch_shapes=scratch_shapes,
        ),
        compiler_params=pltpu.CompilerParams(
            dimension_semantics=("parallel",),   # batch tiles shard across TCs (v7x)
            vmem_limit_bytes=vmem_limit,
        ),
    )(x_p, w1, b1, w2, b2, w3, b3, w4, b4)

    return out_p[:B, :feature_dim]


def init_encoder_params(key, input_dim, feature_dim):
    """Deterministic init mimicking nn.Linear (uniform +/- 1/sqrt(fan_in))."""
    layer_dims = [(input_dim, 500), (500, 500), (500, 2000), (2000, feature_dim)]
    params = []
    for (fan_in, fan_out) in layer_dims:
        key, kw, kb = jax.random.split(key, 3)
        bound = 1.0 / float(fan_in) ** 0.5
        w = jax.random.uniform(kw, (fan_in, fan_out), jnp.float32, -bound, bound)
        b = jax.random.uniform(kb, (fan_out,), jnp.float32, -bound, bound)
        params.append((w, b))
    return params


def encoder_reference_bf16(x, params):
    """Same mixed-precision recipe as the kernel (bf16 operands, f32 accumulation)."""
    h = x.astype(jnp.bfloat16)
    n = len(params)
    for li, (w, b) in enumerate(params):
        h = jnp.dot(h, w.astype(jnp.bfloat16), preferred_element_type=jnp.float32) + b
        if li < n - 1:
            h = jnp.maximum(h, 0.0).astype(jnp.bfloat16)
    return h


def encoder_reference_f32(x, params):
    """Full-f32 reference (original PyTorch semantics)."""
    h = x
    n = len(params)
    for li, (w, b) in enumerate(params):
        h = h @ w + b
        if li < n - 1:
            h = jnp.maximum(h, 0.0)
    return h


if __name__ == "__main__":
    key = jax.random.PRNGKey(0)
    kx, kp, kx2 = jax.random.split(key, 3)

    input_dim, feature_dim = 32, 16
    params = init_encoder_params(kp, input_dim, feature_dim)
    packed = prepare_encoder_params(params)      # one-time pad + bf16 cast

    # Small batch -> single tile -> manual W3/W4 prefetch path.
    B = 8
    x = jax.random.normal(kx, (B, input_dim), jnp.float32)
    out = jax.block_until_ready(encoder_forward(x, packed, feature_dim))
    assert out.shape == (B, feature_dim), out.shape
    assert jnp.allclose(out, encoder_reference_bf16(x, params),
                        rtol=2e-3, atol=2e-3), "mismatch vs bf16 reference (B=8)"

    # Larger batch -> 2 balanced tiles (TB=80, B_p=160): resident-weight path,
    # exercises batch-padding rows and the "parallel" grid axis.
    B2 = 150
    x2 = jax.random.normal(kx2, (B2, input_dim), jnp.float32)
    out2 = jax.block_until_ready(encoder_forward(x2, packed, feature_dim))
    assert out2.shape == (B2, feature_dim), out2.shape
    assert jnp.allclose(out2, encoder_reference_bf16(x2, params),
                        rtol=2e-3, atol=2e-3), "mismatch vs bf16 reference (B=150)"

    # Loose sanity check against the full-f32 (PyTorch-semantics) reference; the
    # kernel intentionally uses bf16 operands, so only a relative-error bound applies.
    ref32 = encoder_reference_f32(x2, params)
    rel = float(jnp.max(jnp.abs(out2 - ref32)) / (jnp.max(jnp.abs(ref32)) + 1e-6))
    assert rel < 5e-2, f"relative error vs f32 reference too large: {rel}"

    print("KERNEL_OK")
</pallas_src>

<mosaic_0001>
module attributes {stable_mosaic.version = 11 : i64} {
  func.func @_encoder_kernel_prefetch(%arg0: i32, %arg1: memref<16x32xbf16, #tpu.memory_space<vmem>>, %arg2: memref<32x512xbf16, #tpu.memory_space<vmem>>, %arg3: memref<1x512xf32, #tpu.memory_space<vmem>>, %arg4: memref<512x512xbf16, #tpu.memory_space<vmem>>, %arg5: memref<1x512xf32, #tpu.memory_space<vmem>>, %arg6: memref<512x2048xbf16, #tpu.memory_space<any>>, %arg7: memref<1x2048xf32, #tpu.memory_space<vmem>>, %arg8: memref<2048x128xbf16, #tpu.memory_space<any>>, %arg9: memref<1x128xf32, #tpu.memory_space<vmem>>, %arg10: memref<16x128xf32, #tpu.memory_space<vmem>>, %arg11: memref<512x2048xbf16, #tpu.memory_space<vmem>>, %arg12: memref<2048x128xbf16, #tpu.memory_space<vmem>>, %arg13: memref<2x!tpu.dma_semaphore, #tpu.memory_space<semaphore_mem>>) attributes {dimension_semantics = [#tpu.dimension_semantics<parallel>], iteration_bounds = array<i64: 1>, scalar_prefetch = 0 : i64, scratch_operands = 3 : i64, tpu.core_type = #tpu.core_type<tc>, window_params = [{transform_indices = @transform_0, window_bounds = array<i64: 16, 32>}, {pipeline_mode = #tpu.pipeline_mode<synchronous>, transform_indices = @transform_1, window_bounds = array<i64: 32, 512>}, {pipeline_mode = #tpu.pipeline_mode<synchronous>, transform_indices = @transform_2, window_bounds = array<i64: 1, 512>}, {pipeline_mode = #tpu.pipeline_mode<synchronous>, transform_indices = @transform_3, window_bounds = array<i64: 512, 512>}, {pipeline_mode = #tpu.pipeline_mode<synchronous>, transform_indices = @transform_4, window_bounds = array<i64: 1, 512>}, {}, {pipeline_mode = #tpu.pipeline_mode<synchronous>, transform_indices = @transform_6, window_bounds = array<i64: 1, 2048>}, {}, {pipeline_mode = #tpu.pipeline_mode<synchronous>, transform_indices = @transform_8, window_bounds = array<i64: 1, 128>}, {transform_indices = @transform_9, window_bounds = array<i64: 16, 128>}]} {
    %c0_i32 = arith.constant 0 : i32
    %0 = tpu.memref_slice %arg13[%c0_i32] : memref<2x!tpu.dma_semaphore, #tpu.memory_space<semaphore_mem>> -> memref<1x!tpu.dma_semaphore, #tpu.memory_space<semaphore_mem>>
    %1 = tpu.memref_squeeze %0 : memref<1x!tpu.dma_semaphore, #tpu.memory_space<semaphore_mem>> -> memref<!tpu.dma_semaphore, #tpu.memory_space<semaphore_mem>>
    tpu.enqueue_dma source(%arg6 : memref<512x2048xbf16, #tpu.memory_space<any>>) target(%arg11 : memref<512x2048xbf16, #tpu.memory_space<vmem>>) target_semaphore(%1 : memref<!tpu.dma_semaphore, #tpu.memory_space<semaphore_mem>>)
    %c1_i32 = arith.constant 1 : i32
    %2 = tpu.memref_slice %arg13[%c1_i32] : memref<2x!tpu.dma_semaphore, #tpu.memory_space<semaphore_mem>> -> memref<1x!tpu.dma_semaphore, #tpu.memory_space<semaphore_mem>>
    %3 = tpu.memref_squeeze %2 : memref<1x!tpu.dma_semaphore, #tpu.memory_space<semaphore_mem>> -> memref<!tpu.dma_semaphore, #tpu.memory_space<semaphore_mem>>
    tpu.enqueue_dma source(%arg8 : memref<2048x128xbf16, #tpu.memory_space<any>>) target(%arg12 : memref<2048x128xbf16, #tpu.memory_space<vmem>>) target_semaphore(%3 : memref<!tpu.dma_semaphore, #tpu.memory_space<semaphore_mem>>)
    %c0 = arith.constant 0 : index
    %c0_0 = arith.constant 0 : index
    %4 = vector.load %arg1[%c0, %c0_0] : memref<16x32xbf16, #tpu.memory_space<vmem>>, vector<16x32xbf16>
    %c0_1 = arith.constant 0 : index
    %c0_2 = arith.constant 0 : index
    %5 = vector.load %arg2[%c0_1, %c0_2] : memref<32x512xbf16, #tpu.memory_space<vmem>>, vector<32x512xbf16>
    %cst = arith.constant dense<0.000000e+00> : vector<16x512xf32>
    %6 = tpu.matmul %4, %5, %cst {dimension_numbers = #tpu.dot_dimension_numbers<[1], [0], [0], [1], [0, 0, 1, 1], [], []>} : vector<16x32xbf16>, vector<32x512xbf16>, vector<16x512xf32> -> vector<16x512xf32>
    %c0_3 = arith.constant 0 : index
    %c0_4 = arith.constant 0 : index
    %7 = vector.load %arg3[%c0_3, %c0_4] : memref<1x512xf32, #tpu.memory_space<vmem>>, vector<1x512xf32>
    %8 = vector.broadcast %7 : vector<1x512xf32> to vector<16x512xf32>
    %9 = arith.addf %6, %8 : vector<16x512xf32>
    %10 = arith.truncf %9 : vector<16x512xf32> to vector<16x512xbf16>
    %cst_5 = arith.constant 0.000000e+00 : bf16
    %11 = vector.broadcast %cst_5 : bf16 to vector<16x512xbf16>
    %12 = arith.maximumf %10, %11 : vector<16x512xbf16>
    %c0_6 = arith.constant 0 : index
    %c0_7 = arith.constant 0 : index
    %13 = vector.load %arg4[%c0_6, %c0_7] : memref<512x512xbf16, #tpu.memory_space<vmem>>, vector<512x512xbf16>
    %cst_8 = arith.constant dense<0.000000e+00> : vector<16x512xf32>
    %14 = tpu.matmul %12, %13, %cst_8 {dimension_numbers = #tpu.dot_dimension_numbers<[1], [0], [0], [1], [0, 0, 1, 1], [], []>} : vector<16x512xbf16>, vector<512x512xbf16>, vector<16x512xf32> -> vector<16x512xf32>
    %c0_9 = arith.constant 0 : index
    %c0_10 = arith.constant 0 : index
    %15 = vector.load %arg5[%c0_9, %c0_10] : memref<1x512xf32, #tpu.memory_space<vmem>>, vector<1x512xf32>
    %16 = vector.broadcast %15 : vector<1x512xf32> to vector<16x512xf32>
    %17 = arith.addf %14, %16 : vector<16x512xf32>
    %18 = arith.truncf %17 : vector<16x512xf32> to vector<16x512xbf16>
    %cst_11 = arith.constant 0.000000e+00 : bf16
    %19 = vector.broadcast %cst_11 : bf16 to vector<16x512xbf16>
    %20 = arith.maximumf %18, %19 : vector<16x512xbf16>
    %c0_i32_12 = arith.constant 0 : i32
    %21 = tpu.memref_slice %arg13[%c0_i32_12] : memref<2x!tpu.dma_semaphore, #tpu.memory_space<semaphore_mem>> -> memref<1x!tpu.dma_semaphore, #tpu.memory_space<semaphore_mem>>
    %22 = tpu.memref_squeeze %21 : memref<1x!tpu.dma_semaphore, #tpu.memory_space<semaphore_mem>> -> memref<!tpu.dma_semaphore, #tpu.memory_space<semaphore_mem>>
    tpu.wait_dma2 semaphore(%22 : memref<!tpu.dma_semaphore, #tpu.memory_space<semaphore_mem>>) src(%arg6 : memref<512x2048xbf16, #tpu.memory_space<any>>) dst(%arg11 : memref<512x2048xbf16, #tpu.memory_space<vmem>>)
    %c0_13 = arith.constant 0 : index
    %c0_14 = arith.constant 0 : index
    %23 = vector.load %arg11[%c0_13, %c0_14] : memref<512x2048xbf16, #tpu.memory_space<vmem>>, vector<512x2048xbf16>
    %cst_15 = arith.constant dense<0.000000e+00> : vector<16x2048xf32>
    %24 = tpu.matmul %20, %23, %cst_15 {dimension_numbers = #tpu.dot_dimension_numbers<[1], [0], [0], [1], [0, 0, 1, 1], [], []>} : vector<16x512xbf16>, vector<512x2048xbf16>, vector<16x2048xf32> -> vector<16x2048xf32>
    %c0_16 = arith.constant 0 : index
    %c0_17 = arith.constant 0 : index
    %25 = vector.load %arg7[%c0_16, %c0_17] : memref<1x2048xf32, #tpu.memory_space<vmem>>, vector<1x2048xf32>
    %26 = vector.broadcast %25 : vector<1x2048xf32> to vector<16x2048xf32>
    %27 = arith.addf %24, %26 : vector<16x2048xf32>
    %28 = arith.truncf %27 : vector<16x2048xf32> to vector<16x2048xbf16>
    %cst_18 = arith.constant 0.000000e+00 : bf16
    %29 = vector.broadcast %cst_18 : bf16 to vector<16x2048xbf16>
    %30 = arith.maximumf %28, %29 : vector<16x2048xbf16>
    %c1_i32_19 = arith.constant 1 : i32
    %31 = tpu.memref_slice %arg13[%c1_i32_19] : memref<2x!tpu.dma_semaphore, #tpu.memory_space<semaphore_mem>> -> memref<1x!tpu.dma_semaphore, #tpu.memory_space<semaphore_mem>>
    %32 = tpu.memref_squeeze %31 : memref<1x!tpu.dma_semaphore, #tpu.memory_space<semaphore_mem>> -> memref<!tpu.dma_semaphore, #tpu.memory_space<semaphore_mem>>
    tpu.wait_dma2 semaphore(%32 : memref<!tpu.dma_semaphore, #tpu.memory_space<semaphore_mem>>) src(%arg8 : memref<2048x128xbf16, #tpu.memory_space<any>>) dst(%arg12 : memref<2048x128xbf16, #tpu.memory_space<vmem>>)
    %c0_20 = arith.constant 0 : index
    %c0_21 = arith.constant 0 : index
    %33 = vector.load %arg12[%c0_20, %c0_21] : memref<2048x128xbf16, #tpu.memory_space<vmem>>, vector<2048x128xbf16>
    %cst_22 = arith.constant dense<0.000000e+00> : vector<16x128xf32>
    %34 = tpu.matmul %30, %33, %cst_22 {dimension_numbers = #tpu.dot_dimension_numbers<[1], [0], [0], [1], [0, 0, 1, 1], [], []>} : vector<16x2048xbf16>, vector<2048x128xbf16>, vector<16x128xf32> -> vector<16x128xf32>
    %c0_23 = arith.constant 0 : index
    %c0_24 = arith.constant 0 : index
    %35 = vector.load %arg9[%c0_23, %c0_24] : memref<1x128xf32, #tpu.memory_space<vmem>>, vector<1x128xf32>
    %36 = vector.broadcast %35 : vector<1x128xf32> to vector<16x128xf32>
    %37 = arith.addf %34, %36 : vector<16x128xf32>
    %c0_25 = arith.constant 0 : index
    %c0_26 = arith.constant 0 : index
    %38 = vector.load %arg10[%c0_25, %c0_26] : memref<16x128xf32, #tpu.memory_space<vmem>>, vector<16x128xf32>
    tpu.vector_store %arg10[%c0_25, %c0_26], %37 {strides = array<i32>} : memref<16x128xf32, #tpu.memory_space<vmem>>, vector<16x128xf32>,
    return
  }
  func.func @transform_0(%arg0: i32) -> (i32, i32) {
    %c0_i32 = arith.constant 0 : i32
    %c0_i32_0 = arith.constant 0 : i32
    return %arg0, %c0_i32 : i32, i32
  }
  func.func @transform_1(%arg0: i32) -> (i32, i32) {
    %c0_i32 = arith.constant 0 : i32
    %c0_i32_0 = arith.constant 0 : i32
    %c0_i32_1 = arith.constant 0 : i32
    return %c0_i32, %c0_i32_0 : i32, i32
  }
  func.func @transform_2(%arg0: i32) -> (i32, i32) {
    %c0_i32 = arith.constant 0 : i32
    %c0_i32_0 = arith.constant 0 : i32
    %c0_i32_1 = arith.constant 0 : i32
    return %c0_i32, %c0_i32_0 : i32, i32
  }
  func.func @transform_3(%arg0: i32) -> (i32, i32) {
    %c0_i32 = arith.constant 0 : i32
    %c0_i32_0 = arith.constant 0 : i32
    %c0_i32_1 = arith.constant 0 : i32
    return %c0_i32, %c0_i32_0 : i32, i32
  }
  func.func @transform_4(%arg0: i32) -> (i32, i32) {
    %c0_i32 = arith.constant 0 : i32
    %c0_i32_0 = arith.constant 0 : i32
    %c0_i32_1 = arith.constant 0 : i32
    return %c0_i32, %c0_i32_0 : i32, i32
  }
  func.func @transform_6(%arg0: i32) -> (i32, i32) {
    %c0_i32 = arith.constant 0 : i32
    %c0_i32_0 = arith.constant 0 : i32
    %c0_i32_1 = arith.constant 0 : i32
    return %c0_i32, %c0_i32_0 : i32, i32
  }
  func.func @transform_8(%arg0: i32) -> (i32, i32) {
    %c0_i32 = arith.constant 0 : i32
    %c0_i32_0 = arith.constant 0 : i32
    %c0_i32_1 = arith.constant 0 : i32
    return %c0_i32, %c0_i32_0 : i32, i32
  }
  func.func @transform_9(%arg0: i32) -> (i32, i32) {
    %c0_i32 = arith.constant 0 : i32
    %c0_i32_0 = arith.constant 0 : i32
    return %arg0, %c0_i32 : i32, i32
  }
}

</mosaic_0001>

<bundles_post_ra>
// kernel: encoder_forward.1
= control target key start
LH: loop header
LB: loop body
LE: loop exit
PB: predicated region body
PF: predicated region fallthrough
CT: control target
= control target key end

     0   :  { %14 = vsyncpa [#allocation6], 0  ;;  %s4248_s0 = inlined_call_operand.vmem [shape: bf16[16,32], index: 0, kind: input, shape index: {}]   ;;  %s4249_s1 = inlined_call_operand.hbm [shape: bf16[32,512], index: 1, kind: input, shape index: {}]   ;;  %s4250_s2 = inlined_call_operand.hbm [shape: f32[1,512], index: 2, kind: input, shape index: {}]   ;;  %s4251_s3 = inlined_call_operand.hbm [shape: bf16[512,512], index: 3, kind: input, shape index: {}]   ;;  %s4252_s4 = inlined_call_operand.hbm [shape: f32[1,512], index: 4, kind: input, shape index: {}]   ;;  %s4253_s5 = inlined_call_operand.hbm [shape: bf16[512,2048], index: 5, kind: input, shape index: {}]   ;;  %s4254_s6 = inlined_call_operand.hbm [shape: f32[1,2048], index: 6, kind: input, shape index: {}]   ;;  %s4255_s7 = inlined_call_operand.hbm [shape: bf16[2048,128], index: 7, kind: input, shape index: {}]   ;;  %s4256_s8 = inlined_call_operand.hbm [shape: f32[1,128], index: 8, kind: input, shape index: {}]   ;;  %s4257_s9 = inlined_call_operand.vmem [shape: f32[16,128], index: 9, kind: output, shape index: {}]  }
   0x1   :  { %15 = vsyncpa [#allocation8], 0 }
   0x2   :  { %16 = vsyncpa [#allocation11], 0 }
   0x3   :  { %17 = vsyncpa [#allocation14], 0  ;;  %s3895_s30 = smov [#allocation7]   ;;  %s3896_s11 = smov [#allocation10]  }
   0x4   :  { %s38_s10 = sshll.u32 %s3895_s30, 4  ;;  %s60_s12 = sshll.u32 %s3896_s11, 4  ;;  %s39_s10 = int_to_ptr.vmem [resolvable:$true] %s38_s10  ;;  %s61_s12 = int_to_ptr.vmem [resolvable:$true] %s60_s12 }
   0x5   :  { %s3729_s15 = scalar_lea.hbm %s4250_s2, 64 }
   0x6   :  { %p3730_p0 = scmp.ne.s32.totalorder %s4250_s2, %s3729_s15  ;;  %p3733_p1 = scmp.lt.u32.totalorder %s3729_s15, %s4250_s2 }
   0x8   :  { %p3735_p2 = pnand %p3733_p1, %p3730_p0 }
   0xa   :  { %3738 = shalt.err (!%p3735_p2)
}
   0xb   :  { %s3739_s20 = scalar_lea.vmem %s39_s10, 64  ;;  %p3744_p4 = scmp.lt.s32.totalorder %s39_s10, %s39_s10 }
   0xc   :  { %p3740_p3 = scmp.ne.s32.totalorder %s39_s10, %s3739_s20  ;;  %p3745_p5 = scmp.lt.s32.totalorder %s3739_s20, %s3739_s20 }
   0xe   :  { %p3746_p6 = por %p3745_p5, %p3744_p4 }
  0x10   :  { %p3747_p7 = pnand %p3746_p6, %p3740_p3 }
  0x12   :  { %3750 = shalt.err (!%p3747_p7)
}
  0x13   :  { %41 = dma.hbm_to_vmem [thread:$0]  %s4250_s2, 64, %s39_s10, [#allocation8]  }
  0x14   :  { %s3751_s25 = scalar_lea.hbm %s4252_s4, 64 }
  0x15   :  { %p3752_p8 = scmp.ne.s32.totalorder %s4252_s4, %s3751_s25  ;;  %p3755_p9 = scmp.lt.u32.totalorder %s3751_s25, %s4252_s4 }
  0x17   :  { %p3757_p10 = pnand %p3755_p9, %p3752_p8 }
  0x19   :  { %3760 = shalt.err (!%p3757_p10)
}
  0x1a   :  { %s3761_s30 = scalar_lea.vmem %s61_s12, 64  ;;  %p3766_p12 = scmp.lt.s32.totalorder %s61_s12, %s61_s12 }
  0x1b   :  { %p3762_p11 = scmp.ne.s32.totalorder %s61_s12, %s3761_s30  ;;  %p3767_p13 = scmp.lt.s32.totalorder %s3761_s30, %s3761_s30 }
  0x1d   :  { %p3768_p0 = por %p3767_p13, %p3766_p12 }
  0x1f   :  { %p3769_p1 = pnand %p3768_p0, %p3762_p11 }
  0x21   :  { %3772 = shalt.err (!%p3769_p1)
}
  0x22   :  { %63 = dma.hbm_to_vmem [thread:$0]  %s4252_s4, 64, %s61_s12, [#allocation11]  }
  0x23   :  { %s3897_s11 = smov [#allocation5]   ;;  %s3773_s16 = scalar_lea.hbm %s4249_s1, 1024 }
  0x24   :  { %s25_s13 = sshll.u32 %s3897_s11, 4  ;;  %p3774_p2 = scmp.ne.s32.totalorder %s4249_s1, %s3773_s16  ;;  %s26_s13 = int_to_ptr.vmem [resolvable:$true] %s25_s13 }
  0x25   :  { %p3777_p3 = scmp.lt.u32.totalorder %s3773_s16, %s4249_s1 }
  0x27   :  { %p3779_p4 = pnand %p3777_p3, %p3774_p2 }
  0x29   :  { %3782 = shalt.err (!%p3779_p4)
}
  0x2a   :  { %s3783_s21 = scalar_lea.vmem %s26_s13, 1024  ;;  %p3788_p6 = scmp.lt.s32.totalorder %s26_s13, %s26_s13 }
  0x2b   :  { %p3784_p5 = scmp.ne.s32.totalorder %s26_s13, %s3783_s21  ;;  %p3789_p7 = scmp.lt.s32.totalorder %s3783_s21, %s3783_s21 }
  0x2d   :  { %p3790_p8 = por %p3789_p7, %p3788_p6 }
  0x2f   :  { %p3791_p9 = pnand %p3790_p8, %p3784_p5 }
  0x31   :  { %3794 = shalt.err (!%p3791_p9)
}
  0x32   :  { %s3898_s4 = smov 256   ;;  %s3899_s12 = smov 16  }
  0x33   :  { %31 = dma.hbm_to_vmem [thread:$0]  %s4249_s1, 1024, %s26_s13, [#allocation6], %s3898_s4, %s3898_s4, %s3899_s12  }
  0x34   :  { %s3900_s24 = smov [#allocation9]   ;;  %s3901_s26 = smov [#allocation12]  }
  0x35   :  { %s47_s25 = sshll.u32 %s3900_s24, 4  ;;  %s70_s27 = sshll.u32 %s3901_s26, 4  ;;  %s48_s25 = int_to_ptr.vmem [resolvable:$true] %s47_s25  ;;  %s71_s27 = int_to_ptr.vmem [resolvable:$true] %s70_s27 }
  0x36   :  { %s3795_s30 = scalar_lea.hbm %s4251_s3, 16384 }
  0x37   :  { %p3796_p10 = scmp.ne.s32.totalorder %s4251_s3, %s3795_s30  ;;  %p3799_p11 = scmp.lt.u32.totalorder %s3795_s30, %s4251_s3 }
  0x39   :  { %p3801_p12 = pnand %p3799_p11, %p3796_p10 }
  0x3b   :  { %3804 = shalt.err (!%p3801_p12)
}
  0x3c   :  { %s3805_s1 = scalar_lea.vmem %s48_s25, 16384  ;;  %p3810_p0 = scmp.lt.s32.totalorder %s48_s25, %s48_s25 }
  0x3d   :  { %p3806_p13 = scmp.ne.s32.totalorder %s48_s25, %s3805_s1  ;;  %p3811_p1 = scmp.lt.s32.totalorder %s3805_s1, %s3805_s1 }
  0x3f   :  { %p3812_p2 = por %p3811_p1, %p3810_p0 }
  0x41   :  { %p3813_p3 = pnand %p3812_p2, %p3806_p13 }
  0x43   :  { %3816 = shalt.err (!%p3813_p3)
}
  0x44   :  { %53 = dma.hbm_to_vmem [thread:$0]  %s4251_s3, 16384, %s48_s25, [#allocation8], %s3898_s4, %s3898_s4, %s3899_s12  }
  0x45   :  { %s3817_s18 = scalar_lea.hbm %s4254_s6, 256 }
  0x46   :  { %p3818_p4 = scmp.ne.s32.totalorder %s4254_s6, %s3817_s18  ;;  %p3821_p5 = scmp.lt.u32.totalorder %s3817_s18, %s4254_s6 }
  0x48   :  { %p3823_p6 = pnand %p3821_p5, %p3818_p4 }
  0x4a   :  { %3826 = shalt.err (!%p3823_p6)
}
  0x4b   :  { %s3827_s23 = scalar_lea.vmem %s71_s27, 256  ;;  %p3832_p8 = scmp.lt.s32.totalorder %s71_s27, %s71_s27 }
  0x4c   :  { %p3828_p7 = scmp.ne.s32.totalorder %s71_s27, %s3827_s23  ;;  %p3833_p9 = scmp.lt.s32.totalorder %s3827_s23, %s3827_s23 }
  0x4e   :  { %p3834_p10 = por %p3833_p9, %p3832_p8 }
  0x50   :  { %p3835_p11 = pnand %p3834_p10, %p3828_p7 }
  0x52   :  { %3838 = shalt.err (!%p3835_p11)
}
  0x53   :  { %73 = dma.hbm_to_vmem [thread:$0]  %s4254_s6, 256, %s71_s27, [#allocation11]  }
  0x54   :  { %s3902_s24 = smov [#allocation13]   ;;  %s3839_s29 = scalar_lea.hbm %s4256_s8, 16 }
  0x55   :  { %s80_s25 = sshll.u32 %s3902_s24, 4  ;;  %p3840_p12 = scmp.ne.s32.totalorder %s4256_s8, %s3839_s29  ;;  %s81_s25 = int_to_ptr.vmem [resolvable:$true] %s80_s25 }
  0x56   :  { %p3843_p13 = scmp.lt.u32.totalorder %s3839_s29, %s4256_s8 }
  0x58   :  { %p3845_p0 = pnand %p3843_p13, %p3840_p12 }
  0x5a   :  { %3848 = shalt.err (!%p3845_p0)
}
  0x5b   :  { %s3849_s14 = scalar_lea.vmem %s81_s25, 16  ;;  %s3853_s6 = scalar_lea.vmem %s81_s25, 32 }
  0x5c   :  { %p3850_p1 = scmp.ne.s32.totalorder %s81_s25, %s3849_s14  ;;  %p3854_p2 = scmp.lt.s32.totalorder %s81_s25, %s81_s25 }
  0x5d   :  { %p3855_p3 = scmp.lt.s32.totalorder %s3853_s6, %s3849_s14 }
  0x5f   :  { %p3856_p4 = por %p3855_p3, %p3854_p2 }
  0x61   :  { %p3857_p5 = pnand %p3856_p4, %p3850_p1 }
  0x63   :  { %3860 = shalt.err (!%p3857_p5)
}
  0x64   :  { %83 = dma.hbm_to_vmem [thread:$0]  %s4256_s8, 16, %s81_s25, [#allocation14]  }
  0x65   :  { %3883 = dma.done.wait [#allocation6], 1024  }
  0x66   :  { %3884 = vsyncadd [#allocation6], 4294966272 }
  0x67   :  { %3885 = dma.done.wait [#allocation8], 16448  }
  0x68   :  { %3886 = vsyncadd [#allocation8], 4294950848 }
  0x69   :  { %3887 = dma.done.wait [#allocation11], 320  }
  0x6a   :  { %3888 = vsyncadd [#allocation11], 4294966976 }
  0x6b   :  { %3889 = dma.done.wait [#allocation14], 16  }
  0x6c   :  { %3890 = vsyncadd [#allocation14], 4294967280  ;;  %s107_s13 = sld [smem:[#allocation0]]   ;;  %s3903_s15 = smov 2048   ;;  %v3904_v0 = vmov 0   ;;  %vm227_vm0 = vcmask 261120  }
  0x6d   :  { %119 = sst [smem:[#allocation16]] %s3903_s15  ;;  %263 = vmatprep.mubr.bf16.mxu0 %v3904_v0  ;;  %306 = vmatprep.mubr.bf16.mxu1 %v3904_v0  ;;  %s3905_s8 = smov 64  }
  0x6e   :  { %121 = sst [smem:[#allocation16 + $0x1]] %s3903_s15  ;;  %s3906_s16 = smov 128  }
  0x6f   :  { %123 = sst [smem:[#allocation16 + $0x2]] %s3899_s12  ;;  %s3907_s17 = smov 2  }
  0x70   :  { %125 = sst [smem:[#allocation16 + $0x3]] %s3905_s8  ;;  %s3908_s19 = smov 1024  }
  0x71   :  { %127 = sst [smem:[#allocation16 + $0x4]] %s3906_s16  ;;  %s3909_s21 = smov 4  }
  0x72   :  { %129 = sst [smem:[#allocation16 + $0x5]] %s3907_s17  ;;  %s3105_s18 = sshll.u32 %s107_s13, 26 }
  0x73   :  { %131 = sst [smem:[#allocation16 + $0x6]] %s3908_s19  ;;  %s3106_s20 = sadd.s32 134217728, %s3105_s18 }
  0x74   :  { %133 = sst [smem:[#allocation16 + $0x7]] %s3905_s8  ;;  %s3910_s22 = smov [#allocation2]  }
  0x75   :  { %135 = sst [smem:[#allocation16 + $0x8]] %s3909_s21  ;;  %s115_s23 = sshll.u32 %s3910_s22, 4  ;;  %s116_s23 = int_to_ptr.vmem [resolvable:$true] %s115_s23 }
  0x76   :  { %s3911_s3 = smov [#allocation4]   ;;  %s3912_s4 = smov [#allocation15]  }
  0x77   :  { %137 = dma.general %s4253_s5, 65536, %s116_s23, %s3911_s3, %s3912_s4, [#allocation16], %s3106_s20, 0  }
  0x78   :  { %v3524_v1 = vld [vmem:[#allocation5 + $0x4] ss:$16 sps:$4 sm:$0xff]   ;;  %v3526_v2 = vld [vmem:[#allocation5] ss:$16 sps:$4 sm:$0xff]   ;;  %v3531_v6 = vld [vmem:[#allocation5 + $0xc] ss:$16 sps:$4 sm:$0xff]  }
  0x79   :  { %231 = vmatprep.subr.bf16.mxu0 %v3524_v1  ;;  %v3527_v3 = vld [vmem:[#allocation5 + $0x24] ss:$16 sps:$4 sm:$0xff]   ;;  %v3529_v4 = vld [vmem:[#allocation5 + $0x20] ss:$16 sps:$4 sm:$0xff]   ;;  %v3533_v7 = vld [vmem:[#allocation5 + $0x8] ss:$16 sps:$4 sm:$0xff]   ;;  %274 = vmatprep.subr.bf16.mxu1 %v3531_v6 }
  0x7a   :  { %232 = vmatpush1.bf16.msra.mxu0 %v3526_v2  ;;  %v3530_v5 = vld [vmem:[%s4248_s0] sm:$0xff]   ;;  %v3534_v8 = vld [vmem:[#allocation5 + $0x2c] ss:$16 sps:$4 sm:$0xff]   ;;  %v3536_v9 = vld [vmem:[#allocation5 + $0x28] ss:$16 sps:$4 sm:$0xff]   ;;  %275 = vmatpush1.bf16.msra.mxu1 %v3533_v7  ;;  %s3913_s0 = smov [#allocation3]  }
  0x7b   :  { %233 = vmatprep.subr.bf16.mxu0 %v3527_v3  ;;  %v3537_v10 = vld [vmem:[#allocation9] ss:$16 sps:$4 sm:$0xff]   ;;  %v3539_v11 = vld [vmem:[#allocation9 + $0x4] ss:$16 sps:$4 sm:$0xff]   ;;  %276 = vmatprep.subr.bf16.mxu1 %v3534_v8  ;;  %v3542_v12 = vld [vmem:[#allocation9 + $0xc] ss:$16 sps:$4 sm:$0xff]  }
  0x7c   :  { %v3545_v13 = vld [vmem:[#allocation9 + $0x24] ss:$16 sps:$4 sm:$0xff]   ;;  %v3540_v14 = vld [vmem:[#allocation9 + $0x8] ss:$16 sps:$4 sm:$0xff]   ;;  %v3543_v15 = vld [vmem:[#allocation9 + $0x20] ss:$16 sps:$4 sm:$0xff]  }
  0x7d   :  { %v3548_v16 = vld [vmem:[#allocation9 + $0x2c] ss:$16 sps:$4 sm:$0xff]   ;;  %v3551_v17 = vld [vmem:[#allocation9 + $0x44] ss:$16 sps:$4 sm:$0xff]   ;;  %v3546_v18 = vld [vmem:[#allocation9 + $0x28] ss:$16 sps:$4 sm:$0xff]  }
  0x7e   :  { %234 = vmatpush1.bf16.msra.mxu0 %v3529_v4  ;;  %277 = vmatpush1.bf16.msra.mxu1 %v3536_v9  ;;  %v3549_v19 = vld [vmem:[#allocation9 + $0x40] ss:$16 sps:$4 sm:$0xff]   ;;  %v3554_v20 = vld [vmem:[#allocation9 + $0x4c] ss:$16 sps:$4 sm:$0xff]   ;;  %v3557_v21 = vld [vmem:[#allocation9 + $0x64] ss:$16 sps:$4 sm:$0xff]  }
  0x7f   :  { %1115 = vmatprep.subr.bf16.mxu0 %v3539_v11  ;;  %1201 = vmatprep.subr.bf16.mxu1 %v3542_v12  ;;  %v3552_v22 = vld [vmem:[#allocation9 + $0x48] ss:$16 sps:$4 sm:$0xff]   ;;  %v3555_v23 = vld [vmem:[#allocation9 + $0x60] ss:$16 sps:$4 sm:$0xff]   ;;  %v3560_v24 = vld [vmem:[#allocation9 + $0x6c] ss:$16 sps:$4 sm:$0xff]  }
  0x80   :  { %v3563_v25 = vld [vmem:[#allocation9 + $0x84] ss:$16 sps:$4 sm:$0xff]   ;;  %v3558_v26 = vld [vmem:[#allocation9 + $0x68] ss:$16 sps:$4 sm:$0xff]   ;;  %v3561_v27 = vld [vmem:[#allocation9 + $0x80] ss:$16 sps:$4 sm:$0xff]  }
  0x81   :  { %3116 = vmatmul.mubr.msk.bf16.vlgmr.msra.gmra.mrb[0].mxu0 %vm227_vm0, %v3530_v5  ;;  %3117 = vmatmul.mubr.msk.bf16.vlgmr.msra.gmra.mrb[0].mxu1 %vm227_vm0, %v3530_v5  ;;  %v3566_v28 = vld [vmem:[#allocation9 + $0x8c] ss:$16 sps:$4 sm:$0xff]   ;;  %v3569_v29 = vld [vmem:[#allocation9 + $0xa4] ss:$16 sps:$4 sm:$0xff]   ;;  %v3564_v30 = vld [vmem:[#allocation9 + $0x88] ss:$16 sps:$4 sm:$0xff]  }
  0x82   :  { %1116 = vmatpush1.bf16.msra.mxu0 %v3537_v10  ;;  %1202 = vmatpush1.bf16.msra.mxu1 %v3540_v14  ;;  %v3567_v31 = vld [vmem:[#allocation9 + $0xa0] ss:$16 sps:$4 sm:$0xff]   ;;  %v3572_v32 = vld [vmem:[#allocation9 + $0xac] ss:$16 sps:$4 sm:$0xff]   ;;  %v3575_v33 = vld [vmem:[#allocation9 + $0xc4] ss:$16 sps:$4 sm:$0xff]  }
  0x83   :  { %1117 = vmatprep.subr.bf16.mxu0 %v3545_v13  ;;  %1203 = vmatprep.subr.bf16.mxu1 %v3548_v16  ;;  %v3570_v34 = vld [vmem:[#allocation9 + $0xa8] ss:$16 sps:$4 sm:$0xff]   ;;  %v3573_v35 = vld [vmem:[#allocation9 + $0xc0] ss:$16 sps:$4 sm:$0xff]   ;;  %v3578_v36 = vld [vmem:[#allocation9 + $0xcc] ss:$16 sps:$4 sm:$0xff]   ;;  %v162_v13 = vlaneseq }
  0x84   :  { %v3581_v37 = vld [vmem:[#allocation9 + $0xe4] ss:$16 sps:$4 sm:$0xff]   ;;  %v3576_v38 = vld [vmem:[#allocation9 + $0xc8] ss:$16 sps:$4 sm:$0xff]   ;;  %v3579_v39 = vld [vmem:[#allocation9 + $0xe0] ss:$16 sps:$4 sm:$0xff]  }
  0x85   :  { %v3584_v40 = vld [vmem:[#allocation9 + $0xec] ss:$16 sps:$4 sm:$0xff]   ;;  %v3587_v41 = vld [vmem:[#allocation9 + $0x104] ss:$16 sps:$4 sm:$0xff]   ;;  %v3582_v42 = vld [vmem:[#allocation9 + $0xe8] ss:$16 sps:$4 sm:$0xff]  }
  0x86   :  { %1118 = vmatpush1.bf16.msra.mxu0 %v3543_v15  ;;  %1204 = vmatpush1.bf16.msra.mxu1 %v3546_v18  ;;  %v3585_v43 = vld [vmem:[#allocation9 + $0x100] ss:$16 sps:$4 sm:$0xff]   ;;  %v3590_v44 = vld [vmem:[#allocation9 + $0x10c] ss:$16 sps:$4 sm:$0xff]   ;;  %v3593_v45 = vld [vmem:[#allocation9 + $0x124] ss:$16 sps:$4 sm:$0xff]  }
  0x87   :  { %1119 = vmatprep.subr.bf16.mxu0 %v3551_v17  ;;  %1205 = vmatprep.subr.bf16.mxu1 %v3554_v20  ;;  %v3588_v46 = vld [vmem:[#allocation9 + $0x108] ss:$16 sps:$4 sm:$0xff]   ;;  %v3591_v47 = vld [vmem:[#allocation9 + $0x120] ss:$16 sps:$4 sm:$0xff]   ;;  %v3596_v48 = vld [vmem:[#allocation9 + $0x12c] ss:$16 sps:$4 sm:$0xff]  }
  0x88   :  { %v3599_v49 = vld [vmem:[#allocation9 + $0x144] ss:$16 sps:$4 sm:$0xff]   ;;  %v3594_v50 = vld [vmem:[#allocation9 + $0x128] ss:$16 sps:$4 sm:$0xff]   ;;  %v3597_v51 = vld [vmem:[#allocation9 + $0x140] ss:$16 sps:$4 sm:$0xff]  }
  0x89   :  { %v3602_v52 = vld [vmem:[#allocation9 + $0x14c] ss:$16 sps:$4 sm:$0xff]   ;;  %v3605_v53 = vld [vmem:[#allocation9 + $0x164] ss:$16 sps:$4 sm:$0xff]   ;;  %v3600_v54 = vld [vmem:[#allocation9 + $0x148] ss:$16 sps:$4 sm:$0xff]  }
  0x8a   :  { %1120 = vmatpush1.bf16.msra.mxu0 %v3549_v19  ;;  %1206 = vmatpush1.bf16.msra.mxu1 %v3552_v22  ;;  %v3603_v55 = vld [vmem:[#allocation9 + $0x160] ss:$16 sps:$4 sm:$0xff]   ;;  %v3608_v56 = vld [vmem:[#allocation9 + $0x16c] ss:$16 sps:$4 sm:$0xff]   ;;  %v3611_v57 = vld [vmem:[#allocation9 + $0x184] ss:$16 sps:$4 sm:$0xff]  }
  0x8b   :  { %1121 = vmatprep.subr.bf16.mxu0 %v3557_v21  ;;  %1207 = vmatprep.subr.bf16.mxu1 %v3560_v24  ;;  %v3606_v58 = vld [vmem:[#allocation9 + $0x168] ss:$16 sps:$4 sm:$0xff]   ;;  %v3609_v59 = vld [vmem:[#allocation9 + $0x180] ss:$16 sps:$4 sm:$0xff]   ;;  %v3614_v60 = vld [vmem:[#allocation9 + $0x18c] ss:$16 sps:$4 sm:$0xff]  }
  0x8c   :  { %v3617_v61 = vld [vmem:[#allocation9 + $0x1a4] ss:$16 sps:$4 sm:$0xff]   ;;  %v3612_v62 = vld [vmem:[#allocation9 + $0x188] ss:$16 sps:$4 sm:$0xff]   ;;  %v3615_v63 = vld [vmem:[#allocation9 + $0x1a0] ss:$16 sps:$4 sm:$0xff]  }
  0x8d   :  { %v3620_v1 = vld [vmem:[#allocation9 + $0x1ac] ss:$16 sps:$4 sm:$0xff]   ;;  %v3618_v2 = vld [vmem:[#allocation9 + $0x1a8] ss:$16 sps:$4 sm:$0xff]   ;;  %v3623_v3 = vld [vmem:[#allocation9 + $0x1c4] ss:$16 sps:$4 sm:$0xff]  }
  0x8e   :  { %1122 = vmatpush1.bf16.msra.mxu0 %v3555_v23  ;;  %1208 = vmatpush1.bf16.msra.mxu1 %v3558_v26  ;;  %v3626_v4 = vld [vmem:[#allocation9 + $0x1cc] ss:$16 sps:$4 sm:$0xff]   ;;  %v3621_v5 = vld [vmem:[#allocation9 + $0x1c0] ss:$16 sps:$4 sm:$0xff]   ;;  %v3624_v6 = vld [vmem:[#allocation9 + $0x1c8] ss:$16 sps:$4 sm:$0xff]  }
  0x8f   :  { %1123 = vmatprep.subr.bf16.mxu0 %v3563_v25  ;;  %1209 = vmatprep.subr.bf16.mxu1 %v3566_v28  ;;  %v3629_v7 = vld [vmem:[#allocation9 + $0x1e4] ss:$16 sps:$4 sm:$0xff]   ;;  %v3632_v8 = vld [vmem:[#allocation9 + $0x1ec] ss:$16 sps:$4 sm:$0xff]   ;;  %v3627_v9 = vld [vmem:[#allocation9 + $0x1e0] ss:$16 sps:$4 sm:$0xff]  }
  0x90   :  { %v3630_v10 = vld [vmem:[#allocation9 + $0x1e8] ss:$16 sps:$4 sm:$0xff]   ;;  %v3635_v11 = vld [vmem:[#allocation9 + $0x204] ss:$16 sps:$4 sm:$0xff]   ;;  %v3638_v12 = vld [vmem:[#allocation9 + $0x20c] ss:$16 sps:$4 sm:$0xff]  }
  0x91   :  { %v4049_v14 = vshrl.u32 %v162_v13, 7  ;;  %v160_v16 = vld [vmem:[#allocation7] sm:$0xf]  ;;  %v3678_v13 = vld [vmem:[#allocation9 + $0x2e8] ss:$16 sps:$4 sm:$0xff]   ;;  %s146_s5 = sshll.u32 %s3913_s0, 4  ;;  %s147_s5 = int_to_ptr.vmem [resolvable:$true] %s146_s5 }
  0x92   :  { %1124 = vmatpush1.bf16.msra.mxu0 %v3561_v27  ;;  %1210 = vmatpush1.bf16.msra.mxu1 %v3564_v30  ;;  %s3861_s30 = scalar_lea.hbm %s4255_s7, 16384 }
  0x93   :  { %1125 = vmatprep.subr.bf16.mxu0 %v3569_v29  ;;  %1211 = vmatprep.subr.bf16.mxu1 %v3572_v32  ;;  %v4052_v15 = vsub.s32 0, %v4049_v14  ;;  %v4055_v17 = vsub.s32 1, %v4049_v14  ;;  %v4058_v18 = vsub.s32 2, %v4049_v14  ;;  %v4061_v19 = vsub.s32 3, %v4049_v14  ;;  %p3862_p6 = scmp.ne.s32.totalorder %s4255_s7, %s3861_s30  ;;  %p3865_p7 = scmp.lt.u32.totalorder %s3861_s30, %s4255_s7 }
  0x95   :  { %v165_v20 = vrot.slane %v160_v16, %v4052_v15  ;;  %v169_v22 = vrot.slane %v160_v16, %v4055_v17  ;;  %v173_v24 = vrot.slane %v160_v16, %v4058_v18  ;;  %v177_v26 = vrot.slane %v160_v16, %v4061_v19  ;;  %v3683_v16 = vld [vmem:[#allocation9 + $0x304] ss:$16 sps:$4 sm:$0xff]   ;;  %p3867_p8 = pnand %p3865_p7, %p3862_p6 }
  0x96   :  { %1126 = vmatpush1.bf16.msra.mxu0 %v3567_v31  ;;  %1212 = vmatpush1.bf16.msra.mxu1 %v3570_v34 }
  0x97   :  { %1127 = vmatprep.subr.bf16.mxu0 %v3575_v33  ;;  %1213 = vmatprep.subr.bf16.mxu1 %v3578_v36 }
  0x9a   :  { %1128 = vmatpush1.bf16.msra.mxu0 %v3573_v35  ;;  %1214 = vmatpush1.bf16.msra.mxu1 %v3576_v38 }
  0x9b   :  { %1129 = vmatprep.subr.bf16.mxu0 %v3581_v37  ;;  %1215 = vmatprep.subr.bf16.mxu1 %v3584_v40 }
  0x9e   :  { %1130 = vmatpush1.bf16.msra.mxu0 %v3579_v39  ;;  %1216 = vmatpush1.bf16.msra.mxu1 %v3582_v42  ;;  %v3633_v42 = vld [vmem:[#allocation9 + $0x200] ss:$16 sps:$4 sm:$0xff]  }
  0x9f   :  { %1131 = vmatprep.subr.bf16.mxu0 %v3587_v41  ;;  %1217 = vmatprep.subr.bf16.mxu1 %v3590_v44 }
  0xa2   :  { %1132 = vmatpush1.bf16.msra.mxu0 %v3585_v43  ;;  %1218 = vmatpush1.bf16.msra.mxu1 %v3588_v46  ;;  %v3636_v43 = vld [vmem:[#allocation9 + $0x208] ss:$16 sps:$4 sm:$0xff]   ;;  %v3641_v46 = vld [vmem:[#allocation9 + $0x224] ss:$16 sps:$4 sm:$0xff]  }
  0xa3   :  { %1133 = vmatprep.subr.bf16.mxu0 %v3593_v45  ;;  %1219 = vmatprep.subr.bf16.mxu1 %v3596_v48 }
  0xa6   :  { %1134 = vmatpush1.bf16.msra.mxu0 %v3591_v47  ;;  %1220 = vmatpush1.bf16.msra.mxu1 %v3594_v50  ;;  %v3644_v47 = vld [vmem:[#allocation9 + $0x22c] ss:$16 sps:$4 sm:$0xff]   ;;  %v3639_v50 = vld [vmem:[#allocation9 + $0x220] ss:$16 sps:$4 sm:$0xff]  }
  0xa7   :  { %1135 = vmatprep.subr.bf16.mxu0 %v3599_v49  ;;  %1221 = vmatprep.subr.bf16.mxu1 %v3602_v52 }
  0xaa   :  { %1136 = vmatpush1.bf16.msra.mxu0 %v3597_v51  ;;  %1222 = vmatpush1.bf16.msra.mxu1 %v3600_v54  ;;  %v3642_v51 = vld [vmem:[#allocation9 + $0x228] ss:$16 sps:$4 sm:$0xff]   ;;  %v3650_v54 = vld [vmem:[#allocation9 + $0x24c] ss:$16 sps:$4 sm:$0xff]  }
  0xab   :  { %1137 = vmatprep.subr.bf16.mxu0 %v3605_v53  ;;  %1223 = vmatprep.subr.bf16.mxu1 %v3608_v56  ;;  %v3647_v53 = vld [vmem:[#allocation9 + $0x244] ss:$16 sps:$4 sm:$0xff]   ;;  %v3648_v56 = vld [vmem:[#allocation9 + $0x248] ss:$16 sps:$4 sm:$0xff]  }
  0xae   :  { %1138 = vmatpush1.bf16.msra.mxu0 %v3603_v55  ;;  %1224 = vmatpush1.bf16.msra.mxu1 %v3606_v58  ;;  %v3645_v55 = vld [vmem:[#allocation9 + $0x240] ss:$16 sps:$4 sm:$0xff]   ;;  %v3656_v58 = vld [vmem:[#allocation9 + $0x26c] ss:$16 sps:$4 sm:$0xff]  }
  0xaf   :  { %1139 = vmatprep.subr.bf16.mxu0 %v3611_v57  ;;  %1225 = vmatprep.subr.bf16.mxu1 %v3614_v60  ;;  %v3653_v57 = vld [vmem:[#allocation9 + $0x264] ss:$16 sps:$4 sm:$0xff]   ;;  %v3654_v60 = vld [vmem:[#allocation9 + $0x268] ss:$16 sps:$4 sm:$0xff]  }
  0xb2   :  { %1140 = vmatpush1.bf16.msra.mxu0 %v3609_v59  ;;  %1226 = vmatpush1.bf16.msra.mxu1 %v3612_v62  ;;  %v3651_v59 = vld [vmem:[#allocation9 + $0x260] ss:$16 sps:$4 sm:$0xff]   ;;  %v3662_v62 = vld [vmem:[#allocation9 + $0x28c] ss:$16 sps:$4 sm:$0xff]  }
  0xb3   :  { %1141 = vmatprep.subr.bf16.mxu0 %v3617_v61  ;;  %1227 = vmatprep.subr.bf16.mxu1 %v3620_v1  ;;  %v3659_v61 = vld [vmem:[#allocation9 + $0x284] ss:$16 sps:$4 sm:$0xff]   ;;  %v3660_v1 = vld [vmem:[#allocation9 + $0x288] ss:$16 sps:$4 sm:$0xff]  }
  0xb6   :  { %1142 = vmatpush1.bf16.msra.mxu0 %v3615_v63  ;;  %1228 = vmatpush1.bf16.msra.mxu1 %v3618_v2  ;;  %v3657_v63 = vld [vmem:[#allocation9 + $0x280] ss:$16 sps:$4 sm:$0xff]   ;;  %v3665_v2 = vld [vmem:[#allocation9 + $0x2a4] ss:$16 sps:$4 sm:$0xff]  }
  0xb7   :  { %1143 = vmatprep.subr.bf16.mxu0 %v3623_v3  ;;  %1229 = vmatprep.subr.bf16.mxu1 %v3626_v4  ;;  %v3668_v3 = vld [vmem:[#allocation9 + $0x2ac] ss:$16 sps:$4 sm:$0xff]   ;;  %v3663_v4 = vld [vmem:[#allocation9 + $0x2a0] ss:$16 sps:$4 sm:$0xff]  }
  0xba   :  { %1144 = vmatpush1.bf16.msra.mxu0 %v3621_v5  ;;  %1230 = vmatpush1.bf16.msra.mxu1 %v3624_v6  ;;  %v3666_v5 = vld [vmem:[#allocation9 + $0x2a8] ss:$16 sps:$4 sm:$0xff]   ;;  %v3671_v6 = vld [vmem:[#allocation9 + $0x2c4] ss:$16 sps:$4 sm:$0xff]  }
  0xbb   :  { %1145 = vmatprep.subr.bf16.mxu0 %v3629_v7  ;;  %1231 = vmatprep.subr.bf16.mxu1 %v3632_v8  ;;  %v3674_v7 = vld [vmem:[#allocation9 + $0x2cc] ss:$16 sps:$4 sm:$0xff]   ;;  %v3669_v8 = vld [vmem:[#allocation9 + $0x2c0] ss:$16 sps:$4 sm:$0xff]  }
  0xbe   :  { %1146 = vmatpush1.bf16.msra.mxu0 %v3627_v9  ;;  %1232 = vmatpush1.bf16.msra.mxu1 %v3630_v10  ;;  %v3672_v9 = vld [vmem:[#allocation9 + $0x2c8] ss:$16 sps:$4 sm:$0xff]   ;;  %v3677_v10 = vld [vmem:[#allocation9 + $0x2e4] ss:$16 sps:$4 sm:$0xff]  }
  0xbf   :  { %1158 = vmatprep.subr.bf16.mxu0 %v3635_v11  ;;  %1244 = vmatprep.subr.bf16.mxu1 %v3638_v12  ;;  %v3680_v11 = vld [vmem:[#allocation9 + $0x2ec] ss:$16 sps:$4 sm:$0xff]   ;;  %v3675_v12 = vld [vmem:[#allocation9 + $0x2e0] ss:$16 sps:$4 sm:$0xff]  }
 0x154   :  { %v265_v21 = vpop.f32.mrb[0].mxu0  ;;  %v308_v32 = vpop.f32.mrb[0].mxu1 }
 0x155   :  { %v267_v23 = vpop.f32.mrb[1].mxu0  ;;  %v266_v27 = vadd.f32 %v265_v21, %v165_v20  ;;  %v4067_v34 = vadd.f32 %v308_v32, %v173_v24  ;;  %v310_v35 = vpop.f32.mrb[1].mxu1  ;;  %v3681_v21 = vld [vmem:[#allocation9 + $0x300] ss:$16 sps:$4 sm:$0xff]   ;;  %v3704_v32 = vld [vmem:[#allocation9 + $0x36c] ss:$16 sps:$4 sm:$0xff]  }
 0x156   :  { %v269_v25 = vpop.f32.mrb[2].mxu0  ;;  %v268_v30 = vadd.f32 %v267_v23, %v169_v22  ;;  %v311_v37 = vadd.f32 %v310_v35, %v177_v26  ;;  %v312_v38 = vpop.f32.mrb[2].mxu1  ;;  %v3689_v23 = vld [vmem:[#allocation9 + $0x324] ss:$16 sps:$4 sm:$0xff]   ;;  %v3702_v35 = vld [vmem:[#allocation9 + $0x368] ss:$16 sps:$4 sm:$0xff]  }
 0x157   :  { %v270_v28 = vadd.f32 %v269_v25, %v165_v20  ;;  %v271_v29 = vpop.f32.mrb[3].mxu0  ;;  %v4069_v39 = vadd.f32 %v312_v38, %v173_v24  ;;  %v314_v40 = vpop.f32.mrb[3].mxu1  ;;  %v3686_v20 = vld [vmem:[#allocation9 + $0x30c] ss:$16 sps:$4 sm:$0xff]   ;;  %v3687_v25 = vld [vmem:[#allocation9 + $0x320] ss:$16 sps:$4 sm:$0xff]  }
 0x158   :  { %v272_v31 = vadd.f32 %v271_v29, %v169_v22  ;;  %v315_v44 = vadd.f32 %v314_v40, %v177_v26  ;;  %v3684_v22 = vld [vmem:[#allocation9 + $0x308] ss:$16 sps:$4 sm:$0xff]   ;;  %v3692_v24 = vld [vmem:[#allocation9 + $0x32c] ss:$16 sps:$4 sm:$0xff]   ;;  %v3693_v29 = vld [vmem:[#allocation9 + $0x340] ss:$16 sps:$4 sm:$0xff]  }
 0x159   :  { %v317_v33 = vpack.c.bf16 %v270_v28, %v266_v27  ;;  %v319_v48 = vpack.c.bf16 %v4069_v39, %v4067_v34  ;;  %v3690_v26 = vld [vmem:[#allocation9 + $0x328] ss:$16 sps:$4 sm:$0xff]   ;;  %v3695_v27 = vld [vmem:[#allocation9 + $0x344] ss:$16 sps:$4 sm:$0xff]   ;;  %v3698_v28 = vld [vmem:[#allocation9 + $0x34c] ss:$16 sps:$4 sm:$0xff]  }
 0x15a   :  { %v318_v36 = vpack.c.bf16 %v272_v31, %v268_v30  ;;  %v320_v49 = vpack.c.bf16 %v315_v44, %v311_v37  ;;  %v3696_v30 = vld [vmem:[#allocation9 + $0x348] ss:$16 sps:$4 sm:$0xff]   ;;  %v3701_v31 = vld [vmem:[#allocation9 + $0x364] ss:$16 sps:$4 sm:$0xff]   ;;  %v3710_v37 = vld [vmem:[#allocation9 + $0x38c] ss:$16 sps:$4 sm:$0xff]  }
 0x15b   :  { %v321_v45 = vmax.bf16 %v3904_v0, %v317_v33  ;;  %v3699_v33 = vld [vmem:[#allocation9 + $0x360] ss:$16 sps:$4 sm:$0xff]   ;;  %v3708_v40 = vld [vmem:[#allocation9 + $0x388] ss:$16 sps:$4 sm:$0xff]  }
 0x15c   :  { %v322_v41 = vmax.bf16 %v3904_v0, %v318_v36  ;;  %v324_v52 = vmax.bf16 %v3904_v0, %v320_v49  ;;  %v3707_v36 = vld [vmem:[#allocation9 + $0x384] ss:$16 sps:$4 sm:$0xff]   ;;  %v3705_v38 = vld [vmem:[#allocation9 + $0x380] ss:$16 sps:$4 sm:$0xff]   ;;  %v3714_v44 = vld [vmem:[#allocation9 + $0x3a8] ss:$16 sps:$4 sm:$0xff]  }
 0x15d   :  { %v3720_v49 = vld [vmem:[#allocation9 + $0x3c8] ss:$16 sps:$4 sm:$0xff]  }
 0x15e   :  { %1147 = vmatprep.mubr.bf16.mxu0 %v322_v41  ;;  %1233 = vmatprep.mubr.bf16.mxu1 %v322_v41  ;;  %v3713_v41 = vld [vmem:[#allocation9 + $0x3a4] ss:$16 sps:$4 sm:$0xff]  }
 0x15f   :  { %1148 = vmatmul.mubr.bf16.vlgmr.msra.gmra.mrb[4].mxu0 %v321_v45  ;;  %1234 = vmatmul.mubr.bf16.vlgmr.msra.gmra.mrb[4].mxu1 %v321_v45  ;;  %v3719_v45 = vld [vmem:[#allocation9 + $0x3c4] ss:$16 sps:$4 sm:$0xff]  }
 0x160   :  { %1159 = vmatpush1.bf16.msra.mxu0 %v3633_v42  ;;  %1245 = vmatpush1.bf16.msra.mxu1 %v3636_v43  ;;  %v3716_v42 = vld [vmem:[#allocation9 + $0x3ac] ss:$16 sps:$4 sm:$0xff]   ;;  %v3711_v43 = vld [vmem:[#allocation9 + $0x3a0] ss:$16 sps:$4 sm:$0xff]  }
 0x161   :  { %1160 = vmatprep.subr.bf16.mxu0 %v3641_v46  ;;  %1246 = vmatprep.subr.bf16.mxu1 %v3644_v47  ;;  %v3722_v46 = vld [vmem:[#allocation9 + $0x3cc] ss:$16 sps:$4 sm:$0xff]   ;;  %v3717_v47 = vld [vmem:[#allocation9 + $0x3c0] ss:$16 sps:$4 sm:$0xff]  }
 0x162   :  { %1190 = vmatprep.mubr.bf16.mxu0 %v324_v52  ;;  %1276 = vmatprep.mubr.bf16.mxu1 %v324_v52  ;;  %v3723_v52 = vld [vmem:[#allocation9 + $0x3e0] ss:$16 sps:$4 sm:$0xff]  }
 0x164   :  { %1161 = vmatpush1.bf16.msra.mxu0 %v3639_v50  ;;  %1247 = vmatpush1.bf16.msra.mxu1 %v3642_v51  ;;  %v3725_v50 = vld [vmem:[#allocation9 + $0x3e4] ss:$16 sps:$4 sm:$0xff]   ;;  %v3728_v51 = vld [vmem:[#allocation9 + $0x3ec] ss:$16 sps:$4 sm:$0xff]  }
 0x165   :  { %1162 = vmatprep.subr.bf16.mxu0 %v3647_v53  ;;  %1248 = vmatprep.subr.bf16.mxu1 %v3650_v54  ;;  %v3726_v53 = vld [vmem:[#allocation9 + $0x3e8] ss:$16 sps:$4 sm:$0xff]   ;;  %v323_v54 = vmax.bf16 %v3904_v0, %v319_v48 }
 0x168   :  { %1163 = vmatpush1.bf16.msra.mxu0 %v3645_v55  ;;  %1249 = vmatpush1.bf16.msra.mxu1 %v3648_v56 }
 0x169   :  { %1164 = vmatprep.subr.bf16.mxu0 %v3653_v57  ;;  %1250 = vmatprep.subr.bf16.mxu1 %v3656_v58 }
 0x16c   :  { %1165 = vmatpush1.bf16.msra.mxu0 %v3651_v59  ;;  %1251 = vmatpush1.bf16.msra.mxu1 %v3654_v60 }
 0x16d   :  { %1166 = vmatprep.subr.bf16.mxu0 %v3659_v61  ;;  %1252 = vmatprep.subr.bf16.mxu1 %v3662_v62 }
 0x170   :  { %1167 = vmatpush1.bf16.msra.mxu0 %v3657_v63  ;;  %1253 = vmatpush1.bf16.msra.mxu1 %v3660_v1 }
 0x171   :  { %1168 = vmatprep.subr.bf16.mxu0 %v3665_v2  ;;  %1254 = vmatprep.subr.bf16.mxu1 %v3668_v3 }
 0x174   :  { %1169 = vmatpush1.bf16.msra.mxu0 %v3663_v4  ;;  %1255 = vmatpush1.bf16.msra.mxu1 %v3666_v5 }
 0x175   :  { %1170 = vmatprep.subr.bf16.mxu0 %v3671_v6  ;;  %1256 = vmatprep.subr.bf16.mxu1 %v3674_v7 }
 0x178   :  { %1171 = vmatpush1.bf16.msra.mxu0 %v3669_v8  ;;  %1257 = vmatpush1.bf16.msra.mxu1 %v3672_v9 }
 0x179   :  { %1172 = vmatprep.subr.bf16.mxu0 %v3677_v10  ;;  %1258 = vmatprep.subr.bf16.mxu1 %v3680_v11 }
 0x17c   :  { %1173 = vmatpush1.bf16.msra.mxu0 %v3675_v12  ;;  %1259 = vmatpush1.bf16.msra.mxu1 %v3678_v13 }
 0x17d   :  { %1174 = vmatprep.subr.bf16.mxu0 %v3683_v16  ;;  %1260 = vmatprep.subr.bf16.mxu1 %v3686_v20 }
 0x180   :  { %1175 = vmatpush1.bf16.msra.mxu0 %v3681_v21  ;;  %1261 = vmatpush1.bf16.msra.mxu1 %v3684_v22 }
 0x181   :  { %1176 = vmatprep.subr.bf16.mxu0 %v3689_v23  ;;  %1262 = vmatprep.subr.bf16.mxu1 %v3692_v24 }
 0x184   :  { %1177 = vmatpush1.bf16.msra.mxu0 %v3687_v25  ;;  %1263 = vmatpush1.bf16.msra.mxu1 %v3690_v26 }
 0x185   :  { %1178 = vmatprep.subr.bf16.mxu0 %v3695_v27  ;;  %1264 = vmatprep.subr.bf16.mxu1 %v3698_v28 }
 0x188   :  { %1179 = vmatpush1.bf16.msra.mxu0 %v3693_v29  ;;  %1265 = vmatpush1.bf16.msra.mxu1 %v3696_v30 }
 0x189   :  { %1180 = vmatprep.subr.bf16.mxu0 %v3701_v31  ;;  %1266 = vmatprep.subr.bf16.mxu1 %v3704_v32 }
 0x18c   :  { %1181 = vmatpush1.bf16.msra.mxu0 %v3699_v33  ;;  %1267 = vmatpush1.bf16.msra.mxu1 %v3702_v35 }
 0x18d   :  { %1182 = vmatprep.subr.bf16.mxu0 %v3707_v36  ;;  %1268 = vmatprep.subr.bf16.mxu1 %v3710_v37 }
 0x190   :  { %1183 = vmatpush1.bf16.msra.mxu0 %v3705_v38  ;;  %1269 = vmatpush1.bf16.msra.mxu1 %v3708_v40 }
 0x191   :  { %1184 = vmatprep.subr.bf16.mxu0 %v3713_v41  ;;  %1270 = vmatprep.subr.bf16.mxu1 %v3716_v42 }
 0x194   :  { %1185 = vmatpush1.bf16.msra.mxu0 %v3711_v43  ;;  %1271 = vmatpush1.bf16.msra.mxu1 %v3714_v44 }
 0x195   :  { %1186 = vmatprep.subr.bf16.mxu0 %v3719_v45  ;;  %1272 = vmatprep.subr.bf16.mxu1 %v3722_v46 }
 0x198   :  { %1187 = vmatpush1.bf16.msra.mxu0 %v3717_v47  ;;  %1273 = vmatpush1.bf16.msra.mxu1 %v3720_v49 }
 0x199   :  { %1188 = vmatprep.subr.bf16.mxu0 %v3725_v50  ;;  %1274 = vmatprep.subr.bf16.mxu1 %v3728_v51 }
 0x19c   :  { %1189 = vmatpush1.bf16.msra.mxu0 %v3723_v52  ;;  %1275 = vmatpush1.bf16.msra.mxu1 %v3726_v53 }
 0x19f   :  { %1191 = vmatmul.mubr.bf16.vlgmr.msra.gmra.mrb[4].mxu0 %v323_v54  ;;  %1277 = vmatmul.mubr.bf16.vlgmr.msra.gmra.mrb[4].mxu1 %v323_v54 }
 0x1a0   :  { %3870 = shalt.err (!%p3867_p8)  }
 0x1a1   :  { %s3871_s6 = scalar_lea.vmem %s147_s5, 16384  ;;  %p3876_p10 = scmp.lt.s32.totalorder %s147_s5, %s147_s5 }
 0x1a2   :  { %p3872_p9 = scmp.ne.s32.totalorder %s147_s5, %s3871_s6  ;;  %p3877_p11 = scmp.lt.s32.totalorder %s3871_s6, %s3871_s6 }
 0x1a4   :  { %p3878_p12 = por %p3877_p11, %p3876_p10 }
 0x1a6   :  { %p3879_p13 = pnand %p3878_p12, %p3872_p9 }
 0x1a8   :  { %3882 = shalt.err (!%p3879_p13)  }
 0x1a9   :  { %149 = dma.hbm_to_vmem [thread:$0]  %s4255_s7, 16384, %s147_s5, [#allocation4 + $0x1]  ;;  %v453_v34 = vld [vmem:[#allocation10] sm:$0xf] }
 0x1aa   :  { %v458_v39 = vrot.slane %v453_v34, %v4052_v15  ;;  %v466_v48 = vrot.slane %v453_v34, %v4058_v18  ;;  %v462_v57 = vrot.slane %v453_v34, %v4055_v17  ;;  %v470_v58 = vrot.slane %v453_v34, %v4061_v19 }
 0x272   :  { %v1192_v55 = vpop.f32.mrb[4].mxu0  ;;  %v1278_v56 = vpop.f32.mrb[4].mxu1 }
 0x273   :  { %v1194_v59 = vpop.f32.mrb[5].mxu0  ;;  %v1280_v60 = vpop.f32.mrb[5].mxu1  ;;  %v3425_v63 = vadd.f32 %v1192_v55, %v458_v39  ;;  %v3429_v1 = vadd.f32 %v1278_v56, %v466_v48 }
 0x274   :  { %v1196_v61 = vpop.f32.mrb[6].mxu0  ;;  %v1282_v62 = vpop.f32.mrb[6].mxu1  ;;  %v3426_v6 = vadd.f32 %v1194_v59, %v462_v57  ;;  %v3430_v7 = vadd.f32 %v1280_v60, %v470_v58 }
 0x275   :  { %v3427_v2 = vadd.f32 %v1196_v61, %v458_v39  ;;  %v3431_v3 = vadd.f32 %v1282_v62, %v466_v48  ;;  %v1198_v4 = vpop.f32.mrb[7].mxu0  ;;  %v1284_v5 = vpop.f32.mrb[7].mxu1 }
 0x276   :  { %v3428_v8 = vadd.f32 %v1198_v4, %v462_v57  ;;  %v3432_v9 = vadd.f32 %v1284_v5, %v470_v58 }
 0x277   :  { %v1287_v10 = vpack.c.bf16 %v3427_v2, %v3425_v63  ;;  %v1289_v11 = vpack.c.bf16 %v3431_v3, %v3429_v1 }
 0x278   :  { %v1288_v12 = vpack.c.bf16 %v3428_v8, %v3426_v6  ;;  %v1290_v13 = vpack.c.bf16 %v3432_v9, %v3430_v7 }
 0x279   :  { %v4097_v16 = vmax.bf16 %v3904_v0, %v1287_v10  ;;  %v4100_v20 = vmax.bf16 %v3904_v0, %v1289_v11 }
 0x27a   :  { %v4103_v21 = vmax.bf16 %v3904_v0, %v1288_v12  ;;  %v4106_v22 = vmax.bf16 %v3904_v0, %v1290_v13 }
 0x27b   :  { %3891 = dma.done.wait [#allocation4], 65536 }
 0x27c   :  { %3892 = vsyncadd [#allocation4], 4294901760  ;;  %1927 = vmatprep.mubr.bf16.mxu0 %v4103_v21  ;;  %2013 = vmatprep.mubr.bf16.mxu1 %v4103_v21  ;;  %v1300_v23 = vld [vmem:[#allocation2 + $0x8] sm:$0xff]  ;;  %v1302_v24 = vld [vmem:[#allocation2 + $0x18] sm:$0xff] }
 0x27d   :  { %v1299_v25 = vld [vmem:[#allocation2] sm:$0xff]  ;;  %1895 = vmatprep.subr.bf16.mxu0 %v1300_v23  ;;  %1981 = vmatprep.subr.bf16.mxu1 %v1302_v24  ;;  %v1301_v26 = vld [vmem:[#allocation2 + $0x10] sm:$0xff]  ;;  %v1316_v27 = vld [vmem:[#allocation2 + $0x88] sm:$0xff] }
 0x27e   :  { %v1318_v28 = vld [vmem:[#allocation2 + $0x98] sm:$0xff]  ;;  %1896 = vmatpush1.bf16.msra.mxu0 %v1299_v25  ;;  %1982 = vmatpush1.bf16.msra.mxu1 %v1301_v26  ;;  %v1315_v29 = vld [vmem:[#allocation2 + $0x80] sm:$0xff]  ;;  %v1317_v30 = vld [vmem:[#allocation2 + $0x90] sm:$0xff] }
 0x27f   :  { %1897 = vmatprep.subr.bf16.mxu0 %v1316_v27  ;;  %1983 = vmatprep.subr.bf16.mxu1 %v1318_v28  ;;  %v1332_v31 = vld [vmem:[#allocation2 + $0x108] sm:$0xff]  ;;  %v1334_v32 = vld [vmem:[#allocation2 + $0x118] sm:$0xff]  ;;  %v1331_v33 = vld [vmem:[#allocation2 + $0x100] sm:$0xff] }
 0x280   :  { %v1333_v35 = vld [vmem:[#allocation2 + $0x110] sm:$0xff]  ;;  %v1348_v36 = vld [vmem:[#allocation2 + $0x188] sm:$0xff]  ;;  %v1350_v37 = vld [vmem:[#allocation2 + $0x198] sm:$0xff] }
 0x281   :  { %v1347_v38 = vld [vmem:[#allocation2 + $0x180] sm:$0xff]  ;;  %v1349_v40 = vld [vmem:[#allocation2 + $0x190] sm:$0xff]  ;;  %v1364_v41 = vld [vmem:[#allocation2 + $0x208] sm:$0xff] }
 0x282   :  { %1898 = vmatpush1.bf16.msra.mxu0 %v1315_v29  ;;  %1984 = vmatpush1.bf16.msra.mxu1 %v1317_v30  ;;  %v1366_v42 = vld [vmem:[#allocation2 + $0x218] sm:$0xff]  ;;  %v1363_v43 = vld [vmem:[#allocation2 + $0x200] sm:$0xff]  ;;  %v1365_v44 = vld [vmem:[#allocation2 + $0x210] sm:$0xff] }
 0x283   :  { %1899 = vmatprep.subr.bf16.mxu0 %v1332_v31  ;;  %1985 = vmatprep.subr.bf16.mxu1 %v1334_v32  ;;  %v1380_v45 = vld [vmem:[#allocation2 + $0x288] sm:$0xff]  ;;  %v1382_v46 = vld [vmem:[#allocation2 + $0x298] sm:$0xff]  ;;  %v1379_v47 = vld [vmem:[#allocation2 + $0x280] sm:$0xff] }
 0x284   :  { %v1381_v49 = vld [vmem:[#allocation2 + $0x290] sm:$0xff]  ;;  %v1396_v50 = vld [vmem:[#allocation2 + $0x308] sm:$0xff]  ;;  %v1398_v51 = vld [vmem:[#allocation2 + $0x318] sm:$0xff] }
 0x285   :  { %v1395_v52 = vld [vmem:[#allocation2 + $0x300] sm:$0xff]  ;;  %v1397_v53 = vld [vmem:[#allocation2 + $0x310] sm:$0xff]  ;;  %v1412_v54 = vld [vmem:[#allocation2 + $0x388] sm:$0xff] }
 0x286   :  { %1900 = vmatpush1.bf16.msra.mxu0 %v1331_v33  ;;  %1986 = vmatpush1.bf16.msra.mxu1 %v1333_v35  ;;  %v1414_v34 = vld [vmem:[#allocation2 + $0x398] sm:$0xff]  ;;  %v1411_v39 = vld [vmem:[#allocation2 + $0x380] sm:$0xff]  ;;  %v1413_v48 = vld [vmem:[#allocation2 + $0x390] sm:$0xff] }
 0x287   :  { %1901 = vmatprep.subr.bf16.mxu0 %v1348_v36  ;;  %1987 = vmatprep.subr.bf16.mxu1 %v1350_v37  ;;  %v1428_v55 = vld [vmem:[#allocation2 + $0x408] sm:$0xff]  ;;  %v1430_v56 = vld [vmem:[#allocation2 + $0x418] sm:$0xff]  ;;  %v1427_v57 = vld [vmem:[#allocation2 + $0x400] sm:$0xff] }
 0x288   :  { %v1429_v58 = vld [vmem:[#allocation2 + $0x410] sm:$0xff]  ;;  %v1444_v59 = vld [vmem:[#allocation2 + $0x488] sm:$0xff]  ;;  %v1446_v60 = vld [vmem:[#allocation2 + $0x498] sm:$0xff] }
 0x289   :  { %v1443_v61 = vld [vmem:[#allocation2 + $0x480] sm:$0xff]  ;;  %v1445_v62 = vld [vmem:[#allocation2 + $0x490] sm:$0xff]  ;;  %v1460_v63 = vld [vmem:[#allocation2 + $0x508] sm:$0xff] }
 0x28a   :  { %1902 = vmatpush1.bf16.msra.mxu0 %v1347_v38  ;;  %1988 = vmatpush1.bf16.msra.mxu1 %v1349_v40  ;;  %v1462_v1 = vld [vmem:[#allocation2 + $0x518] sm:$0xff]  ;;  %v1459_v2 = vld [vmem:[#allocation2 + $0x500] sm:$0xff]  ;;  %v1461_v3 = vld [vmem:[#allocation2 + $0x510] sm:$0xff] }
 0x28b   :  { %1903 = vmatprep.subr.bf16.mxu0 %v1364_v41  ;;  %1989 = vmatprep.subr.bf16.mxu1 %v1366_v42  ;;  %v1476_v4 = vld [vmem:[#allocation2 + $0x588] sm:$0xff]  ;;  %v1478_v5 = vld [vmem:[#allocation2 + $0x598] sm:$0xff]  ;;  %v1475_v6 = vld [vmem:[#allocation2 + $0x580] sm:$0xff] }
 0x28c   :  { %v1477_v7 = vld [vmem:[#allocation2 + $0x590] sm:$0xff]  ;;  %v1492_v8 = vld [vmem:[#allocation2 + $0x608] sm:$0xff]  ;;  %v1494_v9 = vld [vmem:[#allocation2 + $0x618] sm:$0xff] }
 0x28d   :  { %v1491_v10 = vld [vmem:[#allocation2 + $0x600] sm:$0xff]  ;;  %v1493_v11 = vld [vmem:[#allocation2 + $0x610] sm:$0xff]  ;;  %v1508_v12 = vld [vmem:[#allocation2 + $0x688] sm:$0xff] }
 0x28e   :  { %1904 = vmatpush1.bf16.msra.mxu0 %v1363_v43  ;;  %1990 = vmatpush1.bf16.msra.mxu1 %v1365_v44  ;;  %v1510_v13 = vld [vmem:[#allocation2 + $0x698] sm:$0xff]  ;;  %v1507_v23 = vld [vmem:[#allocation2 + $0x680] sm:$0xff]  ;;  %v1509_v24 = vld [vmem:[#allocation2 + $0x690] sm:$0xff] }
 0x28f   :  { %1905 = vmatprep.subr.bf16.mxu0 %v1380_v45  ;;  %1991 = vmatprep.subr.bf16.mxu1 %v1382_v46  ;;  %v1524_v25 = vld [vmem:[#allocation2 + $0x708] sm:$0xff]  ;;  %v1526_v26 = vld [vmem:[#allocation2 + $0x718] sm:$0xff]  ;;  %v1523_v27 = vld [vmem:[#allocation2 + $0x700] sm:$0xff] }
 0x290   :  { %v1525_v28 = vld [vmem:[#allocation2 + $0x710] sm:$0xff]  ;;  %v1540_v29 = vld [vmem:[#allocation2 + $0x788] sm:$0xff]  ;;  %v1542_v30 = vld [vmem:[#allocation2 + $0x798] sm:$0xff] }
 0x291   :  { %v1539_v31 = vld [vmem:[#allocation2 + $0x780] sm:$0xff]  ;;  %v1541_v32 = vld [vmem:[#allocation2 + $0x790] sm:$0xff]  ;;  %v1556_v33 = vld [vmem:[#allocation2 + $0x808] sm:$0xff] }
 0x292   :  { %1906 = vmatpush1.bf16.msra.mxu0 %v1379_v47  ;;  %1992 = vmatpush1.bf16.msra.mxu1 %v1381_v49  ;;  %v1558_v35 = vld [vmem:[#allocation2 + $0x818] sm:$0xff]  ;;  %v1555_v36 = vld [vmem:[#allocation2 + $0x800] sm:$0xff]  ;;  %v1557_v37 = vld [vmem:[#allocation2 + $0x810] sm:$0xff] }
 0x293   :  { %1907 = vmatprep.subr.bf16.mxu0 %v1396_v50  ;;  %1993 = vmatprep.subr.bf16.mxu1 %v1398_v51  ;;  %v1572_v38 = vld [vmem:[#allocation2 + $0x888] sm:$0xff]  ;;  %v1574_v40 = vld [vmem:[#allocation2 + $0x898] sm:$0xff]  ;;  %v1571_v41 = vld [vmem:[#allocation2 + $0x880] sm:$0xff] }
 0x294   :  { %v1573_v42 = vld [vmem:[#allocation2 + $0x890] sm:$0xff]  ;;  %v1588_v43 = vld [vmem:[#allocation2 + $0x908] sm:$0xff]  ;;  %v1590_v44 = vld [vmem:[#allocation2 + $0x918] sm:$0xff] }
 0x295   :  { %v1587_v45 = vld [vmem:[#allocation2 + $0x900] sm:$0xff]  ;;  %v1589_v46 = vld [vmem:[#allocation2 + $0x910] sm:$0xff]  ;;  %v1604_v47 = vld [vmem:[#allocation2 + $0x988] sm:$0xff] }
 0x296   :  { %1908 = vmatpush1.bf16.msra.mxu0 %v1395_v52  ;;  %1994 = vmatpush1.bf16.msra.mxu1 %v1397_v53  ;;  %v1606_v49 = vld [vmem:[#allocation2 + $0x998] sm:$0xff]  ;;  %v1603_v50 = vld [vmem:[#allocation2 + $0x980] sm:$0xff]  ;;  %v1605_v51 = vld [vmem:[#allocation2 + $0x990] sm:$0xff] }
 0x297   :  { %1909 = vmatprep.subr.bf16.mxu0 %v1412_v54  ;;  %1995 = vmatprep.subr.bf16.mxu1 %v1414_v34  ;;  %v1620_v52 = vld [vmem:[#allocation2 + $0xa08] sm:$0xff]  ;;  %v1622_v53 = vld [vmem:[#allocation2 + $0xa18] sm:$0xff]  ;;  %v1619_v54 = vld [vmem:[#allocation2 + $0xa00] sm:$0xff] }
 0x298   :  { %v1621_v34 = vld [vmem:[#allocation2 + $0xa10] sm:$0xff] }
 0x29a   :  { %1910 = vmatpush1.bf16.msra.mxu0 %v1411_v39  ;;  %1996 = vmatpush1.bf16.msra.mxu1 %v1413_v48  ;;  %v1636_v39 = vld [vmem:[#allocation2 + $0xa88] sm:$0xff]  ;;  %v1638_v48 = vld [vmem:[#allocation2 + $0xa98] sm:$0xff] }
 0x29b   :  { %1911 = vmatprep.subr.bf16.mxu0 %v1428_v55  ;;  %1997 = vmatprep.subr.bf16.mxu1 %v1430_v56  ;;  %v1635_v55 = vld [vmem:[#allocation2 + $0xa80] sm:$0xff]  ;;  %v1637_v56 = vld [vmem:[#allocation2 + $0xa90] sm:$0xff] }
 0x29e   :  { %1912 = vmatpush1.bf16.msra.mxu0 %v1427_v57  ;;  %1998 = vmatpush1.bf16.msra.mxu1 %v1429_v58  ;;  %v1652_v57 = vld [vmem:[#allocation2 + $0xb08] sm:$0xff]  ;;  %v1654_v58 = vld [vmem:[#allocation2 + $0xb18] sm:$0xff] }
 0x29f   :  { %1913 = vmatprep.subr.bf16.mxu0 %v1444_v59  ;;  %1999 = vmatprep.subr.bf16.mxu1 %v1446_v60  ;;  %v1651_v59 = vld [vmem:[#allocation2 + $0xb00] sm:$0xff]  ;;  %v1653_v60 = vld [vmem:[#allocation2 + $0xb10] sm:$0xff] }
 0x2a2   :  { %1914 = vmatpush1.bf16.msra.mxu0 %v1443_v61  ;;  %2000 = vmatpush1.bf16.msra.mxu1 %v1445_v62  ;;  %v1668_v61 = vld [vmem:[#allocation2 + $0xb88] sm:$0xff]  ;;  %v1670_v62 = vld [vmem:[#allocation2 + $0xb98] sm:$0xff] }
 0x2a3   :  { %1915 = vmatprep.subr.bf16.mxu0 %v1460_v63  ;;  %2001 = vmatprep.subr.bf16.mxu1 %v1462_v1  ;;  %v1667_v63 = vld [vmem:[#allocation2 + $0xb80] sm:$0xff]  ;;  %v1669_v1 = vld [vmem:[#allocation2 + $0xb90] sm:$0xff] }
 0x2a6   :  { %1916 = vmatpush1.bf16.msra.mxu0 %v1459_v2  ;;  %2002 = vmatpush1.bf16.msra.mxu1 %v1461_v3  ;;  %v1684_v2 = vld [vmem:[#allocation2 + $0xc08] sm:$0xff]  ;;  %v1686_v3 = vld [vmem:[#allocation2 + $0xc18] sm:$0xff] }
 0x2a7   :  { %1917 = vmatprep.subr.bf16.mxu0 %v1476_v4  ;;  %2003 = vmatprep.subr.bf16.mxu1 %v1478_v5  ;;  %v1683_v4 = vld [vmem:[#allocation2 + $0xc00] sm:$0xff]  ;;  %v1685_v5 = vld [vmem:[#allocation2 + $0xc10] sm:$0xff] }
 0x2aa   :  { %1918 = vmatpush1.bf16.msra.mxu0 %v1475_v6  ;;  %2004 = vmatpush1.bf16.msra.mxu1 %v1477_v7  ;;  %v1700_v6 = vld [vmem:[#allocation2 + $0xc88] sm:$0xff]  ;;  %v1702_v7 = vld [vmem:[#allocation2 + $0xc98] sm:$0xff] }
 0x2ab   :  { %1919 = vmatprep.subr.bf16.mxu0 %v1492_v8  ;;  %2005 = vmatprep.subr.bf16.mxu1 %v1494_v9  ;;  %v1699_v8 = vld [vmem:[#allocation2 + $0xc80] sm:$0xff]  ;;  %v1701_v9 = vld [vmem:[#allocation2 + $0xc90] sm:$0xff] }
 0x2ae   :  { %1920 = vmatpush1.bf16.msra.mxu0 %v1491_v10  ;;  %2006 = vmatpush1.bf16.msra.mxu1 %v1493_v11  ;;  %v1716_v10 = vld [vmem:[#allocation2 + $0xd08] sm:$0xff]  ;;  %v1718_v11 = vld [vmem:[#allocation2 + $0xd18] sm:$0xff] }
 0x2af   :  { %1921 = vmatprep.subr.bf16.mxu0 %v1508_v12  ;;  %2007 = vmatprep.subr.bf16.mxu1 %v1510_v13  ;;  %v1715_v12 = vld [vmem:[#allocation2 + $0xd00] sm:$0xff]  ;;  %v1717_v13 = vld [vmem:[#allocation2 + $0xd10] sm:$0xff] }
 0x2b2   :  { %1922 = vmatpush1.bf16.msra.mxu0 %v1507_v23  ;;  %2008 = vmatpush1.bf16.msra.mxu1 %v1509_v24  ;;  %v1732_v23 = vld [vmem:[#allocation2 + $0xd88] sm:$0xff]  ;;  %v1734_v24 = vld [vmem:[#allocation2 + $0xd98] sm:$0xff] }
 0x2b3   :  { %1923 = vmatprep.subr.bf16.mxu0 %v1524_v25  ;;  %2009 = vmatprep.subr.bf16.mxu1 %v1526_v26  ;;  %v1731_v25 = vld [vmem:[#allocation2 + $0xd80] sm:$0xff]  ;;  %v1733_v26 = vld [vmem:[#allocation2 + $0xd90] sm:$0xff] }
 0x2b6   :  { %1924 = vmatpush1.bf16.msra.mxu0 %v1523_v27  ;;  %2010 = vmatpush1.bf16.msra.mxu1 %v1525_v28  ;;  %v1748_v27 = vld [vmem:[#allocation2 + $0xe08] sm:$0xff]  ;;  %v1750_v28 = vld [vmem:[#allocation2 + $0xe18] sm:$0xff] }
 0x2b7   :  { %1925 = vmatprep.subr.bf16.mxu0 %v1540_v29  ;;  %2011 = vmatprep.subr.bf16.mxu1 %v1542_v30  ;;  %v1747_v29 = vld [vmem:[#allocation2 + $0xe00] sm:$0xff]  ;;  %v1749_v30 = vld [vmem:[#allocation2 + $0xe10] sm:$0xff] }
 0x2ba   :  { %1926 = vmatpush1.bf16.msra.mxu0 %v1539_v31  ;;  %2012 = vmatpush1.bf16.msra.mxu1 %v1541_v32  ;;  %v1764_v31 = vld [vmem:[#allocation2 + $0xe88] sm:$0xff]  ;;  %v1766_v32 = vld [vmem:[#allocation2 + $0xe98] sm:$0xff] }
 0x2bb   :  { %1938 = vmatprep.subr.bf16.mxu0 %v1556_v33  ;;  %2024 = vmatprep.subr.bf16.mxu1 %v1558_v35  ;;  %v1763_v33 = vld [vmem:[#allocation2 + $0xe80] sm:$0xff]  ;;  %v1765_v35 = vld [vmem:[#allocation2 + $0xe90] sm:$0xff] }
 0x2bd   :  { %1928 = vmatmul.mubr.bf16.vlgmr.msra.gmra.mrb[8].mxu0 %v4097_v16  ;;  %2014 = vmatmul.mubr.bf16.vlgmr.msra.gmra.mrb[8].mxu1 %v4097_v16 }
 0x2be   :  { %1939 = vmatpush1.bf16.msra.mxu0 %v1555_v36  ;;  %2025 = vmatpush1.bf16.msra.mxu1 %v1557_v37  ;;  %v1780_v36 = vld [vmem:[#allocation2 + $0xf08] sm:$0xff]  ;;  %v1782_v37 = vld [vmem:[#allocation2 + $0xf18] sm:$0xff] }
 0x2bf   :  { %1940 = vmatprep.subr.bf16.mxu0 %v1572_v38  ;;  %2026 = vmatprep.subr.bf16.mxu1 %v1574_v40  ;;  %v1779_v38 = vld [vmem:[#allocation2 + $0xf00] sm:$0xff]  ;;  %v1781_v40 = vld [vmem:[#allocation2 + $0xf10] sm:$0xff] }
 0x2c0   :  { %1970 = vmatprep.mubr.bf16.mxu0 %v4106_v22  ;;  %2056 = vmatprep.mubr.bf16.mxu1 %v4106_v22 }
 0x2c2   :  { %1941 = vmatpush1.bf16.msra.mxu0 %v1571_v41  ;;  %2027 = vmatpush1.bf16.msra.mxu1 %v1573_v42  ;;  %v1796_v41 = vld [vmem:[#allocation2 + $0xf88] sm:$0xff]  ;;  %v1798_v42 = vld [vmem:[#allocation2 + $0xf98] sm:$0xff] }
 0x2c3   :  { %1942 = vmatprep.subr.bf16.mxu0 %v1588_v43  ;;  %2028 = vmatprep.subr.bf16.mxu1 %v1590_v44  ;;  %v1795_v43 = vld [vmem:[#allocation2 + $0xf80] sm:$0xff]  ;;  %v1797_v44 = vld [vmem:[#allocation2 + $0xf90] sm:$0xff] }
 0x2c6   :  { %1943 = vmatpush1.bf16.msra.mxu0 %v1587_v45  ;;  %2029 = vmatpush1.bf16.msra.mxu1 %v1589_v46  ;;  %v1304_v45 = vld [vmem:[#allocation2 + $0x28] sm:$0xff]  ;;  %v1306_v46 = vld [vmem:[#allocation2 + $0x38] sm:$0xff] }
 0x2c7   :  { %1944 = vmatprep.subr.bf16.mxu0 %v1604_v47  ;;  %2030 = vmatprep.subr.bf16.mxu1 %v1606_v49  ;;  %v1303_v47 = vld [vmem:[#allocation2 + $0x20] sm:$0xff]  ;;  %v1305_v49 = vld [vmem:[#allocation2 + $0x30] sm:$0xff] }
 0x2ca   :  { %1945 = vmatpush1.bf16.msra.mxu0 %v1603_v50  ;;  %2031 = vmatpush1.bf16.msra.mxu1 %v1605_v51  ;;  %v1320_v50 = vld [vmem:[#allocation2 + $0xa8] sm:$0xff]  ;;  %v1322_v51 = vld [vmem:[#allocation2 + $0xb8] sm:$0xff] }
 0x2cb   :  { %1946 = vmatprep.subr.bf16.mxu0 %v1620_v52  ;;  %2032 = vmatprep.subr.bf16.mxu1 %v1622_v53  ;;  %v1319_v52 = vld [vmem:[#allocation2 + $0xa0] sm:$0xff]  ;;  %v1321_v53 = vld [vmem:[#allocation2 + $0xb0] sm:$0xff] }
 0x2ce   :  { %1947 = vmatpush1.bf16.msra.mxu0 %v1619_v54  ;;  %2033 = vmatpush1.bf16.msra.mxu1 %v1621_v34  ;;  %v1336_v54 = vld [vmem:[#allocation2 + $0x128] sm:$0xff]  ;;  %v1338_v34 = vld [vmem:[#allocation2 + $0x138] sm:$0xff] }
 0x2cf   :  { %1948 = vmatprep.subr.bf16.mxu0 %v1636_v39  ;;  %2034 = vmatprep.subr.bf16.mxu1 %v1638_v48  ;;  %v1335_v39 = vld [vmem:[#allocation2 + $0x120] sm:$0xff]  ;;  %v1337_v48 = vld [vmem:[#allocation2 + $0x130] sm:$0xff] }
 0x2d2   :  { %1949 = vmatpush1.bf16.msra.mxu0 %v1635_v55  ;;  %2035 = vmatpush1.bf16.msra.mxu1 %v1637_v56  ;;  %v1352_v55 = vld [vmem:[#allocation2 + $0x1a8] sm:$0xff]  ;;  %v1354_v56 = vld [vmem:[#allocation2 + $0x1b8] sm:$0xff] }
 0x2d3   :  { %1950 = vmatprep.subr.bf16.mxu0 %v1652_v57  ;;  %2036 = vmatprep.subr.bf16.mxu1 %v1654_v58  ;;  %v1351_v57 = vld [vmem:[#allocation2 + $0x1a0] sm:$0xff]  ;;  %v1353_v58 = vld [vmem:[#allocation2 + $0x1b0] sm:$0xff] }
 0x2d6   :  { %1951 = vmatpush1.bf16.msra.mxu0 %v1651_v59  ;;  %2037 = vmatpush1.bf16.msra.mxu1 %v1653_v60  ;;  %v1368_v59 = vld [vmem:[#allocation2 + $0x228] sm:$0xff]  ;;  %v1370_v60 = vld [vmem:[#allocation2 + $0x238] sm:$0xff] }
 0x2d7   :  { %1952 = vmatprep.subr.bf16.mxu0 %v1668_v61  ;;  %2038 = vmatprep.subr.bf16.mxu1 %v1670_v62  ;;  %v1367_v61 = vld [vmem:[#allocation2 + $0x220] sm:$0xff]  ;;  %v1369_v62 = vld [vmem:[#allocation2 + $0x230] sm:$0xff] }
 0x2da   :  { %1953 = vmatpush1.bf16.msra.mxu0 %v1667_v63  ;;  %2039 = vmatpush1.bf16.msra.mxu1 %v1669_v1  ;;  %v1384_v63 = vld [vmem:[#allocation2 + $0x2a8] sm:$0xff]  ;;  %v1386_v1 = vld [vmem:[#allocation2 + $0x2b8] sm:$0xff] }
 0x2db   :  { %1954 = vmatprep.subr.bf16.mxu0 %v1684_v2  ;;  %2040 = vmatprep.subr.bf16.mxu1 %v1686_v3  ;;  %v1383_v2 = vld [vmem:[#allocation2 + $0x2a0] sm:$0xff]  ;;  %v1385_v3 = vld [vmem:[#allocation2 + $0x2b0] sm:$0xff] }
 0x2de   :  { %1955 = vmatpush1.bf16.msra.mxu0 %v1683_v4  ;;  %2041 = vmatpush1.bf16.msra.mxu1 %v1685_v5  ;;  %v1400_v4 = vld [vmem:[#allocation2 + $0x328] sm:$0xff]  ;;  %v1402_v5 = vld [vmem:[#allocation2 + $0x338] sm:$0xff] }
 0x2df   :  { %1956 = vmatprep.subr.bf16.mxu0 %v1700_v6  ;;  %2042 = vmatprep.subr.bf16.mxu1 %v1702_v7  ;;  %v1399_v6 = vld [vmem:[#allocation2 + $0x320] sm:$0xff]  ;;  %v1401_v7 = vld [vmem:[#allocation2 + $0x330] sm:$0xff] }
 0x2e2   :  { %1957 = vmatpush1.bf16.msra.mxu0 %v1699_v8  ;;  %2043 = vmatpush1.bf16.msra.mxu1 %v1701_v9  ;;  %v1416_v8 = vld [vmem:[#allocation2 + $0x3a8] sm:$0xff]  ;;  %v1418_v9 = vld [vmem:[#allocation2 + $0x3b8] sm:$0xff] }
 0x2e3   :  { %1958 = vmatprep.subr.bf16.mxu0 %v1716_v10  ;;  %2044 = vmatprep.subr.bf16.mxu1 %v1718_v11  ;;  %v1415_v10 = vld [vmem:[#allocation2 + $0x3a0] sm:$0xff]  ;;  %v1417_v11 = vld [vmem:[#allocation2 + $0x3b0] sm:$0xff] }
 0x2e6   :  { %1959 = vmatpush1.bf16.msra.mxu0 %v1715_v12  ;;  %2045 = vmatpush1.bf16.msra.mxu1 %v1717_v13  ;;  %v1432_v12 = vld [vmem:[#allocation2 + $0x428] sm:$0xff]  ;;  %v1434_v13 = vld [vmem:[#allocation2 + $0x438] sm:$0xff] }
 0x2e7   :  { %1960 = vmatprep.subr.bf16.mxu0 %v1732_v23  ;;  %2046 = vmatprep.subr.bf16.mxu1 %v1734_v24  ;;  %v1431_v23 = vld [vmem:[#allocation2 + $0x420] sm:$0xff]  ;;  %v1433_v24 = vld [vmem:[#allocation2 + $0x430] sm:$0xff] }
 0x2ea   :  { %1961 = vmatpush1.bf16.msra.mxu0 %v1731_v25  ;;  %2047 = vmatpush1.bf16.msra.mxu1 %v1733_v26  ;;  %v1448_v25 = vld [vmem:[#allocation2 + $0x4a8] sm:$0xff]  ;;  %v1450_v26 = vld [vmem:[#allocation2 + $0x4b8] sm:$0xff] }
 0x2eb   :  { %1962 = vmatprep.subr.bf16.mxu0 %v1748_v27  ;;  %2048 = vmatprep.subr.bf16.mxu1 %v1750_v28  ;;  %v1447_v27 = vld [vmem:[#allocation2 + $0x4a0] sm:$0xff]  ;;  %v1449_v28 = vld [vmem:[#allocation2 + $0x4b0] sm:$0xff] }
 0x2ee   :  { %1963 = vmatpush1.bf16.msra.mxu0 %v1747_v29  ;;  %2049 = vmatpush1.bf16.msra.mxu1 %v1749_v30  ;;  %v1464_v29 = vld [vmem:[#allocation2 + $0x528] sm:$0xff]  ;;  %v1466_v30 = vld [vmem:[#allocation2 + $0x538] sm:$0xff] }
 0x2ef   :  { %1964 = vmatprep.subr.bf16.mxu0 %v1764_v31  ;;  %2050 = vmatprep.subr.bf16.mxu1 %v1766_v32  ;;  %v1463_v31 = vld [vmem:[#allocation2 + $0x520] sm:$0xff]  ;;  %v1465_v32 = vld [vmem:[#allocation2 + $0x530] sm:$0xff] }
 0x2f2   :  { %1965 = vmatpush1.bf16.msra.mxu0 %v1763_v33  ;;  %2051 = vmatpush1.bf16.msra.mxu1 %v1765_v35  ;;  %v1480_v33 = vld [vmem:[#allocation2 + $0x5a8] sm:$0xff]  ;;  %v1482_v35 = vld [vmem:[#allocation2 + $0x5b8] sm:$0xff] }
 0x2f3   :  { %1966 = vmatprep.subr.bf16.mxu0 %v1780_v36  ;;  %2052 = vmatprep.subr.bf16.mxu1 %v1782_v37  ;;  %v1479_v36 = vld [vmem:[#allocation2 + $0x5a0] sm:$0xff]  ;;  %v1481_v37 = vld [vmem:[#allocation2 + $0x5b0] sm:$0xff] }
 0x2f6   :  { %1967 = vmatpush1.bf16.msra.mxu0 %v1779_v38  ;;  %2053 = vmatpush1.bf16.msra.mxu1 %v1781_v40  ;;  %v1496_v38 = vld [vmem:[#allocation2 + $0x628] sm:$0xff]  ;;  %v1498_v40 = vld [vmem:[#allocation2 + $0x638] sm:$0xff] }
 0x2f7   :  { %1968 = vmatprep.subr.bf16.mxu0 %v1796_v41  ;;  %2054 = vmatprep.subr.bf16.mxu1 %v1798_v42  ;;  %v1495_v41 = vld [vmem:[#allocation2 + $0x620] sm:$0xff]  ;;  %v1497_v42 = vld [vmem:[#allocation2 + $0x630] sm:$0xff] }
 0x2fa   :  { %1969 = vmatpush1.bf16.msra.mxu0 %v1795_v43  ;;  %2055 = vmatpush1.bf16.msra.mxu1 %v1797_v44  ;;  %v1512_v43 = vld [vmem:[#allocation2 + $0x6a8] sm:$0xff]  ;;  %v1514_v44 = vld [vmem:[#allocation2 + $0x6b8] sm:$0xff] }
 0x2fb   :  { %2067 = vmatprep.subr.bf16.mxu0 %v1304_v45  ;;  %2153 = vmatprep.subr.bf16.mxu1 %v1306_v46  ;;  %v1511_v45 = vld [vmem:[#allocation2 + $0x6a0] sm:$0xff]  ;;  %v1513_v46 = vld [vmem:[#allocation2 + $0x6b0] sm:$0xff] }
 0x2fd   :  { %1971 = vmatmul.mubr.bf16.vlgmr.msra.gmra.mrb[8].mxu0 %v4100_v20  ;;  %2057 = vmatmul.mubr.bf16.vlgmr.msra.gmra.mrb[8].mxu1 %v4100_v20 }
 0x2fe   :  { %2068 = vmatpush1.bf16.msra.mxu0 %v1303_v47  ;;  %2154 = vmatpush1.bf16.msra.mxu1 %v1305_v49  ;;  %v1528_v47 = vld [vmem:[#allocation2 + $0x728] sm:$0xff]  ;;  %v1530_v49 = vld [vmem:[#allocation2 + $0x738] sm:$0xff] }
 0x2ff   :  { %2069 = vmatprep.subr.bf16.mxu0 %v1320_v50  ;;  %2155 = vmatprep.subr.bf16.mxu1 %v1322_v51  ;;  %v1527_v50 = vld [vmem:[#allocation2 + $0x720] sm:$0xff]  ;;  %v1529_v51 = vld [vmem:[#allocation2 + $0x730] sm:$0xff] }
 0x300   :  { %2099 = vmatprep.mubr.bf16.mxu0 %v4103_v21  ;;  %2185 = vmatprep.mubr.bf16.mxu1 %v4103_v21 }
 0x302   :  { %2070 = vmatpush1.bf16.msra.mxu0 %v1319_v52  ;;  %2156 = vmatpush1.bf16.msra.mxu1 %v1321_v53  ;;  %v1544_v52 = vld [vmem:[#allocation2 + $0x7a8] sm:$0xff]  ;;  %v1546_v53 = vld [vmem:[#allocation2 + $0x7b8] sm:$0xff] }
 0x303   :  { %2071 = vmatprep.subr.bf16.mxu0 %v1336_v54  ;;  %2157 = vmatprep.subr.bf16.mxu1 %v1338_v34  ;;  %v1543_v54 = vld [vmem:[#allocation2 + $0x7a0] sm:$0xff]  ;;  %v1545_v34 = vld [vmem:[#allocation2 + $0x7b0] sm:$0xff] }
 0x306   :  { %2072 = vmatpush1.bf16.msra.mxu0 %v1335_v39  ;;  %2158 = vmatpush1.bf16.msra.mxu1 %v1337_v48  ;;  %v1560_v39 = vld [vmem:[#allocation2 + $0x828] sm:$0xff]  ;;  %v1562_v48 = vld [vmem:[#allocation2 + $0x838] sm:$0xff] }
 0x307   :  { %2073 = vmatprep.subr.bf16.mxu0 %v1352_v55  ;;  %2159 = vmatprep.subr.bf16.mxu1 %v1354_v56  ;;  %v1559_v55 = vld [vmem:[#allocation2 + $0x820] sm:$0xff]  ;;  %v1561_v56 = vld [vmem:[#allocation2 + $0x830] sm:$0xff] }
 0x30a   :  { %2074 = vmatpush1.bf16.msra.mxu0 %v1351_v57  ;;  %2160 = vmatpush1.bf16.msra.mxu1 %v1353_v58  ;;  %v1576_v57 = vld [vmem:[#allocation2 + $0x8a8] sm:$0xff]  ;;  %v1578_v58 = vld [vmem:[#allocation2 + $0x8b8] sm:$0xff] }
 0x30b   :  { %2075 = vmatprep.subr.bf16.mxu0 %v1368_v59  ;;  %2161 = vmatprep.subr.bf16.mxu1 %v1370_v60  ;;  %v1575_v59 = vld [vmem:[#allocation2 + $0x8a0] sm:$0xff]  ;;  %v1577_v60 = vld [vmem:[#allocation2 + $0x8b0] sm:$0xff] }
 0x30e   :  { %2076 = vmatpush1.bf16.msra.mxu0 %v1367_v61  ;;  %2162 = vmatpush1.bf16.msra.mxu1 %v1369_v62  ;;  %v1592_v61 = vld [vmem:[#allocation2 + $0x928] sm:$0xff]  ;;  %v1594_v62 = vld [vmem:[#allocation2 + $0x938] sm:$0xff] }
 0x30f   :  { %2077 = vmatprep.subr.bf16.mxu0 %v1384_v63  ;;  %2163 = vmatprep.subr.bf16.mxu1 %v1386_v1  ;;  %v1591_v63 = vld [vmem:[#allocation2 + $0x920] sm:$0xff]  ;;  %v1593_v1 = vld [vmem:[#allocation2 + $0x930] sm:$0xff] }
 0x312   :  { %2078 = vmatpush1.bf16.msra.mxu0 %v1383_v2  ;;  %2164 = vmatpush1.bf16.msra.mxu1 %v1385_v3  ;;  %v1608_v2 = vld [vmem:[#allocation2 + $0x9a8] sm:$0xff]  ;;  %v1610_v3 = vld [vmem:[#allocation2 + $0x9b8] sm:$0xff] }
 0x313   :  { %2079 = vmatprep.subr.bf16.mxu0 %v1400_v4  ;;  %2165 = vmatprep.subr.bf16.mxu1 %v1402_v5  ;;  %v1607_v4 = vld [vmem:[#allocation2 + $0x9a0] sm:$0xff]  ;;  %v1609_v5 = vld [vmem:[#allocation2 + $0x9b0] sm:$0xff] }
 0x316   :  { %2080 = vmatpush1.bf16.msra.mxu0 %v1399_v6  ;;  %2166 = vmatpush1.bf16.msra.mxu1 %v1401_v7  ;;  %v1624_v6 = vld [vmem:[#allocation2 + $0xa28] sm:$0xff]  ;;  %v1626_v7 = vld [vmem:[#allocation2 + $0xa38] sm:$0xff] }
 0x317   :  { %2081 = vmatprep.subr.bf16.mxu0 %v1416_v8  ;;  %2167 = vmatprep.subr.bf16.mxu1 %v1418_v9  ;;  %v1623_v8 = vld [vmem:[#allocation2 + $0xa20] sm:$0xff]  ;;  %v1625_v9 = vld [vmem:[#allocation2 + $0xa30] sm:$0xff] }
 0x31a   :  { %2082 = vmatpush1.bf16.msra.mxu0 %v1415_v10  ;;  %2168 = vmatpush1.bf16.msra.mxu1 %v1417_v11  ;;  %v1640_v10 = vld [vmem:[#allocation2 + $0xaa8] sm:$0xff]  ;;  %v1642_v11 = vld [vmem:[#allocation2 + $0xab8] sm:$0xff] }
 0x31b   :  { %2083 = vmatprep.subr.bf16.mxu0 %v1432_v12  ;;  %2169 = vmatprep.subr.bf16.mxu1 %v1434_v13  ;;  %v1639_v12 = vld [vmem:[#allocation2 + $0xaa0] sm:$0xff]  ;;  %v1641_v13 = vld [vmem:[#allocation2 + $0xab0] sm:$0xff] }
 0x31e   :  { %2084 = vmatpush1.bf16.msra.mxu0 %v1431_v23  ;;  %2170 = vmatpush1.bf16.msra.mxu1 %v1433_v24  ;;  %v1656_v23 = vld [vmem:[#allocation2 + $0xb28] sm:$0xff]  ;;  %v1658_v24 = vld [vmem:[#allocation2 + $0xb38] sm:$0xff] }
 0x31f   :  { %2085 = vmatprep.subr.bf16.mxu0 %v1448_v25  ;;  %2171 = vmatprep.subr.bf16.mxu1 %v1450_v26  ;;  %v1655_v25 = vld [vmem:[#allocation2 + $0xb20] sm:$0xff]  ;;  %v1657_v26 = vld [vmem:[#allocation2 + $0xb30] sm:$0xff] }
 0x322   :  { %2086 = vmatpush1.bf16.msra.mxu0 %v1447_v27  ;;  %2172 = vmatpush1.bf16.msra.mxu1 %v1449_v28  ;;  %v1672_v27 = vld [vmem:[#allocation2 + $0xba8] sm:$0xff]  ;;  %v1674_v28 = vld [vmem:[#allocation2 + $0xbb8] sm:$0xff] }
 0x323   :  { %2087 = vmatprep.subr.bf16.mxu0 %v1464_v29  ;;  %2173 = vmatprep.subr.bf16.mxu1 %v1466_v30  ;;  %v1671_v29 = vld [vmem:[#allocation2 + $0xba0] sm:$0xff]  ;;  %v1673_v30 = vld [vmem:[#allocation2 + $0xbb0] sm:$0xff] }
 0x326   :  { %2088 = vmatpush1.bf16.msra.mxu0 %v1463_v31  ;;  %2174 = vmatpush1.bf16.msra.mxu1 %v1465_v32  ;;  %v1688_v31 = vld [vmem:[#allocation2 + $0xc28] sm:$0xff]  ;;  %v1690_v32 = vld [vmem:[#allocation2 + $0xc38] sm:$0xff] }
 0x327   :  { %2089 = vmatprep.subr.bf16.mxu0 %v1480_v33  ;;  %2175 = vmatprep.subr.bf16.mxu1 %v1482_v35  ;;  %v1687_v33 = vld [vmem:[#allocation2 + $0xc20] sm:$0xff]  ;;  %v1689_v35 = vld [vmem:[#allocation2 + $0xc30] sm:$0xff] }
 0x32a   :  { %2090 = vmatpush1.bf16.msra.mxu0 %v1479_v36  ;;  %2176 = vmatpush1.bf16.msra.mxu1 %v1481_v37  ;;  %v1704_v36 = vld [vmem:[#allocation2 + $0xca8] sm:$0xff]  ;;  %v1706_v37 = vld [vmem:[#allocation2 + $0xcb8] sm:$0xff] }
 0x32b   :  { %2091 = vmatprep.subr.bf16.mxu0 %v1496_v38  ;;  %2177 = vmatprep.subr.bf16.mxu1 %v1498_v40  ;;  %v1703_v38 = vld [vmem:[#allocation2 + $0xca0] sm:$0xff]  ;;  %v1705_v40 = vld [vmem:[#allocation2 + $0xcb0] sm:$0xff] }
 0x32e   :  { %2092 = vmatpush1.bf16.msra.mxu0 %v1495_v41  ;;  %2178 = vmatpush1.bf16.msra.mxu1 %v1497_v42  ;;  %v1720_v41 = vld [vmem:[#allocation2 + $0xd28] sm:$0xff]  ;;  %v1722_v42 = vld [vmem:[#allocation2 + $0xd38] sm:$0xff] }
 0x32f   :  { %2093 = vmatprep.subr.bf16.mxu0 %v1512_v43  ;;  %2179 = vmatprep.subr.bf16.mxu1 %v1514_v44  ;;  %v1719_v43 = vld [vmem:[#allocation2 + $0xd20] sm:$0xff]  ;;  %v1721_v44 = vld [vmem:[#allocation2 + $0xd30] sm:$0xff] }
 0x332   :  { %2094 = vmatpush1.bf16.msra.mxu0 %v1511_v45  ;;  %2180 = vmatpush1.bf16.msra.mxu1 %v1513_v46  ;;  %v1736_v45 = vld [vmem:[#allocation2 + $0xda8] sm:$0xff]  ;;  %v1738_v46 = vld [vmem:[#allocation2 + $0xdb8] sm:$0xff] }
 0x333   :  { %2095 = vmatprep.subr.bf16.mxu0 %v1528_v47  ;;  %2181 = vmatprep.subr.bf16.mxu1 %v1530_v49  ;;  %v1735_v47 = vld [vmem:[#allocation2 + $0xda0] sm:$0xff]  ;;  %v1737_v49 = vld [vmem:[#allocation2 + $0xdb0] sm:$0xff] }
 0x336   :  { %2096 = vmatpush1.bf16.msra.mxu0 %v1527_v50  ;;  %2182 = vmatpush1.bf16.msra.mxu1 %v1529_v51  ;;  %v1752_v50 = vld [vmem:[#allocation2 + $0xe28] sm:$0xff]  ;;  %v1754_v51 = vld [vmem:[#allocation2 + $0xe38] sm:$0xff] }
 0x337   :  { %2097 = vmatprep.subr.bf16.mxu0 %v1544_v52  ;;  %2183 = vmatprep.subr.bf16.mxu1 %v1546_v53  ;;  %v1751_v52 = vld [vmem:[#allocation2 + $0xe20] sm:$0xff]  ;;  %v1753_v53 = vld [vmem:[#allocation2 + $0xe30] sm:$0xff] }
 0x33a   :  { %2098 = vmatpush1.bf16.msra.mxu0 %v1543_v54  ;;  %2184 = vmatpush1.bf16.msra.mxu1 %v1545_v34  ;;  %v1768_v54 = vld [vmem:[#allocation2 + $0xea8] sm:$0xff]  ;;  %v1770_v34 = vld [vmem:[#allocation2 + $0xeb8] sm:$0xff] }
 0x33b   :  { %2110 = vmatprep.subr.bf16.mxu0 %v1560_v39  ;;  %2196 = vmatprep.subr.bf16.mxu1 %v1562_v48  ;;  %v1767_v39 = vld [vmem:[#allocation2 + $0xea0] sm:$0xff]  ;;  %v1769_v48 = vld [vmem:[#allocation2 + $0xeb0] sm:$0xff] }
 0x33d   :  { %2100 = vmatmul.mubr.bf16.vlgmr.msra.gmra.mrb[12].mxu0 %v4097_v16  ;;  %2186 = vmatmul.mubr.bf16.vlgmr.msra.gmra.mrb[12].mxu1 %v4097_v16 }
 0x33e   :  { %2111 = vmatpush1.bf16.msra.mxu0 %v1559_v55  ;;  %2197 = vmatpush1.bf16.msra.mxu1 %v1561_v56  ;;  %v1784_v55 = vld [vmem:[#allocation2 + $0xf28] sm:$0xff]  ;;  %v1786_v56 = vld [vmem:[#allocation2 + $0xf38] sm:$0xff] }
 0x33f   :  { %2112 = vmatprep.subr.bf16.mxu0 %v1576_v57  ;;  %2198 = vmatprep.subr.bf16.mxu1 %v1578_v58  ;;  %v1783_v57 = vld [vmem:[#allocation2 + $0xf20] sm:$0xff]  ;;  %v1785_v58 = vld [vmem:[#allocation2 + $0xf30] sm:$0xff] }
 0x340   :  { %2142 = vmatprep.mubr.bf16.mxu0 %v4106_v22  ;;  %2228 = vmatprep.mubr.bf16.mxu1 %v4106_v22 }
 0x342   :  { %2113 = vmatpush1.bf16.msra.mxu0 %v1575_v59  ;;  %2199 = vmatpush1.bf16.msra.mxu1 %v1577_v60  ;;  %v1800_v59 = vld [vmem:[#allocation2 + $0xfa8] sm:$0xff]  ;;  %v1802_v60 = vld [vmem:[#allocation2 + $0xfb8] sm:$0xff] }
 0x343   :  { %2114 = vmatprep.subr.bf16.mxu0 %v1592_v61  ;;  %2200 = vmatprep.subr.bf16.mxu1 %v1594_v62  ;;  %v1799_v61 = vld [vmem:[#allocation2 + $0xfa0] sm:$0xff]  ;;  %v1801_v62 = vld [vmem:[#allocation2 + $0xfb0] sm:$0xff] }
 0x346   :  { %2115 = vmatpush1.bf16.msra.mxu0 %v1591_v63  ;;  %2201 = vmatpush1.bf16.msra.mxu1 %v1593_v1  ;;  %v1308_v63 = vld [vmem:[#allocation2 + $0x48] sm:$0xff]  ;;  %v1310_v1 = vld [vmem:[#allocation2 + $0x58] sm:$0xff] }
 0x347   :  { %2116 = vmatprep.subr.bf16.mxu0 %v1608_v2  ;;  %2202 = vmatprep.subr.bf16.mxu1 %v1610_v3  ;;  %v1307_v2 = vld [vmem:[#allocation2 + $0x40] sm:$0xff]  ;;  %v1309_v3 = vld [vmem:[#allocation2 + $0x50] sm:$0xff] }
 0x34a   :  { %2117 = vmatpush1.bf16.msra.mxu0 %v1607_v4  ;;  %2203 = vmatpush1.bf16.msra.mxu1 %v1609_v5  ;;  %v1324_v4 = vld [vmem:[#allocation2 + $0xc8] sm:$0xff]  ;;  %v1326_v5 = vld [vmem:[#allocation2 + $0xd8] sm:$0xff] }
 0x34b   :  { %2118 = vmatprep.subr.bf16.mxu0 %v1624_v6  ;;  %2204 = vmatprep.subr.bf16.mxu1 %v1626_v7  ;;  %v1323_v6 = vld [vmem:[#allocation2 + $0xc0] sm:$0xff]  ;;  %v1325_v7 = vld [vmem:[#allocation2 + $0xd0] sm:$0xff] }
 0x34e   :  { %2119 = vmatpush1.bf16.msra.mxu0 %v1623_v8  ;;  %2205 = vmatpush1.bf16.msra.mxu1 %v1625_v9  ;;  %v1340_v8 = vld [vmem:[#allocation2 + $0x148] sm:$0xff]  ;;  %v1342_v9 = vld [vmem:[#allocation2 + $0x158] sm:$0xff] }
 0x34f   :  { %2120 = vmatprep.subr.bf16.mxu0 %v1640_v10  ;;  %2206 = vmatprep.subr.bf16.mxu1 %v1642_v11  ;;  %v1339_v10 = vld [vmem:[#allocation2 + $0x140] sm:$0xff]  ;;  %v1341_v11 = vld [vmem:[#allocation2 + $0x150] sm:$0xff] }
 0x352   :  { %2121 = vmatpush1.bf16.msra.mxu0 %v1639_v12  ;;  %2207 = vmatpush1.bf16.msra.mxu1 %v1641_v13  ;;  %v1356_v12 = vld [vmem:[#allocation2 + $0x1c8] sm:$0xff]  ;;  %v1358_v13 = vld [vmem:[#allocation2 + $0x1d8] sm:$0xff] }
 0x353   :  { %2122 = vmatprep.subr.bf16.mxu0 %v1656_v23  ;;  %2208 = vmatprep.subr.bf16.mxu1 %v1658_v24  ;;  %v1355_v23 = vld [vmem:[#allocation2 + $0x1c0] sm:$0xff]  ;;  %v1357_v24 = vld [vmem:[#allocation2 + $0x1d0] sm:$0xff] }
 0x356   :  { %2123 = vmatpush1.bf16.msra.mxu0 %v1655_v25  ;;  %2209 = vmatpush1.bf16.msra.mxu1 %v1657_v26  ;;  %v1372_v25 = vld [vmem:[#allocation2 + $0x248] sm:$0xff]  ;;  %v1374_v26 = vld [vmem:[#allocation2 + $0x258] sm:$0xff] }
 0x357   :  { %2124 = vmatprep.subr.bf16.mxu0 %v1672_v27  ;;  %2210 = vmatprep.subr.bf16.mxu1 %v1674_v28  ;;  %v1371_v27 = vld [vmem:[#allocation2 + $0x240] sm:$0xff]  ;;  %v1373_v28 = vld [vmem:[#allocation2 + $0x250] sm:$0xff] }
 0x35a   :  { %2125 = vmatpush1.bf16.msra.mxu0 %v1671_v29  ;;  %2211 = vmatpush1.bf16.msra.mxu1 %v1673_v30  ;;  %v1388_v29 = vld [vmem:[#allocation2 + $0x2c8] sm:$0xff]  ;;  %v1390_v30 = vld [vmem:[#allocation2 + $0x2d8] sm:$0xff] }
 0x35b   :  { %2126 = vmatprep.subr.bf16.mxu0 %v1688_v31  ;;  %2212 = vmatprep.subr.bf16.mxu1 %v1690_v32  ;;  %v1387_v31 = vld [vmem:[#allocation2 + $0x2c0] sm:$0xff]  ;;  %v1389_v32 = vld [vmem:[#allocation2 + $0x2d0] sm:$0xff] }
 0x35e   :  { %2127 = vmatpush1.bf16.msra.mxu0 %v1687_v33  ;;  %2213 = vmatpush1.bf16.msra.mxu1 %v1689_v35  ;;  %v1404_v33 = vld [vmem:[#allocation2 + $0x348] sm:$0xff]  ;;  %v1406_v35 = vld [vmem:[#allocation2 + $0x358] sm:$0xff] }
 0x35f   :  { %2128 = vmatprep.subr.bf16.mxu0 %v1704_v36  ;;  %2214 = vmatprep.subr.bf16.mxu1 %v1706_v37  ;;  %v1403_v36 = vld [vmem:[#allocation2 + $0x340] sm:$0xff]  ;;  %v1405_v37 = vld [vmem:[#allocation2 + $0x350] sm:$0xff] }
 0x362   :  { %2129 = vmatpush1.bf16.msra.mxu0 %v1703_v38  ;;  %2215 = vmatpush1.bf16.msra.mxu1 %v1705_v40  ;;  %v1420_v38 = vld [vmem:[#allocation2 + $0x3c8] sm:$0xff]  ;;  %v1422_v40 = vld [vmem:[#allocation2 + $0x3d8] sm:$0xff] }
 0x363   :  { %2130 = vmatprep.subr.bf16.mxu0 %v1720_v41  ;;  %2216 = vmatprep.subr.bf16.mxu1 %v1722_v42  ;;  %v1419_v41 = vld [vmem:[#allocation2 + $0x3c0] sm:$0xff]  ;;  %v1421_v42 = vld [vmem:[#allocation2 + $0x3d0] sm:$0xff] }
 0x366   :  { %2131 = vmatpush1.bf16.msra.mxu0 %v1719_v43  ;;  %2217 = vmatpush1.bf16.msra.mxu1 %v1721_v44  ;;  %v1436_v43 = vld [vmem:[#allocation2 + $0x448] sm:$0xff]  ;;  %v1438_v44 = vld [vmem:[#allocation2 + $0x458] sm:$0xff] }
 0x367   :  { %2132 = vmatprep.subr.bf16.mxu0 %v1736_v45  ;;  %2218 = vmatprep.subr.bf16.mxu1 %v1738_v46  ;;  %v1435_v45 = vld [vmem:[#allocation2 + $0x440] sm:$0xff]  ;;  %v1437_v46 = vld [vmem:[#allocation2 + $0x450] sm:$0xff] }
 0x36a   :  { %2133 = vmatpush1.bf16.msra.mxu0 %v1735_v47  ;;  %2219 = vmatpush1.bf16.msra.mxu1 %v1737_v49  ;;  %v1452_v47 = vld [vmem:[#allocation2 + $0x4c8] sm:$0xff]  ;;  %v1454_v49 = vld [vmem:[#allocation2 + $0x4d8] sm:$0xff] }
 0x36b   :  { %2134 = vmatprep.subr.bf16.mxu0 %v1752_v50  ;;  %2220 = vmatprep.subr.bf16.mxu1 %v1754_v51  ;;  %v1451_v50 = vld [vmem:[#allocation2 + $0x4c0] sm:$0xff]  ;;  %v1453_v51 = vld [vmem:[#allocation2 + $0x4d0] sm:$0xff] }
 0x36e   :  { %2135 = vmatpush1.bf16.msra.mxu0 %v1751_v52  ;;  %2221 = vmatpush1.bf16.msra.mxu1 %v1753_v53  ;;  %v1468_v52 = vld [vmem:[#allocation2 + $0x548] sm:$0xff]  ;;  %v1470_v53 = vld [vmem:[#allocation2 + $0x558] sm:$0xff] }
 0x36f   :  { %2136 = vmatprep.subr.bf16.mxu0 %v1768_v54  ;;  %2222 = vmatprep.subr.bf16.mxu1 %v1770_v34  ;;  %v1467_v54 = vld [vmem:[#allocation2 + $0x540] sm:$0xff]  ;;  %v1469_v34 = vld [vmem:[#allocation2 + $0x550] sm:$0xff] }
 0x372   :  { %2137 = vmatpush1.bf16.msra.mxu0 %v1767_v39  ;;  %2223 = vmatpush1.bf16.msra.mxu1 %v1769_v48  ;;  %v1484_v39 = vld [vmem:[#allocation2 + $0x5c8] sm:$0xff]  ;;  %v1486_v48 = vld [vmem:[#allocation2 + $0x5d8] sm:$0xff] }
 0x373   :  { %2138 = vmatprep.subr.bf16.mxu0 %v1784_v55  ;;  %2224 = vmatprep.subr.bf16.mxu1 %v1786_v56  ;;  %v1483_v55 = vld [vmem:[#allocation2 + $0x5c0] sm:$0xff]  ;;  %v1485_v56 = vld [vmem:[#allocation2 + $0x5d0] sm:$0xff] }
 0x376   :  { %2139 = vmatpush1.bf16.msra.mxu0 %v1783_v57  ;;  %2225 = vmatpush1.bf16.msra.mxu1 %v1785_v58  ;;  %v1500_v57 = vld [vmem:[#allocation2 + $0x648] sm:$0xff]  ;;  %v1502_v58 = vld [vmem:[#allocation2 + $0x658] sm:$0xff] }
 0x377   :  { %2140 = vmatprep.subr.bf16.mxu0 %v1800_v59  ;;  %2226 = vmatprep.subr.bf16.mxu1 %v1802_v60  ;;  %v1499_v59 = vld [vmem:[#allocation2 + $0x640] sm:$0xff]  ;;  %v1501_v60 = vld [vmem:[#allocation2 + $0x650] sm:$0xff] }
 0x37a   :  { %2141 = vmatpush1.bf16.msra.mxu0 %v1799_v61  ;;  %2227 = vmatpush1.bf16.msra.mxu1 %v1801_v62  ;;  %v1516_v61 = vld [vmem:[#allocation2 + $0x6c8] sm:$0xff]  ;;  %v1518_v62 = vld [vmem:[#allocation2 + $0x6d8] sm:$0xff] }
 0x37b   :  { %2239 = vmatprep.subr.bf16.mxu0 %v1308_v63  ;;  %2325 = vmatprep.subr.bf16.mxu1 %v1310_v1  ;;  %v1515_v63 = vld [vmem:[#allocation2 + $0x6c0] sm:$0xff]  ;;  %v1517_v1 = vld [vmem:[#allocation2 + $0x6d0] sm:$0xff] }
 0x37d   :  { %2143 = vmatmul.mubr.bf16.vlgmr.msra.gmra.mrb[12].mxu0 %v4100_v20  ;;  %2229 = vmatmul.mubr.bf16.vlgmr.msra.gmra.mrb[12].mxu1 %v4100_v20 }
 0x37e   :  { %2240 = vmatpush1.bf16.msra.mxu0 %v1307_v2  ;;  %2326 = vmatpush1.bf16.msra.mxu1 %v1309_v3  ;;  %v1532_v2 = vld [vmem:[#allocation2 + $0x748] sm:$0xff]  ;;  %v1534_v3 = vld [vmem:[#allocation2 + $0x758] sm:$0xff] }
 0x37f   :  { %2241 = vmatprep.subr.bf16.mxu0 %v1324_v4  ;;  %2327 = vmatprep.subr.bf16.mxu1 %v1326_v5  ;;  %v1531_v4 = vld [vmem:[#allocation2 + $0x740] sm:$0xff]  ;;  %v1533_v5 = vld [vmem:[#allocation2 + $0x750] sm:$0xff] }
 0x380   :  { %2271 = vmatprep.mubr.bf16.mxu0 %v4103_v21  ;;  %2357 = vmatprep.mubr.bf16.mxu1 %v4103_v21 }
 0x382   :  { %2242 = vmatpush1.bf16.msra.mxu0 %v1323_v6  ;;  %2328 = vmatpush1.bf16.msra.mxu1 %v1325_v7  ;;  %v1548_v6 = vld [vmem:[#allocation2 + $0x7c8] sm:$0xff]  ;;  %v1550_v7 = vld [vmem:[#allocation2 + $0x7d8] sm:$0xff] }
 0x383   :  { %2243 = vmatprep.subr.bf16.mxu0 %v1340_v8  ;;  %2329 = vmatprep.subr.bf16.mxu1 %v1342_v9  ;;  %v1547_v8 = vld [vmem:[#allocation2 + $0x7c0] sm:$0xff]  ;;  %v1549_v9 = vld [vmem:[#allocation2 + $0x7d0] sm:$0xff] }
 0x386   :  { %2244 = vmatpush1.bf16.msra.mxu0 %v1339_v10  ;;  %2330 = vmatpush1.bf16.msra.mxu1 %v1341_v11  ;;  %v1564_v10 = vld [vmem:[#allocation2 + $0x848] sm:$0xff]  ;;  %v1566_v11 = vld [vmem:[#allocation2 + $0x858] sm:$0xff] }
 0x387   :  { %2245 = vmatprep.subr.bf16.mxu0 %v1356_v12  ;;  %2331 = vmatprep.subr.bf16.mxu1 %v1358_v13  ;;  %v1563_v12 = vld [vmem:[#allocation2 + $0x840] sm:$0xff]  ;;  %v1565_v13 = vld [vmem:[#allocation2 + $0x850] sm:$0xff] }
 0x38a   :  { %2246 = vmatpush1.bf16.msra.mxu0 %v1355_v23  ;;  %2332 = vmatpush1.bf16.msra.mxu1 %v1357_v24  ;;  %v1580_v23 = vld [vmem:[#allocation2 + $0x8c8] sm:$0xff]  ;;  %v1582_v24 = vld [vmem:[#allocation2 + $0x8d8] sm:$0xff] }
 0x38b   :  { %2247 = vmatprep.subr.bf16.mxu0 %v1372_v25  ;;  %2333 = vmatprep.subr.bf16.mxu1 %v1374_v26  ;;  %v1579_v25 = vld [vmem:[#allocation2 + $0x8c0] sm:$0xff]  ;;  %v1581_v26 = vld [vmem:[#allocation2 + $0x8d0] sm:$0xff] }
 0x38e   :  { %2248 = vmatpush1.bf16.msra.mxu0 %v1371_v27  ;;  %2334 = vmatpush1.bf16.msra.mxu1 %v1373_v28  ;;  %v1596_v27 = vld [vmem:[#allocation2 + $0x948] sm:$0xff]  ;;  %v1598_v28 = vld [vmem:[#allocation2 + $0x958] sm:$0xff] }
 0x38f   :  { %2249 = vmatprep.subr.bf16.mxu0 %v1388_v29  ;;  %2335 = vmatprep.subr.bf16.mxu1 %v1390_v30  ;;  %v1595_v29 = vld [vmem:[#allocation2 + $0x940] sm:$0xff]  ;;  %v1597_v30 = vld [vmem:[#allocation2 + $0x950] sm:$0xff] }
 0x392   :  { %2250 = vmatpush1.bf16.msra.mxu0 %v1387_v31  ;;  %2336 = vmatpush1.bf16.msra.mxu1 %v1389_v32  ;;  %v1612_v31 = vld [vmem:[#allocation2 + $0x9c8] sm:$0xff]  ;;  %v1614_v32 = vld [vmem:[#allocation2 + $0x9d8] sm:$0xff] }
 0x393   :  { %2251 = vmatprep.subr.bf16.mxu0 %v1404_v33  ;;  %2337 = vmatprep.subr.bf16.mxu1 %v1406_v35  ;;  %v1611_v33 = vld [vmem:[#allocation2 + $0x9c0] sm:$0xff]  ;;  %v1613_v35 = vld [vmem:[#allocation2 + $0x9d0] sm:$0xff] }
 0x396   :  { %2252 = vmatpush1.bf16.msra.mxu0 %v1403_v36  ;;  %2338 = vmatpush1.bf16.msra.mxu1 %v1405_v37  ;;  %v1628_v36 = vld [vmem:[#allocation2 + $0xa48] sm:$0xff]  ;;  %v1630_v37 = vld [vmem:[#allocation2 + $0xa58] sm:$0xff] }
 0x397   :  { %2253 = vmatprep.subr.bf16.mxu0 %v1420_v38  ;;  %2339 = vmatprep.subr.bf16.mxu1 %v1422_v40  ;;  %v1627_v38 = vld [vmem:[#allocation2 + $0xa40] sm:$0xff]  ;;  %v1629_v40 = vld [vmem:[#allocation2 + $0xa50] sm:$0xff] }
 0x39a   :  { %2254 = vmatpush1.bf16.msra.mxu0 %v1419_v41  ;;  %2340 = vmatpush1.bf16.msra.mxu1 %v1421_v42  ;;  %v4130_v41 = vld [vmem:[#allocation12] sm:$0xff] }
 0x39b   :  { %2255 = vmatprep.subr.bf16.mxu0 %v1436_v43  ;;  %2341 = vmatprep.subr.bf16.mxu1 %v1438_v44  ;;  %v1644_v42 = vld [vmem:[#allocation2 + $0xac8] sm:$0xff]  ;;  %v1646_v43 = vld [vmem:[#allocation2 + $0xad8] sm:$0xff]  ;;  %v1818_v44 = vrot.slane %v4130_v41, %v4052_v15 }
 0x39e   :  { %2256 = vmatpush1.bf16.msra.mxu0 %v1435_v45  ;;  %2342 = vmatpush1.bf16.msra.mxu1 %v1437_v46  ;;  %v1826_v45 = vrot.slane %v4130_v41, %v4058_v18  ;;  %v1643_v46 = vld [vmem:[#allocation2 + $0xac0] sm:$0xff] }
 0x39f   :  { %2257 = vmatprep.subr.bf16.mxu0 %v1452_v47  ;;  %2343 = vmatprep.subr.bf16.mxu1 %v1454_v49  ;;  %v1645_v47 = vld [vmem:[#allocation2 + $0xad0] sm:$0xff] }
 0x3a2   :  { %2258 = vmatpush1.bf16.msra.mxu0 %v1451_v50  ;;  %2344 = vmatpush1.bf16.msra.mxu1 %v1453_v51  ;;  %v1822_v51 = vrot.slane %v4130_v41, %v4055_v17 }
 0x3a3   :  { %2259 = vmatprep.subr.bf16.mxu0 %v1468_v52  ;;  %2345 = vmatprep.subr.bf16.mxu1 %v1470_v53  ;;  %v1830_v52 = vrot.slane %v4130_v41, %v4061_v19  ;;  %v1660_v53 = vld [vmem:[#allocation2 + $0xb48] sm:$0xff] }
 0x3a6   :  { %2260 = vmatpush1.bf16.msra.mxu0 %v1467_v54  ;;  %2346 = vmatpush1.bf16.msra.mxu1 %v1469_v34  ;;  %v1662_v54 = vld [vmem:[#allocation2 + $0xb58] sm:$0xff] }
 0x3a7   :  { %2261 = vmatprep.subr.bf16.mxu0 %v1484_v39  ;;  %2347 = vmatprep.subr.bf16.mxu1 %v1486_v48 }
 0x3aa   :  { %2262 = vmatpush1.bf16.msra.mxu0 %v1483_v55  ;;  %2348 = vmatpush1.bf16.msra.mxu1 %v1485_v56 }
 0x3ab   :  { %2263 = vmatprep.subr.bf16.mxu0 %v1500_v57  ;;  %2349 = vmatprep.subr.bf16.mxu1 %v1502_v58 }
 0x3ae   :  { %2264 = vmatpush1.bf16.msra.mxu0 %v1499_v59  ;;  %2350 = vmatpush1.bf16.msra.mxu1 %v1501_v60 }
 0x3af   :  { %2265 = vmatprep.subr.bf16.mxu0 %v1516_v61  ;;  %2351 = vmatprep.subr.bf16.mxu1 %v1518_v62  ;;  %v1659_v62 = vld [vmem:[#allocation2 + $0xb40] sm:$0xff] }
 0x3b2   :  { %2266 = vmatpush1.bf16.msra.mxu0 %v1515_v63  ;;  %2352 = vmatpush1.bf16.msra.mxu1 %v1517_v1  ;;  %v1661_v63 = vld [vmem:[#allocation2 + $0xb50] sm:$0xff] }
 0x3b3   :  { %2267 = vmatprep.subr.bf16.mxu0 %v1532_v2  ;;  %2353 = vmatprep.subr.bf16.mxu1 %v1534_v3 }
 0x3b6   :  { %2268 = vmatpush1.bf16.msra.mxu0 %v1531_v4  ;;  %2354 = vmatpush1.bf16.msra.mxu1 %v1533_v5  ;;  %v1676_v5 = vld [vmem:[#allocation2 + $0xbc8] sm:$0xff] }
 0x3b7   :  { %2269 = vmatprep.subr.bf16.mxu0 %v1548_v6  ;;  %2355 = vmatprep.subr.bf16.mxu1 %v1550_v7  ;;  %v1678_v6 = vld [vmem:[#allocation2 + $0xbd8] sm:$0xff] }
 0x3ba   :  { %2270 = vmatpush1.bf16.msra.mxu0 %v1547_v8  ;;  %2356 = vmatpush1.bf16.msra.mxu1 %v1549_v9 }
 0x3bb   :  { %2282 = vmatprep.subr.bf16.mxu0 %v1564_v10  ;;  %2368 = vmatprep.subr.bf16.mxu1 %v1566_v11 }
 0x3bd   :  { %2272 = vmatmul.mubr.bf16.vlgmr.msra.gmra.mrb[16].mxu0 %v4097_v16  ;;  %2358 = vmatmul.mubr.bf16.vlgmr.msra.gmra.mrb[16].mxu1 %v4097_v16 }
 0x3be   :  { %2283 = vmatpush1.bf16.msra.mxu0 %v1563_v12  ;;  %2369 = vmatpush1.bf16.msra.mxu1 %v1565_v13  ;;  %v1675_v13 = vld [vmem:[#allocation2 + $0xbc0] sm:$0xff] }
 0x3bf   :  { %2284 = vmatprep.subr.bf16.mxu0 %v1580_v23  ;;  %2370 = vmatprep.subr.bf16.mxu1 %v1582_v24  ;;  %v1677_v23 = vld [vmem:[#allocation2 + $0xbd0] sm:$0xff] }
 0x3c0   :  { %2314 = vmatprep.mubr.bf16.mxu0 %v4106_v22  ;;  %2400 = vmatprep.mubr.bf16.mxu1 %v4106_v22 }
 0x3c2   :  { %2285 = vmatpush1.bf16.msra.mxu0 %v1579_v25  ;;  %2371 = vmatpush1.bf16.msra.mxu1 %v1581_v26  ;;  %v1692_v26 = vld [vmem:[#allocation2 + $0xc48] sm:$0xff] }
 0x3c3   :  { %2286 = vmatprep.subr.bf16.mxu0 %v1596_v27  ;;  %2372 = vmatprep.subr.bf16.mxu1 %v1598_v28  ;;  %v1694_v27 = vld [vmem:[#allocation2 + $0xc58] sm:$0xff]  ;;  %v1691_v28 = vld [vmem:[#allocation2 + $0xc40] sm:$0xff] }
 0x3c6   :  { %2287 = vmatpush1.bf16.msra.mxu0 %v1595_v29  ;;  %2373 = vmatpush1.bf16.msra.mxu1 %v1597_v30  ;;  %v1693_v29 = vld [vmem:[#allocation2 + $0xc50] sm:$0xff]  ;;  %v1708_v30 = vld [vmem:[#allocation2 + $0xcc8] sm:$0xff] }
 0x3c7   :  { %2288 = vmatprep.subr.bf16.mxu0 %v1612_v31  ;;  %2374 = vmatprep.subr.bf16.mxu1 %v1614_v32  ;;  %v1710_v31 = vld [vmem:[#allocation2 + $0xcd8] sm:$0xff]  ;;  %v1707_v32 = vld [vmem:[#allocation2 + $0xcc0] sm:$0xff] }
 0x3ca   :  { %2289 = vmatpush1.bf16.msra.mxu0 %v1611_v33  ;;  %2375 = vmatpush1.bf16.msra.mxu1 %v1613_v35  ;;  %v1709_v33 = vld [vmem:[#allocation2 + $0xcd0] sm:$0xff]  ;;  %v1724_v35 = vld [vmem:[#allocation2 + $0xd48] sm:$0xff] }
 0x3cb   :  { %2290 = vmatprep.subr.bf16.mxu0 %v1628_v36  ;;  %2376 = vmatprep.subr.bf16.mxu1 %v1630_v37  ;;  %v1726_v36 = vld [vmem:[#allocation2 + $0xd58] sm:$0xff]  ;;  %v1723_v37 = vld [vmem:[#allocation2 + $0xd40] sm:$0xff] }
 0x3ce   :  { %2291 = vmatpush1.bf16.msra.mxu0 %v1627_v38  ;;  %2377 = vmatpush1.bf16.msra.mxu1 %v1629_v40  ;;  %v1725_v38 = vld [vmem:[#allocation2 + $0xd50] sm:$0xff]  ;;  %v1740_v40 = vld [vmem:[#allocation2 + $0xdc8] sm:$0xff] }
 0x3cf   :  { %2292 = vmatprep.subr.bf16.mxu0 %v1644_v42  ;;  %2378 = vmatprep.subr.bf16.mxu1 %v1646_v43  ;;  %v1742_v42 = vld [vmem:[#allocation2 + $0xdd8] sm:$0xff]  ;;  %v1739_v43 = vld [vmem:[#allocation2 + $0xdc0] sm:$0xff] }
 0x3d0   :  { %v1972_v49 = vpop.f32.mrb[8].mxu0  ;;  %v2058_v50 = vpop.f32.mrb[8].mxu1 }
 0x3d1   :  { %v1974_v34 = vpop.f32.mrb[9].mxu0  ;;  %v2060_v39 = vpop.f32.mrb[9].mxu1  ;;  %v3433_v48 = vadd.f32 %v1972_v49, %v1818_v44  ;;  %v3437_v57 = vadd.f32 %v2058_v50, %v1826_v45  ;;  %v1757_v49 = vld [vmem:[#allocation2 + $0xe50] sm:$0xff]  ;;  %v1772_v50 = vld [vmem:[#allocation2 + $0xec8] sm:$0xff] }
 0x3d2   :  { %v1976_v55 = vpop.f32.mrb[10].mxu0  ;;  %v2062_v56 = vpop.f32.mrb[10].mxu1  ;;  %2293 = vmatpush1.bf16.msra.mxu0 %v1643_v46  ;;  %2379 = vmatpush1.bf16.msra.mxu1 %v1645_v47  ;;  %v3434_v1 = vadd.f32 %v1974_v34, %v1822_v51  ;;  %v3438_v2 = vadd.f32 %v2060_v39, %v1830_v52  ;;  %v1758_v46 = vld [vmem:[#allocation2 + $0xe58] sm:$0xff]  ;;  %v1755_v47 = vld [vmem:[#allocation2 + $0xe40] sm:$0xff] }
 0x3d3   :  { %v3435_v58 = vadd.f32 %v1976_v55, %v1818_v44  ;;  %v3439_v59 = vadd.f32 %v2062_v56, %v1826_v45  ;;  %v1978_v60 = vpop.f32.mrb[11].mxu0  ;;  %v2064_v61 = vpop.f32.mrb[11].mxu1  ;;  %2294 = vmatprep.subr.bf16.mxu0 %v1660_v53  ;;  %2380 = vmatprep.subr.bf16.mxu1 %v1662_v54  ;;  %v1741_v44 = vld [vmem:[#allocation2 + $0xdd0] sm:$0xff]  ;;  %v1756_v45 = vld [vmem:[#allocation2 + $0xe48] sm:$0xff]  ;;  %v1790_v34 = vld [vmem:[#allocation2 + $0xf58] sm:$0xff] }
 0x3d4   :  { %v3436_v3 = vadd.f32 %v1978_v60, %v1822_v51  ;;  %v3440_v4 = vadd.f32 %v2064_v61, %v1830_v52  ;;  %v1774_v51 = vld [vmem:[#allocation2 + $0xed8] sm:$0xff]  ;;  %v1771_v52 = vld [vmem:[#allocation2 + $0xec0] sm:$0xff]  ;;  %v1773_v53 = vld [vmem:[#allocation2 + $0xed0] sm:$0xff] }
 0x3d5   :  { %v2583_v7 = vpack.c.bf16 %v3435_v58, %v3433_v48  ;;  %v2585_v8 = vpack.c.bf16 %v3439_v59, %v3437_v57  ;;  %v1788_v54 = vld [vmem:[#allocation2 + $0xf48] sm:$0xff]  ;;  %v1787_v39 = vld [vmem:[#allocation2 + $0xf40] sm:$0xff]  ;;  %v1789_v48 = vld [vmem:[#allocation2 + $0xf50] sm:$0xff] }
 0x3d6   :  { %v2584_v9 = vpack.c.bf16 %v3436_v3, %v3434_v1  ;;  %v2586_v10 = vpack.c.bf16 %v3440_v4, %v3438_v2  ;;  %2295 = vmatpush1.bf16.msra.mxu0 %v1659_v62  ;;  %2381 = vmatpush1.bf16.msra.mxu1 %v1661_v63  ;;  %v1804_v55 = vld [vmem:[#allocation2 + $0xfc8] sm:$0xff]  ;;  %v1806_v56 = vld [vmem:[#allocation2 + $0xfd8] sm:$0xff]  ;;  %v1803_v57 = vld [vmem:[#allocation2 + $0xfc0] sm:$0xff] }
 0x3d7   :  { %v4141_v11 = vmax.bf16 %v3904_v0, %v2583_v7  ;;  %v4144_v12 = vmax.bf16 %v3904_v0, %v2585_v8  ;;  %2296 = vmatprep.subr.bf16.mxu0 %v1676_v5  ;;  %2382 = vmatprep.subr.bf16.mxu1 %v1678_v6  ;;  %v1805_v58 = vld [vmem:[#allocation2 + $0xfd0] sm:$0xff]  ;;  %v1312_v59 = vld [vmem:[#allocation2 + $0x68] sm:$0xff]  ;;  %v1314_v60 = vld [vmem:[#allocation2 + $0x78] sm:$0xff] }
 0x3d8   :  { %v4147_v24 = vmax.bf16 %v3904_v0, %v2584_v9  ;;  %v4150_v25 = vmax.bf16 %v3904_v0, %v2586_v10  ;;  %v1311_v61 = vld [vmem:[#allocation2 + $0x60] sm:$0xff]  ;;  %v1313_v62 = vld [vmem:[#allocation2 + $0x70] sm:$0xff]  ;;  %v1328_v63 = vld [vmem:[#allocation2 + $0xe8] sm:$0xff] }
 0x3d9   :  { %v1330_v1 = vld [vmem:[#allocation2 + $0xf8] sm:$0xff]  ;;  %v1327_v2 = vld [vmem:[#allocation2 + $0xe0] sm:$0xff]  ;;  %v1329_v3 = vld [vmem:[#allocation2 + $0xf0] sm:$0xff] }
 0x3da   :  { %2297 = vmatpush1.bf16.msra.mxu0 %v1675_v13  ;;  %2383 = vmatpush1.bf16.msra.mxu1 %v1677_v23  ;;  %v1344_v4 = vld [vmem:[#allocation2 + $0x168] sm:$0xff]  ;;  %v1346_v5 = vld [vmem:[#allocation2 + $0x178] sm:$0xff]  ;;  %v1343_v6 = vld [vmem:[#allocation2 + $0x160] sm:$0xff] }
 0x3db   :  { %2298 = vmatprep.subr.bf16.mxu0 %v1692_v26  ;;  %2384 = vmatprep.subr.bf16.mxu1 %v1694_v27  ;;  %v1345_v7 = vld [vmem:[#allocation2 + $0x170] sm:$0xff]  ;;  %v1360_v8 = vld [vmem:[#allocation2 + $0x1e8] sm:$0xff]  ;;  %v1362_v9 = vld [vmem:[#allocation2 + $0x1f8] sm:$0xff] }
 0x3dc   :  { %v1359_v10 = vld [vmem:[#allocation2 + $0x1e0] sm:$0xff]  ;;  %v1361_v13 = vld [vmem:[#allocation2 + $0x1f0] sm:$0xff]  ;;  %v1376_v23 = vld [vmem:[#allocation2 + $0x268] sm:$0xff] }
 0x3dd   :  { %v1378_v26 = vld [vmem:[#allocation2 + $0x278] sm:$0xff]  ;;  %v1377_v27 = vld [vmem:[#allocation2 + $0x270] sm:$0xff] }
 0x3de   :  { %2299 = vmatpush1.bf16.msra.mxu0 %v1691_v28  ;;  %2385 = vmatpush1.bf16.msra.mxu1 %v1693_v29  ;;  %v1392_v28 = vld [vmem:[#allocation2 + $0x2e8] sm:$0xff]  ;;  %v1394_v29 = vld [vmem:[#allocation2 + $0x2f8] sm:$0xff] }
 0x3df   :  { %2300 = vmatprep.subr.bf16.mxu0 %v1708_v30  ;;  %2386 = vmatprep.subr.bf16.mxu1 %v1710_v31  ;;  %v1391_v30 = vld [vmem:[#allocation2 + $0x2e0] sm:$0xff]  ;;  %v1393_v31 = vld [vmem:[#allocation2 + $0x2f0] sm:$0xff] }
 0x3e2   :  { %2301 = vmatpush1.bf16.msra.mxu0 %v1707_v32  ;;  %2387 = vmatpush1.bf16.msra.mxu1 %v1709_v33  ;;  %v1408_v32 = vld [vmem:[#allocation2 + $0x368] sm:$0xff]  ;;  %v1410_v33 = vld [vmem:[#allocation2 + $0x378] sm:$0xff] }
 0x3e3   :  { %2302 = vmatprep.subr.bf16.mxu0 %v1724_v35  ;;  %2388 = vmatprep.subr.bf16.mxu1 %v1726_v36  ;;  %v1407_v35 = vld [vmem:[#allocation2 + $0x360] sm:$0xff]  ;;  %v1409_v36 = vld [vmem:[#allocation2 + $0x370] sm:$0xff] }
 0x3e6   :  { %2303 = vmatpush1.bf16.msra.mxu0 %v1723_v37  ;;  %2389 = vmatpush1.bf16.msra.mxu1 %v1725_v38  ;;  %v1424_v37 = vld [vmem:[#allocation2 + $0x3e8] sm:$0xff]  ;;  %v1426_v38 = vld [vmem:[#allocation2 + $0x3f8] sm:$0xff] }
 0x3e7   :  { %2304 = vmatprep.subr.bf16.mxu0 %v1740_v40  ;;  %2390 = vmatprep.subr.bf16.mxu1 %v1742_v42  ;;  %v1423_v40 = vld [vmem:[#allocation2 + $0x3e0] sm:$0xff]  ;;  %v1425_v42 = vld [vmem:[#allocation2 + $0x3f0] sm:$0xff] }
 0x3ea   :  { %2305 = vmatpush1.bf16.msra.mxu0 %v1739_v43  ;;  %2391 = vmatpush1.bf16.msra.mxu1 %v1741_v44  ;;  %v1440_v43 = vld [vmem:[#allocation2 + $0x468] sm:$0xff]  ;;  %v1442_v44 = vld [vmem:[#allocation2 + $0x478] sm:$0xff] }
 0x3eb   :  { %2306 = vmatprep.subr.bf16.mxu0 %v1756_v45  ;;  %2392 = vmatprep.subr.bf16.mxu1 %v1758_v46  ;;  %v1439_v45 = vld [vmem:[#allocation2 + $0x460] sm:$0xff]  ;;  %v1441_v46 = vld [vmem:[#allocation2 + $0x470] sm:$0xff] }
 0x3ee   :  { %2307 = vmatpush1.bf16.msra.mxu0 %v1755_v47  ;;  %2393 = vmatpush1.bf16.msra.mxu1 %v1757_v49  ;;  %v1456_v47 = vld [vmem:[#allocation2 + $0x4e8] sm:$0xff]  ;;  %v1458_v49 = vld [vmem:[#allocation2 + $0x4f8] sm:$0xff] }
 0x3ef   :  { %2308 = vmatprep.subr.bf16.mxu0 %v1772_v50  ;;  %2394 = vmatprep.subr.bf16.mxu1 %v1774_v51  ;;  %v1455_v50 = vld [vmem:[#allocation2 + $0x4e0] sm:$0xff]  ;;  %v1457_v51 = vld [vmem:[#allocation2 + $0x4f0] sm:$0xff] }
 0x3f2   :  { %2309 = vmatpush1.bf16.msra.mxu0 %v1771_v52  ;;  %2395 = vmatpush1.bf16.msra.mxu1 %v1773_v53  ;;  %v1472_v52 = vld [vmem:[#allocation2 + $0x568] sm:$0xff]  ;;  %v1474_v53 = vld [vmem:[#allocation2 + $0x578] sm:$0xff] }
 0x3f3   :  { %2310 = vmatprep.subr.bf16.mxu0 %v1788_v54  ;;  %2396 = vmatprep.subr.bf16.mxu1 %v1790_v34  ;;  %v1471_v54 = vld [vmem:[#allocation2 + $0x560] sm:$0xff]  ;;  %v1473_v34 = vld [vmem:[#allocation2 + $0x570] sm:$0xff] }
 0x3f6   :  { %2311 = vmatpush1.bf16.msra.mxu0 %v1787_v39  ;;  %2397 = vmatpush1.bf16.msra.mxu1 %v1789_v48  ;;  %v1488_v39 = vld [vmem:[#allocation2 + $0x5e8] sm:$0xff]  ;;  %v1490_v48 = vld [vmem:[#allocation2 + $0x5f8] sm:$0xff] }
 0x3f7   :  { %2312 = vmatprep.subr.bf16.mxu0 %v1804_v55  ;;  %2398 = vmatprep.subr.bf16.mxu1 %v1806_v56  ;;  %v1487_v55 = vld [vmem:[#allocation2 + $0x5e0] sm:$0xff]  ;;  %v1489_v56 = vld [vmem:[#allocation2 + $0x5f0] sm:$0xff] }
 0x3fa   :  { %2313 = vmatpush1.bf16.msra.mxu0 %v1803_v57  ;;  %2399 = vmatpush1.bf16.msra.mxu1 %v1805_v58  ;;  %v1504_v57 = vld [vmem:[#allocation2 + $0x668] sm:$0xff]  ;;  %v1506_v58 = vld [vmem:[#allocation2 + $0x678] sm:$0xff] }
 0x3fb   :  { %2411 = vmatprep.subr.bf16.mxu0 %v1312_v59  ;;  %2497 = vmatprep.subr.bf16.mxu1 %v1314_v60  ;;  %v1503_v59 = vld [vmem:[#allocation2 + $0x660] sm:$0xff]  ;;  %v1505_v60 = vld [vmem:[#allocation2 + $0x670] sm:$0xff] }
 0x3fd   :  { %2315 = vmatmul.mubr.bf16.vlgmr.msra.gmra.mrb[16].mxu0 %v4100_v20  ;;  %2401 = vmatmul.mubr.bf16.vlgmr.msra.gmra.mrb[16].mxu1 %v4100_v20 }
 0x3fe   :  { %2412 = vmatpush1.bf16.msra.mxu0 %v1311_v61  ;;  %2498 = vmatpush1.bf16.msra.mxu1 %v1313_v62  ;;  %v1520_v61 = vld [vmem:[#allocation2 + $0x6e8] sm:$0xff]  ;;  %v1522_v62 = vld [vmem:[#allocation2 + $0x6f8] sm:$0xff] }
 0x3ff   :  { %2413 = vmatprep.subr.bf16.mxu0 %v1328_v63  ;;  %2499 = vmatprep.subr.bf16.mxu1 %v1330_v1  ;;  %v1519_v63 = vld [vmem:[#allocation2 + $0x6e0] sm:$0xff]  ;;  %v1521_v1 = vld [vmem:[#allocation2 + $0x6f0] sm:$0xff] }
 0x400   :  { %2443 = vmatprep.mubr.bf16.mxu0 %v4103_v21  ;;  %2529 = vmatprep.mubr.bf16.mxu1 %v4103_v21  ;;  %v1375_v21 = vld [vmem:[#allocation2 + $0x260] sm:$0xff] }
 0x402   :  { %2414 = vmatpush1.bf16.msra.mxu0 %v1327_v2  ;;  %2500 = vmatpush1.bf16.msra.mxu1 %v1329_v3  ;;  %v1536_v2 = vld [vmem:[#allocation2 + $0x768] sm:$0xff]  ;;  %v1538_v3 = vld [vmem:[#allocation2 + $0x778] sm:$0xff] }
 0x403   :  { %2415 = vmatprep.subr.bf16.mxu0 %v1344_v4  ;;  %2501 = vmatprep.subr.bf16.mxu1 %v1346_v5  ;;  %v1535_v4 = vld [vmem:[#allocation2 + $0x760] sm:$0xff]  ;;  %v1537_v5 = vld [vmem:[#allocation2 + $0x770] sm:$0xff] }
 0x406   :  { %2416 = vmatpush1.bf16.msra.mxu0 %v1343_v6  ;;  %2502 = vmatpush1.bf16.msra.mxu1 %v1345_v7  ;;  %v1552_v6 = vld [vmem:[#allocation2 + $0x7e8] sm:$0xff]  ;;  %v1554_v7 = vld [vmem:[#allocation2 + $0x7f8] sm:$0xff] }
 0x407   :  { %2417 = vmatprep.subr.bf16.mxu0 %v1360_v8  ;;  %2503 = vmatprep.subr.bf16.mxu1 %v1362_v9  ;;  %v1551_v8 = vld [vmem:[#allocation2 + $0x7e0] sm:$0xff]  ;;  %v1553_v9 = vld [vmem:[#allocation2 + $0x7f0] sm:$0xff] }
 0x40a   :  { %2418 = vmatpush1.bf16.msra.mxu0 %v1359_v10  ;;  %2504 = vmatpush1.bf16.msra.mxu1 %v1361_v13  ;;  %v1568_v10 = vld [vmem:[#allocation2 + $0x868] sm:$0xff]  ;;  %v1570_v13 = vld [vmem:[#allocation2 + $0x878] sm:$0xff] }
 0x40b   :  { %2419 = vmatprep.subr.bf16.mxu0 %v1376_v23  ;;  %2505 = vmatprep.subr.bf16.mxu1 %v1378_v26  ;;  %v1567_v23 = vld [vmem:[#allocation2 + $0x860] sm:$0xff]  ;;  %v1569_v26 = vld [vmem:[#allocation2 + $0x870] sm:$0xff] }
 0x40e   :  { %2420 = vmatpush1.bf16.msra.mxu0 %v1375_v21  ;;  %2506 = vmatpush1.bf16.msra.mxu1 %v1377_v27  ;;  %v1584_v21 = vld [vmem:[#allocation2 + $0x8e8] sm:$0xff]  ;;  %v1586_v27 = vld [vmem:[#allocation2 + $0x8f8] sm:$0xff] }
 0x40f   :  { %2421 = vmatprep.subr.bf16.mxu0 %v1392_v28  ;;  %2507 = vmatprep.subr.bf16.mxu1 %v1394_v29  ;;  %v1583_v28 = vld [vmem:[#allocation2 + $0x8e0] sm:$0xff]  ;;  %v1585_v29 = vld [vmem:[#allocation2 + $0x8f0] sm:$0xff] }
 0x412   :  { %2422 = vmatpush1.bf16.msra.mxu0 %v1391_v30  ;;  %2508 = vmatpush1.bf16.msra.mxu1 %v1393_v31  ;;  %v1600_v30 = vld [vmem:[#allocation2 + $0x968] sm:$0xff]  ;;  %v1602_v31 = vld [vmem:[#allocation2 + $0x978] sm:$0xff] }
 0x413   :  { %2423 = vmatprep.subr.bf16.mxu0 %v1408_v32  ;;  %2509 = vmatprep.subr.bf16.mxu1 %v1410_v33  ;;  %v1599_v32 = vld [vmem:[#allocation2 + $0x960] sm:$0xff]  ;;  %v1601_v33 = vld [vmem:[#allocation2 + $0x970] sm:$0xff] }
 0x416   :  { %2424 = vmatpush1.bf16.msra.mxu0 %v1407_v35  ;;  %2510 = vmatpush1.bf16.msra.mxu1 %v1409_v36  ;;  %v1616_v35 = vld [vmem:[#allocation2 + $0x9e8] sm:$0xff]  ;;  %v1615_v36 = vld [vmem:[#allocation2 + $0x9e0] sm:$0xff] }
 0x417   :  { %2425 = vmatprep.subr.bf16.mxu0 %v1424_v37  ;;  %2511 = vmatprep.subr.bf16.mxu1 %v1426_v38  ;;  %v1617_v37 = vld [vmem:[#allocation2 + $0x9f0] sm:$0xff]  ;;  %v1632_v38 = vld [vmem:[#allocation2 + $0xa68] sm:$0xff] }
 0x41a   :  { %2426 = vmatpush1.bf16.msra.mxu0 %v1423_v40  ;;  %2512 = vmatpush1.bf16.msra.mxu1 %v1425_v42  ;;  %v1634_v40 = vld [vmem:[#allocation2 + $0xa78] sm:$0xff]  ;;  %v1631_v42 = vld [vmem:[#allocation2 + $0xa60] sm:$0xff] }
 0x41b   :  { %2427 = vmatprep.subr.bf16.mxu0 %v1440_v43  ;;  %2513 = vmatprep.subr.bf16.mxu1 %v1442_v44  ;;  %v1633_v43 = vld [vmem:[#allocation2 + $0xa70] sm:$0xff]  ;;  %v1841_v44 = vsub.s32 6, %v4049_v14 }
 0x41e   :  { %2428 = vmatpush1.bf16.msra.mxu0 %v1439_v45  ;;  %2514 = vmatpush1.bf16.msra.mxu1 %v1441_v46  ;;  %v1837_v45 = vsub.s32 5, %v4049_v14  ;;  %v1845_v46 = vsub.s32 7, %v4049_v14 }
 0x41f   :  { %2429 = vmatprep.subr.bf16.mxu0 %v1456_v47  ;;  %2515 = vmatprep.subr.bf16.mxu1 %v1458_v49  ;;  %v1648_v47 = vld [vmem:[#allocation2 + $0xae8] sm:$0xff]  ;;  %v1650_v49 = vld [vmem:[#allocation2 + $0xaf8] sm:$0xff] }
 0x422   :  { %2430 = vmatpush1.bf16.msra.mxu0 %v1455_v50  ;;  %2516 = vmatpush1.bf16.msra.mxu1 %v1457_v51  ;;  %v1842_v51 = vrot.slane %v4130_v41, %v1841_v44 }
 0x423   :  { %2431 = vmatprep.subr.bf16.mxu0 %v1472_v52  ;;  %2517 = vmatprep.subr.bf16.mxu1 %v1474_v53  ;;  %v1647_v52 = vld [vmem:[#allocation2 + $0xae0] sm:$0xff]  ;;  %v1649_v53 = vld [vmem:[#allocation2 + $0xaf0] sm:$0xff] }
 0x426   :  { %2432 = vmatpush1.bf16.msra.mxu0 %v1471_v54  ;;  %2518 = vmatpush1.bf16.msra.mxu1 %v1473_v34 }
 0x427   :  { %2433 = vmatprep.subr.bf16.mxu0 %v1488_v39  ;;  %2519 = vmatprep.subr.bf16.mxu1 %v1490_v48  ;;  %v1838_v39 = vrot.slane %v4130_v41, %v1837_v45  ;;  %v1846_v48 = vrot.slane %v4130_v41, %v1845_v46 }
 0x42a   :  { %2434 = vmatpush1.bf16.msra.mxu0 %v1487_v55  ;;  %2520 = vmatpush1.bf16.msra.mxu1 %v1489_v56  ;;  %v1664_v55 = vld [vmem:[#allocation2 + $0xb68] sm:$0xff]  ;;  %v1666_v56 = vld [vmem:[#allocation2 + $0xb78] sm:$0xff] }
 0x42b   :  { %2435 = vmatprep.subr.bf16.mxu0 %v1504_v57  ;;  %2521 = vmatprep.subr.bf16.mxu1 %v1506_v58 }
 0x42e   :  { %2436 = vmatpush1.bf16.msra.mxu0 %v1503_v59  ;;  %2522 = vmatpush1.bf16.msra.mxu1 %v1505_v60 }
 0x42f   :  { %2437 = vmatprep.subr.bf16.mxu0 %v1520_v61  ;;  %2523 = vmatprep.subr.bf16.mxu1 %v1522_v62 }
 0x432   :  { %2438 = vmatpush1.bf16.msra.mxu0 %v1519_v63  ;;  %2524 = vmatpush1.bf16.msra.mxu1 %v1521_v1 }
 0x433   :  { %2439 = vmatprep.subr.bf16.mxu0 %v1536_v2  ;;  %2525 = vmatprep.subr.bf16.mxu1 %v1538_v3 }
 0x436   :  { %2440 = vmatpush1.bf16.msra.mxu0 %v1535_v4  ;;  %2526 = vmatpush1.bf16.msra.mxu1 %v1537_v5  ;;  %v1663_v4 = vld [vmem:[#allocation2 + $0xb60] sm:$0xff]  ;;  %v1665_v5 = vld [vmem:[#allocation2 + $0xb70] sm:$0xff] }
 0x437   :  { %2441 = vmatprep.subr.bf16.mxu0 %v1552_v6  ;;  %2527 = vmatprep.subr.bf16.mxu1 %v1554_v7 }
 0x43a   :  { %2442 = vmatpush1.bf16.msra.mxu0 %v1551_v8  ;;  %2528 = vmatpush1.bf16.msra.mxu1 %v1553_v9  ;;  %v1680_v9 = vld [vmem:[#allocation2 + $0xbe8] sm:$0xff] }
 0x43b   :  { %2454 = vmatprep.subr.bf16.mxu0 %v1568_v10  ;;  %2540 = vmatprep.subr.bf16.mxu1 %v1570_v13  ;;  %v1682_v10 = vld [vmem:[#allocation2 + $0xbf8] sm:$0xff] }
 0x43d   :  { %2444 = vmatmul.mubr.bf16.vlgmr.msra.gmra.mrb[20].mxu0 %v4097_v16  ;;  %2530 = vmatmul.mubr.bf16.vlgmr.msra.gmra.mrb[20].mxu1 %v4097_v16  ;;  %v1618_v16 = vld [vmem:[#allocation2 + $0x9f8] sm:$0xff] }
 0x43e   :  { %2455 = vmatpush1.bf16.msra.mxu0 %v1567_v23  ;;  %2541 = vmatpush1.bf16.msra.mxu1 %v1569_v26 }
 0x43f   :  { %2456 = vmatprep.subr.bf16.mxu0 %v1584_v21  ;;  %2542 = vmatprep.subr.bf16.mxu1 %v1586_v27 }
 0x440   :  { %2486 = vmatprep.mubr.bf16.mxu0 %v4106_v22  ;;  %2572 = vmatprep.mubr.bf16.mxu1 %v4106_v22  ;;  %v1833_v22 = vsub.s32 4, %v4049_v14 }
 0x442   :  { %2457 = vmatpush1.bf16.msra.mxu0 %v1583_v28  ;;  %2543 = vmatpush1.bf16.msra.mxu1 %v1585_v29  ;;  %v1834_v50 = vrot.slane %v4130_v41, %v1833_v22  ;;  %v1679_v29 = vld [vmem:[#allocation2 + $0xbe0] sm:$0xff] }
 0x443   :  { %2458 = vmatprep.subr.bf16.mxu0 %v1600_v30  ;;  %2544 = vmatprep.subr.bf16.mxu1 %v1602_v31  ;;  %v1681_v30 = vld [vmem:[#allocation2 + $0xbf0] sm:$0xff] }
 0x446   :  { %2459 = vmatpush1.bf16.msra.mxu0 %v1599_v32  ;;  %2545 = vmatpush1.bf16.msra.mxu1 %v1601_v33  ;;  %v1696_v33 = vld [vmem:[#allocation2 + $0xc68] sm:$0xff] }
 0x447   :  { %2460 = vmatprep.subr.bf16.mxu0 %v1616_v35  ;;  %2546 = vmatprep.subr.bf16.mxu1 %v1618_v16  ;;  %v1698_v35 = vld [vmem:[#allocation2 + $0xc78] sm:$0xff]  ;;  %v1695_v16 = vld [vmem:[#allocation2 + $0xc60] sm:$0xff] }
 0x44a   :  { %2461 = vmatpush1.bf16.msra.mxu0 %v1615_v36  ;;  %2547 = vmatpush1.bf16.msra.mxu1 %v1617_v37  ;;  %v1697_v36 = vld [vmem:[#allocation2 + $0xc70] sm:$0xff]  ;;  %v1712_v37 = vld [vmem:[#allocation2 + $0xce8] sm:$0xff] }
 0x44b   :  { %2462 = vmatprep.subr.bf16.mxu0 %v1632_v38  ;;  %2548 = vmatprep.subr.bf16.mxu1 %v1634_v40  ;;  %v1714_v38 = vld [vmem:[#allocation2 + $0xcf8] sm:$0xff]  ;;  %v1711_v40 = vld [vmem:[#allocation2 + $0xce0] sm:$0xff] }
 0x44e   :  { %2463 = vmatpush1.bf16.msra.mxu0 %v1631_v42  ;;  %2549 = vmatpush1.bf16.msra.mxu1 %v1633_v43  ;;  %v1713_v42 = vld [vmem:[#allocation2 + $0xcf0] sm:$0xff]  ;;  %v1728_v43 = vld [vmem:[#allocation2 + $0xd68] sm:$0xff] }
 0x44f   :  { %2464 = vmatprep.subr.bf16.mxu0 %v1648_v47  ;;  %2550 = vmatprep.subr.bf16.mxu1 %v1650_v49  ;;  %v1730_v47 = vld [vmem:[#allocation2 + $0xd78] sm:$0xff]  ;;  %v1727_v49 = vld [vmem:[#allocation2 + $0xd60] sm:$0xff] }
 0x450   :  { %v2144_v54 = vpop.f32.mrb[12].mxu0  ;;  %v2230_v34 = vpop.f32.mrb[12].mxu1 }
 0x451   :  { %v2146_v57 = vpop.f32.mrb[13].mxu0  ;;  %v2232_v58 = vpop.f32.mrb[13].mxu1  ;;  %v3441_v59 = vadd.f32 %v2144_v54, %v1834_v50  ;;  %v3445_v62 = vadd.f32 %v2230_v34, %v1842_v51  ;;  %v1745_v54 = vld [vmem:[#allocation2 + $0xdf0] sm:$0xff]  ;;  %v1760_v34 = vld [vmem:[#allocation2 + $0xe68] sm:$0xff] }
 0x452   :  { %v2148_v60 = vpop.f32.mrb[14].mxu0  ;;  %v2234_v61 = vpop.f32.mrb[14].mxu1  ;;  %2465 = vmatpush1.bf16.msra.mxu0 %v1647_v52  ;;  %2551 = vmatpush1.bf16.msra.mxu1 %v1649_v53  ;;  %v3442_v6 = vadd.f32 %v2146_v57, %v1838_v39  ;;  %v3446_v41 = vadd.f32 %v2232_v58, %v1846_v48  ;;  %v1746_v52 = vld [vmem:[#allocation2 + $0xdf8] sm:$0xff]  ;;  %v1743_v53 = vld [vmem:[#allocation2 + $0xde0] sm:$0xff] }
 0x453   :  { %v3443_v63 = vadd.f32 %v2148_v60, %v1834_v50  ;;  %v3447_v1 = vadd.f32 %v2234_v61, %v1842_v51  ;;  %v2150_v2 = vpop.f32.mrb[15].mxu0  ;;  %v2236_v3 = vpop.f32.mrb[15].mxu1  ;;  %2466 = vmatprep.subr.bf16.mxu0 %v1664_v55  ;;  %2552 = vmatprep.subr.bf16.mxu1 %v1666_v56  ;;  %v1729_v50 = vld [vmem:[#allocation2 + $0xd70] sm:$0xff]  ;;  %v1744_v51 = vld [vmem:[#allocation2 + $0xde8] sm:$0xff]  ;;  %v1778_v57 = vld [vmem:[#allocation2 + $0xef8] sm:$0xff] }
 0x454   :  { %v3444_v7 = vadd.f32 %v2150_v2, %v1838_v39  ;;  %v3448_v8 = vadd.f32 %v2236_v3, %v1846_v48  ;;  %v1762_v39 = vld [vmem:[#allocation2 + $0xe78] sm:$0xff]  ;;  %v1759_v48 = vld [vmem:[#allocation2 + $0xe60] sm:$0xff]  ;;  %v1761_v55 = vld [vmem:[#allocation2 + $0xe70] sm:$0xff] }
 0x455   :  { %v2587_v13 = vpack.c.bf16 %v3443_v63, %v3441_v59  ;;  %v2589_v23 = vpack.c.bf16 %v3447_v1, %v3445_v62  ;;  %v1776_v56 = vld [vmem:[#allocation2 + $0xee8] sm:$0xff]  ;;  %v1775_v58 = vld [vmem:[#allocation2 + $0xee0] sm:$0xff]  ;;  %v1777_v59 = vld [vmem:[#allocation2 + $0xef0] sm:$0xff] }
 0x456   :  { %v2588_v26 = vpack.c.bf16 %v3444_v7, %v3442_v6  ;;  %v2590_v21 = vpack.c.bf16 %v3448_v8, %v3446_v41  ;;  %2467 = vmatpush1.bf16.msra.mxu0 %v1663_v4  ;;  %2553 = vmatpush1.bf16.msra.mxu1 %v1665_v5  ;;  %v1792_v60 = vld [vmem:[#allocation2 + $0xf68] sm:$0xff]  ;;  %v1794_v61 = vld [vmem:[#allocation2 + $0xf78] sm:$0xff]  ;;  %v1791_v62 = vld [vmem:[#allocation2 + $0xf60] sm:$0xff] }
 0x457   :  { %v4177_v27 = vmax.bf16 %v3904_v0, %v2587_v13  ;;  %v4180_v28 = vmax.bf16 %v3904_v0, %v2589_v23  ;;  %2468 = vmatprep.subr.bf16.mxu0 %v1680_v9  ;;  %2554 = vmatprep.subr.bf16.mxu1 %v1682_v10  ;;  %v1793_v63 = vld [vmem:[#allocation2 + $0xf70] sm:$0xff]  ;;  %v1808_v1 = vld [vmem:[#allocation2 + $0xfe8] sm:$0xff]  ;;  %v1810_v2 = vld [vmem:[#allocation2 + $0xff8] sm:$0xff] }
 0x458   :  { %v4183_v31 = vmax.bf16 %v3904_v0, %v2588_v26  ;;  %v4186_v32 = vmax.bf16 %v3904_v0, %v2590_v21  ;;  %v1807_v3 = vld [vmem:[#allocation2 + $0xfe0] sm:$0xff]  ;;  %v1809_v4 = vld [vmem:[#allocation2 + $0xff0] sm:$0xff] }
 0x459   :  { %v1812_v5 = vld [vmem:[#allocation12 + $0x8] sm:$0xff] }
 0x45a   :  { %2469 = vmatpush1.bf16.msra.mxu0 %v1679_v29  ;;  %2555 = vmatpush1.bf16.msra.mxu1 %v1681_v30  ;;  %v1850_v6 = vrot.slane %v1812_v5, %v4052_v15  ;;  %v1858_v41 = vrot.slane %v1812_v5, %v4058_v18  ;;  %v1854_v9 = vrot.slane %v1812_v5, %v4055_v17 }
 0x45b   :  { %2470 = vmatprep.subr.bf16.mxu0 %v1696_v33  ;;  %2556 = vmatprep.subr.bf16.mxu1 %v1698_v35  ;;  %v1862_v10 = vrot.slane %v1812_v5, %v4061_v19 }
 0x45e   :  { %2471 = vmatpush1.bf16.msra.mxu0 %v1695_v16  ;;  %2557 = vmatpush1.bf16.msra.mxu1 %v1697_v36 }
 0x45f   :  { %2472 = vmatprep.subr.bf16.mxu0 %v1712_v37  ;;  %2558 = vmatprep.subr.bf16.mxu1 %v1714_v38 }
 0x462   :  { %2473 = vmatpush1.bf16.msra.mxu0 %v1711_v40  ;;  %2559 = vmatpush1.bf16.msra.mxu1 %v1713_v42 }
 0x463   :  { %2474 = vmatprep.subr.bf16.mxu0 %v1728_v43  ;;  %2560 = vmatprep.subr.bf16.mxu1 %v1730_v47 }
 0x466   :  { %2475 = vmatpush1.bf16.msra.mxu0 %v1727_v49  ;;  %2561 = vmatpush1.bf16.msra.mxu1 %v1729_v50  ;;  %v1866_v50 = vrot.slane %v1812_v5, %v1833_v22 }
 0x467   :  { %2476 = vmatprep.subr.bf16.mxu0 %v1744_v51  ;;  %2562 = vmatprep.subr.bf16.mxu1 %v1746_v52  ;;  %v1874_v51 = vrot.slane %v1812_v5, %v1841_v44 }
 0x46a   :  { %2477 = vmatpush1.bf16.msra.mxu0 %v1743_v53  ;;  %2563 = vmatpush1.bf16.msra.mxu1 %v1745_v54  ;;  %v1870_v54 = vrot.slane %v1812_v5, %v1837_v45 }
 0x46b   :  { %2478 = vmatprep.subr.bf16.mxu0 %v1760_v34  ;;  %2564 = vmatprep.subr.bf16.mxu1 %v1762_v39  ;;  %v1878_v34 = vrot.slane %v1812_v5, %v1845_v46 }
 0x46e   :  { %2479 = vmatpush1.bf16.msra.mxu0 %v1759_v48  ;;  %2565 = vmatpush1.bf16.msra.mxu1 %v1761_v55 }
 0x46f   :  { %2480 = vmatprep.subr.bf16.mxu0 %v1776_v56  ;;  %2566 = vmatprep.subr.bf16.mxu1 %v1778_v57 }
 0x472   :  { %2481 = vmatpush1.bf16.msra.mxu0 %v1775_v58  ;;  %2567 = vmatpush1.bf16.msra.mxu1 %v1777_v59 }
 0x473   :  { %2482 = vmatprep.subr.bf16.mxu0 %v1792_v60  ;;  %2568 = vmatprep.subr.bf16.mxu1 %v1794_v61 }
 0x476   :  { %2483 = vmatpush1.bf16.msra.mxu0 %v1791_v62  ;;  %2569 = vmatpush1.bf16.msra.mxu1 %v1793_v63 }
 0x477   :  { %2484 = vmatprep.subr.bf16.mxu0 %v1808_v1  ;;  %2570 = vmatprep.subr.bf16.mxu1 %v1810_v2 }
 0x47a   :  { %2485 = vmatpush1.bf16.msra.mxu0 %v1807_v3  ;;  %2571 = vmatpush1.bf16.msra.mxu1 %v1809_v4 }
 0x47d   :  { %2487 = vmatmul.mubr.bf16.vlgmr.msra.gmra.mrb[20].mxu0 %v4100_v20  ;;  %2573 = vmatmul.mubr.bf16.vlgmr.msra.gmra.mrb[20].mxu1 %v4100_v20 }
 0x4d0   :  { %v2316_v7 = vpop.f32.mrb[16].mxu0  ;;  %v2402_v8 = vpop.f32.mrb[16].mxu1 }
 0x4d1   :  { %v2318_v13 = vpop.f32.mrb[17].mxu0  ;;  %v2404_v23 = vpop.f32.mrb[17].mxu1  ;;  %v3449_v29 = vadd.f32 %v2316_v7, %v1850_v6  ;;  %v3453_v30 = vadd.f32 %v2402_v8, %v1858_v41 }
 0x4d2   :  { %v2320_v26 = vpop.f32.mrb[18].mxu0  ;;  %v2406_v21 = vpop.f32.mrb[18].mxu1  ;;  %v3450_v36 = vadd.f32 %v2318_v13, %v1854_v9  ;;  %v3454_v15 = vadd.f32 %v2404_v23, %v1862_v10 }
 0x4d3   :  { %v3451_v33 = vadd.f32 %v2320_v26, %v1850_v6  ;;  %v3455_v35 = vadd.f32 %v2406_v21, %v1858_v41  ;;  %v2322_v20 = vpop.f32.mrb[19].mxu0  ;;  %v2408_v16 = vpop.f32.mrb[19].mxu1 }
 0x4d4   :  { %v3452_v37 = vadd.f32 %v2322_v20, %v1854_v9  ;;  %v3456_v18 = vadd.f32 %v2408_v16, %v1862_v10 }
 0x4d5   :  { %v2591_v38 = vpack.c.bf16 %v3451_v33, %v3449_v29  ;;  %v2593_v40 = vpack.c.bf16 %v3455_v35, %v3453_v30 }
 0x4d6   :  { %v2592_v42 = vpack.c.bf16 %v3452_v37, %v3450_v36  ;;  %v2594_v17 = vpack.c.bf16 %v3456_v18, %v3454_v15 }
 0x4d7   :  { %v4195_v19 = vmax.bf16 %v3904_v0, %v2591_v38  ;;  %v4198_v43 = vmax.bf16 %v3904_v0, %v2593_v40 }
 0x4d8   :  { %v4201_v47 = vmax.bf16 %v3904_v0, %v2592_v42  ;;  %v4204_v49 = vmax.bf16 %v3904_v0, %v2594_v17 }
 0x550   :  { %v2488_v52 = vpop.f32.mrb[20].mxu0  ;;  %v2574_v53 = vpop.f32.mrb[20].mxu1 }
 0x551   :  { %v2490_v39 = vpop.f32.mrb[21].mxu0  ;;  %v2576_v48 = vpop.f32.mrb[21].mxu1  ;;  %v3457_v57 = vadd.f32 %v2488_v52, %v1866_v50  ;;  %v3461_v58 = vadd.f32 %v2574_v53, %v1874_v51 }
 0x552   :  { %v2492_v55 = vpop.f32.mrb[22].mxu0  ;;  %v2578_v56 = vpop.f32.mrb[22].mxu1  ;;  %v3458_v62 = vadd.f32 %v2490_v39, %v1870_v54  ;;  %v3462_v44 = vadd.f32 %v2576_v48, %v1878_v34 }
 0x553   :  { %v3459_v59 = vadd.f32 %v2492_v55, %v1866_v50  ;;  %v3463_v60 = vadd.f32 %v2578_v56, %v1874_v51  ;;  %v2494_v22 = vpop.f32.mrb[23].mxu0  ;;  %v2580_v61 = vpop.f32.mrb[23].mxu1 }
 0x554   :  { %v3460_v63 = vadd.f32 %v2494_v22, %v1870_v54  ;;  %v3464_v1 = vadd.f32 %v2580_v61, %v1878_v34 }
 0x555   :  { %v2595_v2 = vpack.c.bf16 %v3459_v59, %v3457_v57  ;;  %v2597_v3 = vpack.c.bf16 %v3463_v60, %v3461_v58 }
 0x556   :  { %v2596_v45 = vpack.c.bf16 %v3460_v63, %v3458_v62  ;;  %v2598_v4 = vpack.c.bf16 %v3464_v1, %v3462_v44 }
 0x557   :  { %v4215_v14 = vmax.bf16 %v3904_v0, %v2595_v2  ;;  %v4218_v46 = vmax.bf16 %v3904_v0, %v2597_v3 }
 0x558   :  { %v4221_v5 = vmax.bf16 %v3904_v0, %v2596_v45  ;;  %v4224_v6 = vmax.bf16 %v3904_v0, %v2598_v4 }
 0x559   :  { %3893 = dma.done.wait [#allocation4 + $0x1], 16384 }
 0x55a   :  { %3894 = vsyncadd [#allocation4 + $0x1], 4294950912  ;;  %2786 = vmatprep.mubr.bf16.mxu0 %v4147_v24  ;;  %2827 = vmatprep.mubr.bf16.mxu1 %v4150_v25  ;;  %v2627_v41 = vld [vmem:[#allocation3 + $0x40] sm:$0xff]  ;;  %v2628_v10 = vld [vmem:[#allocation3 + $0x48] sm:$0xff] }
 0x55b   :  { %v2643_v7 = vld [vmem:[#allocation3 + $0xc0] sm:$0xff]  ;;  %3249 = vmatprep.subr.bf16.mxu0 %v2627_v41  ;;  %v2644_v13 = vld [vmem:[#allocation3 + $0xc8] sm:$0xff]  ;;  %v2629_v26 = vld [vmem:[#allocation3 + $0x50] sm:$0xff] }
 0x55c   :  { %v2619_v8 = vld [vmem:[#allocation3] sm:$0xff]  ;;  %3271 = vmatprep.subr.bf16.mxu1 %v2643_v7  ;;  %v2620_v0 = vld [vmem:[#allocation3 + $0x8] sm:$0xff]  ;;  %v2645_v21 = vld [vmem:[#allocation3 + $0xd0] sm:$0xff] }
 0x55d   :  { %v2635_v9 = vld [vmem:[#allocation3 + $0x80] sm:$0xff]  ;;  %3250 = vmatpush3.bf16.msra.mxu0 %v2619_v8  ;;  %v2636_v23 = vld [vmem:[#allocation3 + $0x88] sm:$0xff]  ;;  %v2621_v24 = vld [vmem:[#allocation3 + $0x10] sm:$0xff] }
 0x55e   :  { %3272 = vmatpush3.bf16.msra.mxu1 %v2635_v9  ;;  %3251 = vmatprep.subr.bf16.mxu0 %v2628_v10  ;;  %v2637_v25 = vld [vmem:[#allocation3 + $0x90] sm:$0xff]  ;;  %v2630_v29 = vld [vmem:[#allocation3 + $0x58] sm:$0xff]  ;;  %v2631_v20 = vld [vmem:[#allocation3 + $0x60] sm:$0xff] }
 0x55f   :  { %3273 = vmatprep.subr.bf16.mxu1 %v2644_v13  ;;  %v2646_v30 = vld [vmem:[#allocation3 + $0xd8] sm:$0xff]  ;;  %v2647_v16 = vld [vmem:[#allocation3 + $0xe0] sm:$0xff]  ;;  %v2632_v37 = vld [vmem:[#allocation3 + $0x68] sm:$0xff] }
 0x560   :  { %v2622_v33 = vld [vmem:[#allocation3 + $0x18] sm:$0xff]  ;;  %v2623_v36 = vld [vmem:[#allocation3 + $0x20] sm:$0xff]  ;;  %v2648_v18 = vld [vmem:[#allocation3 + $0xe8] sm:$0xff] }
 0x561   :  { %3252 = vmatpush3.bf16.msra.mxu0 %v2620_v0  ;;  %v2638_v35 = vld [vmem:[#allocation3 + $0x98] sm:$0xff]  ;;  %v2639_v15 = vld [vmem:[#allocation3 + $0xa0] sm:$0xff]  ;;  %v2624_v38 = vld [vmem:[#allocation3 + $0x28] sm:$0xff] }
 0x562   :  { %3274 = vmatpush3.bf16.msra.mxu1 %v2636_v23  ;;  %3253 = vmatprep.subr.bf16.mxu0 %v2629_v26  ;;  %v2640_v40 = vld [vmem:[#allocation3 + $0xa8] sm:$0xff]  ;;  %v2633_v42 = vld [vmem:[#allocation3 + $0x70] sm:$0xff]  ;;  %v2634_v52 = vld [vmem:[#allocation3 + $0x78] sm:$0xff] }
 0x563   :  { %3275 = vmatprep.subr.bf16.mxu1 %v2645_v21  ;;  %v2649_v17 = vld [vmem:[#allocation3 + $0xf0] sm:$0xff]  ;;  %v2650_v53 = vld [vmem:[#allocation3 + $0xf8] sm:$0xff]  ;;  %v2659_v39 = vld [vmem:[#allocation3 + $0x140] sm:$0xff] }
 0x564   :  { %v2625_v50 = vld [vmem:[#allocation3 + $0x30] sm:$0xff]  ;;  %v2626_v54 = vld [vmem:[#allocation3 + $0x38] sm:$0xff]  ;;  %v2675_v48 = vld [vmem:[#allocation3 + $0x1c0] sm:$0xff] }
 0x565   :  { %3254 = vmatpush3.bf16.msra.mxu0 %v2621_v24  ;;  %v2641_v51 = vld [vmem:[#allocation3 + $0xb0] sm:$0xff]  ;;  %v2642_v34 = vld [vmem:[#allocation3 + $0xb8] sm:$0xff]  ;;  %v2651_v55 = vld [vmem:[#allocation3 + $0x100] sm:$0xff] }
 0x566   :  { %3276 = vmatpush3.bf16.msra.mxu1 %v2637_v25  ;;  %3255 = vmatprep.subr.bf16.mxu0 %v2630_v29  ;;  %v2667_v56 = vld [vmem:[#allocation3 + $0x180] sm:$0xff]  ;;  %v2660_v57 = vld [vmem:[#allocation3 + $0x148] sm:$0xff]  ;;  %v2661_v22 = vld [vmem:[#allocation3 + $0x150] sm:$0xff] }
 0x567   :  { %3277 = vmatprep.subr.bf16.mxu1 %v2646_v30  ;;  %v2676_v58 = vld [vmem:[#allocation3 + $0x1c8] sm:$0xff]  ;;  %v2677_v61 = vld [vmem:[#allocation3 + $0x1d0] sm:$0xff]  ;;  %v2662_v44 = vld [vmem:[#allocation3 + $0x158] sm:$0xff] }
 0x568   :  { %v2652_v59 = vld [vmem:[#allocation3 + $0x108] sm:$0xff]  ;;  %v2653_v62 = vld [vmem:[#allocation3 + $0x110] sm:$0xff]  ;;  %v2654_v63 = vld [vmem:[#allocation3 + $0x118] sm:$0xff] }
 0x569   :  { %3256 = vmatpush3.bf16.msra.mxu0 %v2622_v33  ;;  %v2668_v60 = vld [vmem:[#allocation3 + $0x188] sm:$0xff]  ;;  %v2670_v1 = vld [vmem:[#allocation3 + $0x198] sm:$0xff]  ;;  %v2663_v2 = vld [vmem:[#allocation3 + $0x160] sm:$0xff] }
 0x56a   :  { %3278 = vmatpush3.bf16.msra.mxu1 %v2638_v35  ;;  %3257 = vmatprep.subr.bf16.mxu0 %v2631_v20  ;;  %v2679_v3 = vld [vmem:[#allocation3 + $0x1e0] sm:$0xff]  ;;  %v2664_v45 = vld [vmem:[#allocation3 + $0x168] sm:$0xff]  ;;  %v2665_v8 = vld [vmem:[#allocation3 + $0x170] sm:$0xff] }
 0x56b   :  { %3279 = vmatprep.subr.bf16.mxu1 %v2647_v16  ;;  %v2680_v4 = vld [vmem:[#allocation3 + $0x1e8] sm:$0xff]  ;;  %v2681_v9 = vld [vmem:[#allocation3 + $0x1f0] sm:$0xff]  ;;  %v2666_v0 = vld [vmem:[#allocation3 + $0x178] sm:$0xff] }
 0x56c   :  { %v2656_v41 = vld [vmem:[#allocation3 + $0x128] sm:$0xff]  ;;  %v2657_v10 = vld [vmem:[#allocation3 + $0x130] sm:$0xff]  ;;  %v2682_v23 = vld [vmem:[#allocation3 + $0x1f8] sm:$0xff] }
 0x56d   :  { %3258 = vmatpush3.bf16.msra.mxu0 %v2623_v36  ;;  %v2672_v7 = vld [vmem:[#allocation3 + $0x1a8] sm:$0xff]  ;;  %v2673_v13 = vld [vmem:[#allocation3 + $0x1b0] sm:$0xff]  ;;  %v2658_v26 = vld [vmem:[#allocation3 + $0x138] sm:$0xff] }
 0x56e   :  { %3280 = vmatpush3.bf16.msra.mxu1 %v2639_v15  ;;  %3259 = vmatprep.subr.bf16.mxu0 %v2632_v37  ;;  %v2674_v21 = vld [vmem:[#allocation3 + $0x1b8] sm:$0xff]  ;;  %v2691_v24 = vld [vmem:[#allocation3 + $0x240] sm:$0xff]  ;;  %v2692_v33 = vld [vmem:[#allocation3 + $0x248] sm:$0xff] }
 0x56f   :  { %3281 = vmatprep.subr.bf16.mxu1 %v2648_v18  ;;  %v2707_v25 = vld [vmem:[#allocation3 + $0x2c0] sm:$0xff]  ;;  %v2708_v35 = vld [vmem:[#allocation3 + $0x2c8] sm:$0xff]  ;;  %v2693_v36 = vld [vmem:[#allocation3 + $0x250] sm:$0xff] }
 0x570   :  { %v2683_v29 = vld [vmem:[#allocation3 + $0x200] sm:$0xff]  ;;  %v2684_v20 = vld [vmem:[#allocation3 + $0x208] sm:$0xff]  ;;  %v2709_v15 = vld [vmem:[#allocation3 + $0x2d0] sm:$0xff] }
 0x571   :  { %3260 = vmatpush3.bf16.msra.mxu0 %v2624_v38  ;;  %v2699_v30 = vld [vmem:[#allocation3 + $0x280] sm:$0xff]  ;;  %v2700_v16 = vld [vmem:[#allocation3 + $0x288] sm:$0xff]  ;;  %v2685_v37 = vld [vmem:[#allocation3 + $0x210] sm:$0xff] }
 0x572   :  { %3282 = vmatpush3.bf16.msra.mxu1 %v2640_v40  ;;  %3261 = vmatprep.subr.bf16.mxu0 %v2633_v42  ;;  %v2694_v18 = vld [vmem:[#allocation3 + $0x258] sm:$0xff]  ;;  %v2695_v42 = vld [vmem:[#allocation3 + $0x260] sm:$0xff] }
 0x573   :  { %3283 = vmatprep.subr.bf16.mxu1 %v2649_v17  ;;  %v2686_v38 = vld [vmem:[#allocation3 + $0x218] sm:$0xff]  ;;  %v2711_v17 = vld [vmem:[#allocation3 + $0x2e0] sm:$0xff] }
 0x574   :  { %v2702_v40 = vld [vmem:[#allocation3 + $0x298] sm:$0xff] }
 0x575   :  { %3262 = vmatpush3.bf16.msra.mxu0 %v2625_v50  ;;  %v2696_v50 = vld [vmem:[#allocation3 + $0x268] sm:$0xff] }
 0x576   :  { %3284 = vmatpush3.bf16.msra.mxu1 %v2641_v51  ;;  %3263 = vmatprep.subr.bf16.mxu0 %v2634_v52  ;;  %v2712_v51 = vld [vmem:[#allocation3 + $0x2e8] sm:$0xff] }
 0x577   :  { %3285 = vmatprep.subr.bf16.mxu1 %v2650_v53  ;;  %v2688_v52 = vld [vmem:[#allocation3 + $0x228] sm:$0xff] }
 0x578   :  { %v2704_v53 = vld [vmem:[#allocation3 + $0x2a8] sm:$0xff] }
 0x579   :  { %3264 = vmatpush3.bf16.msra.mxu0 %v2626_v54  ;;  %v2697_v54 = vld [vmem:[#allocation3 + $0x270] sm:$0xff] }
 0x57a   :  { %3286 = vmatpush3.bf16.msra.mxu1 %v2642_v34  ;;  %3293 = vmatprep.subr.bf16.mxu0 %v2659_v39  ;;  %v2713_v34 = vld [vmem:[#allocation3 + $0x2f0] sm:$0xff] }
 0x57b   :  { %3315 = vmatprep.subr.bf16.mxu1 %v2675_v48  ;;  %v2689_v39 = vld [vmem:[#allocation3 + $0x230] sm:$0xff] }
 0x57c   :  { %2787 = vmatmul.mubr.bf16.vlgmr.msra.gmra.mrb[24].mxu0 %v4141_v11  ;;  %v2669_v11 = vld [vmem:[#allocation3 + $0x190] sm:$0xff] }
 0x57d   :  { %2828 = vmatmul.mubr.bf16.vlgmr.msra.gmra.mrb[24].mxu1 %v4144_v12  ;;  %3294 = vmatpush3.bf16.msra.mxu0 %v2651_v55  ;;  %v2678_v12 = vld [vmem:[#allocation3 + $0x1d8] sm:$0xff]  ;;  %v2705_v48 = vld [vmem:[#allocation3 + $0x2b0] sm:$0xff] }
 0x57e   :  { %3316 = vmatpush3.bf16.msra.mxu1 %v2667_v56  ;;  %3295 = vmatprep.subr.bf16.mxu0 %v2660_v57  ;;  %v2698_v55 = vld [vmem:[#allocation3 + $0x278] sm:$0xff] }
 0x57f   :  { %3317 = vmatprep.subr.bf16.mxu1 %v2676_v58  ;;  %2868 = vmatprep.mubr.bf16.mxu0 %v4183_v31  ;;  %v2655_v31 = vld [vmem:[#allocation3 + $0x120] sm:$0xff]  ;;  %v2714_v56 = vld [vmem:[#allocation3 + $0x2f8] sm:$0xff] }
 0x580   :  { %2909 = vmatprep.mubr.bf16.mxu1 %v4186_v32  ;;  %v2671_v32 = vld [vmem:[#allocation3 + $0x1a0] sm:$0xff]  ;;  %v2690_v57 = vld [vmem:[#allocation3 + $0x238] sm:$0xff] }
 0x581   :  { %3296 = vmatpush3.bf16.msra.mxu0 %v2652_v59  ;;  %v2706_v58 = vld [vmem:[#allocation3 + $0x2b8] sm:$0xff]  ;;  %v2723_v59 = vld [vmem:[#allocation3 + $0x340] sm:$0xff] }
 0x582   :  { %3318 = vmatpush3.bf16.msra.mxu1 %v2668_v60  ;;  %3297 = vmatprep.subr.bf16.mxu0 %v2661_v22  ;;  %v2739_v60 = vld [vmem:[#allocation3 + $0x3c0] sm:$0xff] }
 0x583   :  { %3319 = vmatprep.subr.bf16.mxu1 %v2677_v61  ;;  %v2715_v22 = vld [vmem:[#allocation3 + $0x300] sm:$0xff] }
 0x584   :  { %v2731_v61 = vld [vmem:[#allocation3 + $0x380] sm:$0xff] }
 0x585   :  { %3298 = vmatpush3.bf16.msra.mxu0 %v2653_v62  ;;  %v2724_v62 = vld [vmem:[#allocation3 + $0x348] sm:$0xff] }
 0x586   :  { %3320 = vmatpush3.bf16.msra.mxu1 %v2669_v11  ;;  %3299 = vmatprep.subr.bf16.mxu0 %v2662_v44  ;;  %v2740_v11 = vld [vmem:[#allocation3 + $0x3c8] sm:$0xff] }
 0x587   :  { %3321 = vmatprep.subr.bf16.mxu1 %v2678_v12  ;;  %v2716_v44 = vld [vmem:[#allocation3 + $0x308] sm:$0xff] }
 0x588   :  { %v2732_v12 = vld [vmem:[#allocation3 + $0x388] sm:$0xff] }
 0x589   :  { %3300 = vmatpush3.bf16.msra.mxu0 %v2654_v63  ;;  %v2725_v63 = vld [vmem:[#allocation3 + $0x350] sm:$0xff] }
 0x58a   :  { %3322 = vmatpush3.bf16.msra.mxu1 %v2670_v1  ;;  %3301 = vmatprep.subr.bf16.mxu0 %v2663_v2  ;;  %v2741_v1 = vld [vmem:[#allocation3 + $0x3d0] sm:$0xff] }
 0x58b   :  { %3323 = vmatprep.subr.bf16.mxu1 %v2679_v3  ;;  %v2717_v2 = vld [vmem:[#allocation3 + $0x310] sm:$0xff]  ;;  %v2726_v3 = vld [vmem:[#allocation3 + $0x358] sm:$0xff] }
 0x58d   :  { %3302 = vmatpush3.bf16.msra.mxu0 %v2655_v31  ;;  %v2718_v31 = vld [vmem:[#allocation3 + $0x318] sm:$0xff] }
 0x58e   :  { %3324 = vmatpush3.bf16.msra.mxu1 %v2671_v32  ;;  %3303 = vmatprep.subr.bf16.mxu0 %v2664_v45  ;;  %v2734_v32 = vld [vmem:[#allocation3 + $0x398] sm:$0xff]  ;;  %v2727_v45 = vld [vmem:[#allocation3 + $0x360] sm:$0xff] }
 0x58f   :  { %3325 = vmatprep.subr.bf16.mxu1 %v2680_v4  ;;  %v2743_v4 = vld [vmem:[#allocation3 + $0x3e0] sm:$0xff] }
 0x591   :  { %3304 = vmatpush3.bf16.msra.mxu0 %v2656_v41  ;;  %v2728_v41 = vld [vmem:[#allocation3 + $0x368] sm:$0xff] }
 0x592   :  { %3326 = vmatpush3.bf16.msra.mxu1 %v2672_v7  ;;  %3305 = vmatprep.subr.bf16.mxu0 %v2665_v8  ;;  %v2744_v7 = vld [vmem:[#allocation3 + $0x3e8] sm:$0xff] }
 0x593   :  { %3327 = vmatprep.subr.bf16.mxu1 %v2681_v9  ;;  %v2720_v8 = vld [vmem:[#allocation3 + $0x328] sm:$0xff] }
 0x594   :  { %v2736_v9 = vld [vmem:[#allocation3 + $0x3a8] sm:$0xff] }
 0x595   :  { %3306 = vmatpush3.bf16.msra.mxu0 %v2657_v10  ;;  %v2729_v10 = vld [vmem:[#allocation3 + $0x370] sm:$0xff] }
 0x596   :  { %3328 = vmatpush3.bf16.msra.mxu1 %v2673_v13  ;;  %3307 = vmatprep.subr.bf16.mxu0 %v2666_v0  ;;  %v2745_v13 = vld [vmem:[#allocation3 + $0x3f0] sm:$0xff] }
 0x597   :  { %3329 = vmatprep.subr.bf16.mxu1 %v2682_v23  ;;  %v2721_v0 = vld [vmem:[#allocation3 + $0x330] sm:$0xff] }
 0x598   :  { %v2737_v23 = vld [vmem:[#allocation3 + $0x3b0] sm:$0xff] }
 0x599   :  { %3308 = vmatpush3.bf16.msra.mxu0 %v2658_v26  ;;  %v2730_v26 = vld [vmem:[#allocation3 + $0x378] sm:$0xff] }
 0x59a   :  { %3330 = vmatpush3.bf16.msra.mxu1 %v2674_v21  ;;  %3337 = vmatprep.subr.bf16.mxu0 %v2691_v24  ;;  %v2746_v21 = vld [vmem:[#allocation3 + $0x3f8] sm:$0xff] }
 0x59b   :  { %3359 = vmatprep.subr.bf16.mxu1 %v2707_v25  ;;  %v2722_v24 = vld [vmem:[#allocation3 + $0x338] sm:$0xff] }
 0x59c   :  { %2869 = vmatmul.mubr.bf16.vlgmr.msra.gmra.mrb[28].mxu0 %v4177_v27  ;;  %v2701_v27 = vld [vmem:[#allocation3 + $0x290] sm:$0xff]  ;;  %v2738_v25 = vld [vmem:[#allocation3 + $0x3b8] sm:$0xff] }
 0x59d   :  { %2910 = vmatmul.mubr.bf16.vlgmr.msra.gmra.mrb[28].mxu1 %v4180_v28  ;;  %3338 = vmatpush3.bf16.msra.mxu0 %v2683_v29  ;;  %v2710_v28 = vld [vmem:[#allocation3 + $0x2d8] sm:$0xff] }
 0x59e   :  { %3360 = vmatpush3.bf16.msra.mxu1 %v2699_v30  ;;  %3339 = vmatprep.subr.bf16.mxu0 %v2692_v33  ;;  %v3246_v33 = vld [vmem:[#allocation13] ss:$0 sm:$0xff] }
 0x59f   :  { %3361 = vmatprep.subr.bf16.mxu1 %v2708_v35  ;;  %2950 = vmatprep.mubr.bf16.mxu0 %v4201_v47  ;;  %v2687_v47 = vld [vmem:[#allocation3 + $0x220] sm:$0xff] }
 0x5a0   :  { %2991 = vmatprep.mubr.bf16.mxu1 %v4204_v49  ;;  %v2703_v49 = vld [vmem:[#allocation3 + $0x2a0] sm:$0xff] }
 0x5a1   :  { %3340 = vmatpush3.bf16.msra.mxu0 %v2684_v20 }
 0x5a2   :  { %3362 = vmatpush3.bf16.msra.mxu1 %v2700_v16  ;;  %3341 = vmatprep.subr.bf16.mxu0 %v2693_v36 }
 0x5a3   :  { %3363 = vmatprep.subr.bf16.mxu1 %v2709_v15 }
 0x5a5   :  { %3342 = vmatpush3.bf16.msra.mxu0 %v2685_v37 }
 0x5a6   :  { %3364 = vmatpush3.bf16.msra.mxu1 %v2701_v27  ;;  %3343 = vmatprep.subr.bf16.mxu0 %v2694_v18 }
 0x5a7   :  { %3365 = vmatprep.subr.bf16.mxu1 %v2710_v28 }
 0x5a9   :  { %3344 = vmatpush3.bf16.msra.mxu0 %v2686_v38 }
 0x5aa   :  { %3366 = vmatpush3.bf16.msra.mxu1 %v2702_v40  ;;  %3345 = vmatprep.subr.bf16.mxu0 %v2695_v42 }
 0x5ab   :  { %3367 = vmatprep.subr.bf16.mxu1 %v2711_v17 }
 0x5ad   :  { %3346 = vmatpush3.bf16.msra.mxu0 %v2687_v47 }
 0x5ae   :  { %3368 = vmatpush3.bf16.msra.mxu1 %v2703_v49  ;;  %3347 = vmatprep.subr.bf16.mxu0 %v2696_v50 }
 0x5af   :  { %3369 = vmatprep.subr.bf16.mxu1 %v2712_v51 }
 0x5b1   :  { %3348 = vmatpush3.bf16.msra.mxu0 %v2688_v52 }
 0x5b2   :  { %3370 = vmatpush3.bf16.msra.mxu1 %v2704_v53  ;;  %3349 = vmatprep.subr.bf16.mxu0 %v2697_v54 }
 0x5b3   :  { %3371 = vmatprep.subr.bf16.mxu1 %v2713_v34 }
 0x5b5   :  { %3350 = vmatpush3.bf16.msra.mxu0 %v2689_v39 }
 0x5b6   :  { %3372 = vmatpush3.bf16.msra.mxu1 %v2705_v48  ;;  %3351 = vmatprep.subr.bf16.mxu0 %v2698_v55 }
 0x5b7   :  { %3373 = vmatprep.subr.bf16.mxu1 %v2714_v56 }
 0x5b9   :  { %3352 = vmatpush3.bf16.msra.mxu0 %v2690_v57 }
 0x5ba   :  { %3374 = vmatpush3.bf16.msra.mxu1 %v2706_v58  ;;  %3381 = vmatprep.subr.bf16.mxu0 %v2723_v59 }
 0x5bb   :  { %3403 = vmatprep.subr.bf16.mxu1 %v2739_v60 }
 0x5bc   :  { %2951 = vmatmul.mubr.bf16.vlgmr.msra.gmra.mrb[32].mxu0 %v4195_v19  ;;  %v2733_v19 = vld [vmem:[#allocation3 + $0x390] sm:$0xff] }
 0x5bd   :  { %2992 = vmatmul.mubr.bf16.vlgmr.msra.gmra.mrb[32].mxu1 %v4198_v43  ;;  %3382 = vmatpush3.bf16.msra.mxu0 %v2715_v22  ;;  %v2742_v43 = vld [vmem:[#allocation3 + $0x3d8] sm:$0xff] }
 0x5be   :  { %3404 = vmatpush3.bf16.msra.mxu1 %v2731_v61  ;;  %3383 = vmatprep.subr.bf16.mxu0 %v2724_v62 }
 0x5bf   :  { %3405 = vmatprep.subr.bf16.mxu1 %v2740_v11  ;;  %3032 = vmatprep.mubr.bf16.mxu0 %v4221_v5  ;;  %v2719_v5 = vld [vmem:[#allocation3 + $0x320] sm:$0xff] }
 0x5c0   :  { %3073 = vmatprep.mubr.bf16.mxu1 %v4224_v6  ;;  %v2735_v6 = vld [vmem:[#allocation3 + $0x3a0] sm:$0xff] }
 0x5c1   :  { %3384 = vmatpush3.bf16.msra.mxu0 %v2716_v44 }
 0x5c2   :  { %3406 = vmatpush3.bf16.msra.mxu1 %v2732_v12  ;;  %3385 = vmatprep.subr.bf16.mxu0 %v2725_v63 }
 0x5c3   :  { %3407 = vmatprep.subr.bf16.mxu1 %v2741_v1 }
 0x5c5   :  { %3386 = vmatpush3.bf16.msra.mxu0 %v2717_v2 }
 0x5c6   :  { %3408 = vmatpush3.bf16.msra.mxu1 %v2733_v19  ;;  %3387 = vmatprep.subr.bf16.mxu0 %v2726_v3 }
 0x5c7   :  { %3409 = vmatprep.subr.bf16.mxu1 %v2742_v43 }
 0x5c9   :  { %3388 = vmatpush3.bf16.msra.mxu0 %v2718_v31 }
 0x5ca   :  { %3410 = vmatpush3.bf16.msra.mxu1 %v2734_v32  ;;  %3389 = vmatprep.subr.bf16.mxu0 %v2727_v45 }
 0x5cb   :  { %3411 = vmatprep.subr.bf16.mxu1 %v2743_v4 }
 0x5cd   :  { %3390 = vmatpush3.bf16.msra.mxu0 %v2719_v5 }
 0x5ce   :  { %3412 = vmatpush3.bf16.msra.mxu1 %v2735_v6  ;;  %3391 = vmatprep.subr.bf16.mxu0 %v2728_v41 }
 0x5cf   :  { %3413 = vmatprep.subr.bf16.mxu1 %v2744_v7 }
 0x5d1   :  { %3392 = vmatpush3.bf16.msra.mxu0 %v2720_v8 }
 0x5d2   :  { %3414 = vmatpush3.bf16.msra.mxu1 %v2736_v9  ;;  %3393 = vmatprep.subr.bf16.mxu0 %v2729_v10 }
 0x5d3   :  { %3415 = vmatprep.subr.bf16.mxu1 %v2745_v13 }
 0x5d5   :  { %3394 = vmatpush3.bf16.msra.mxu0 %v2721_v0 }
 0x5d6   :  { %3416 = vmatpush3.bf16.msra.mxu1 %v2737_v23  ;;  %3395 = vmatprep.subr.bf16.mxu0 %v2730_v26 }
 0x5d7   :  { %3417 = vmatprep.subr.bf16.mxu1 %v2746_v21 }
 0x5d9   :  { %3396 = vmatpush3.bf16.msra.mxu0 %v2722_v24 }
 0x5da   :  { %3418 = vmatpush3.bf16.msra.mxu1 %v2738_v25 }
 0x5dc   :  { %3033 = vmatmul.mubr.bf16.vlgmr.msra.gmra.mrb[36].mxu0 %v4215_v14 }
 0x5dd   :  { %3074 = vmatmul.mubr.bf16.vlgmr.msra.gmra.mrb[36].mxu1 %v4218_v46 }
 0x64f   :  { %v3265_v29 = vpop.f32.mrb[24].mxu0 }
 0x650   :  { %v3287_v30 = vpop.f32.mrb[24].mxu1  ;;  %v3266_v35 = vpop.f32.mrb[25].mxu0 }
 0x651   :  { %v3288_v20 = vpop.f32.mrb[25].mxu1  ;;  %v3267_v16 = vadd.f32 %v3266_v35, %v3265_v29  ;;  %v3268_v15 = vpop.f32.mrb[26].mxu0 }
 0x652   :  { %v3289_v36 = vadd.f32 %v3288_v20, %v3287_v30  ;;  %v3290_v37 = vpop.f32.mrb[26].mxu1  ;;  %v3269_v27 = vpop.f32.mrb[27].mxu0 }
 0x653   :  { %v3291_v18 = vpop.f32.mrb[27].mxu1  ;;  %v2789_v28 = vadd.f32 %v3267_v16, %v3246_v33  ;;  %v3270_v38 = vadd.f32 %v3269_v27, %v3268_v15 }
 0x654   :  { %v3292_v40 = vadd.f32 %v3291_v18, %v3290_v37 }
 0x655   :  { %v2830_v42 = vadd.f32 %v3289_v36, %v2789_v28  ;;  %v2792_v17 = vadd.f32 %v3270_v38, %v3246_v33 }
 0x657   :  { %v2833_v47 = vadd.f32 %v3292_v40, %v2792_v17 }
 0x66f   :  { %v3309_v14 = vpop.f32.mrb[28].mxu0 }
 0x670   :  { %v3331_v49 = vpop.f32.mrb[28].mxu1  ;;  %v3310_v46 = vpop.f32.mrb[29].mxu0 }
 0x671   :  { %v3332_v50 = vpop.f32.mrb[29].mxu1  ;;  %v3311_v51 = vadd.f32 %v3310_v46, %v3309_v14  ;;  %v3312_v53 = vpop.f32.mrb[30].mxu0 }
 0x672   :  { %v3333_v52 = vadd.f32 %v3332_v50, %v3331_v49  ;;  %v3334_v54 = vpop.f32.mrb[30].mxu1  ;;  %v3313_v34 = vpop.f32.mrb[31].mxu0 }
 0x673   :  { %v3335_v39 = vpop.f32.mrb[31].mxu1  ;;  %v2871_v48 = vadd.f32 %v3311_v51, %v2830_v42  ;;  %v3314_v55 = vadd.f32 %v3313_v34, %v3312_v53 }
 0x674   :  { %v3336_v56 = vadd.f32 %v3335_v39, %v3334_v54 }
 0x675   :  { %v2912_v57 = vadd.f32 %v3333_v52, %v2871_v48  ;;  %v2874_v58 = vadd.f32 %v3314_v55, %v2833_v47 }
 0x677   :  { %v2915_v59 = vadd.f32 %v3336_v56, %v2874_v58 }
 0x68f   :  { %v3353_v60 = vpop.f32.mrb[32].mxu0 }
 0x690   :  { %v3375_v22 = vpop.f32.mrb[32].mxu1  ;;  %v3354_v61 = vpop.f32.mrb[33].mxu0 }
 0x691   :  { %v3376_v62 = vpop.f32.mrb[33].mxu1  ;;  %v3355_v11 = vadd.f32 %v3354_v61, %v3353_v60  ;;  %v3356_v12 = vpop.f32.mrb[34].mxu0 }
 0x692   :  { %v3377_v44 = vadd.f32 %v3376_v62, %v3375_v22  ;;  %v3378_v63 = vpop.f32.mrb[34].mxu1  ;;  %v3357_v1 = vpop.f32.mrb[35].mxu0 }
 0x693   :  { %v3379_v2 = vpop.f32.mrb[35].mxu1  ;;  %v2953_v19 = vadd.f32 %v3355_v11, %v2912_v57  ;;  %v3358_v3 = vadd.f32 %v3357_v1, %v3356_v12 }
 0x694   :  { %v3380_v43 = vadd.f32 %v3379_v2, %v3378_v63 }
 0x695   :  { %v2994_v31 = vadd.f32 %v3377_v44, %v2953_v19  ;;  %v2956_v32 = vadd.f32 %v3358_v3, %v2915_v59 }
 0x697   :  { %v2997_v45 = vadd.f32 %v3380_v43, %v2956_v32 }
 0x6af   :  { %v3397_v4 = vpop.f32.mrb[36].mxu0 }
 0x6b0   :  { %v3419_v5 = vpop.f32.mrb[36].mxu1  ;;  %v3398_v6 = vpop.f32.mrb[37].mxu0 }
 0x6b1   :  { %v3420_v41 = vpop.f32.mrb[37].mxu1  ;;  %v3399_v7 = vadd.f32 %v3398_v6, %v3397_v4  ;;  %v3400_v9 = vpop.f32.mrb[38].mxu0 }
 0x6b2   :  { %v3421_v8 = vadd.f32 %v3420_v41, %v3419_v5  ;;  %v3422_v10 = vpop.f32.mrb[38].mxu1  ;;  %v3401_v13 = vpop.f32.mrb[39].mxu0 }
 0x6b3   :  { %v3423_v0 = vpop.f32.mrb[39].mxu1  ;;  %v3035_v23 = vadd.f32 %v3399_v7, %v2994_v31  ;;  %v3402_v26 = vadd.f32 %v3401_v13, %v3400_v9 }
 0x6b4   :  { %v3424_v21 = vadd.f32 %v3423_v0, %v3422_v10 }
 0x6b5   :  { %v3076_v24 = vadd.f32 %v3421_v8, %v3035_v23  ;;  %v3038_v25 = vadd.f32 %v3402_v26, %v2997_v45 }
 0x6b7   :  { %3082 = vst [vmem:[%s4257_s9] sm:$0xff] %v3076_v24  ;;  %v3079_v29 = vadd.f32 %v3424_v21, %v3038_v25 }
 0x6b9   :  { %3083 = vst [vmem:[%s4257_s9 + $0x8] sm:$0xff] %v3079_v29 }
 0x6ba   :  { %3088 = vsyncpa [#allocation6], 1 }
 0x6bb   :  { %3089 = vsyncpa [#allocation8], 1 }
 0x6bc   :  { %3090 = vsyncpa [#allocation11], 1 }
 0x6bd   :  { %3091 = vsyncpa [#allocation14], 1 }
 0x6be   :  { %3092 = vsyncmov [#allocation4] }
 0x6c1   :  { %s3093_s16 = vpop.sfrf %3092 }
 0x6c2   :  { %p3247_p0 = scmp.ne.s32.totalorder %s3093_s16, 0 }
 0x6c4   :  { %3097 = shalt.err (%p3247_p0)  }
 0x6c5   :  { %3099 = vsyncmov [#allocation4 + $0x1] }
 0x6c8   :  { %s3100_s17 = vpop.sfrf %3099 }
 0x6c9   :  { %p3248_p1 = scmp.ne.s32.totalorder %s3100_s17, 0 }
 0x6cb   :  { %3104 = shalt.err (%p3248_p1)  }

</bundles_post_ra>
